<compile_context>
chip_gen: v7x
topology: tpu7x:2x2x1
jax: 0.10.0
libtpu: 0.0.40
codegen_flags: <defaults>
</compile_context>

<pallas_src>
import functools

import jax
import jax.numpy as jnp
from jax.experimental import pallas as pl
from jax.experimental.pallas import tpu as pltpu


# ---------------------------------------------------------------------------
# Helpers
# ---------------------------------------------------------------------------
def _round_up(x, m):
    return ((x + m - 1) // m) * m


def _pad2(a, rows, cols):
    return jnp.pad(a, ((0, rows - a.shape[0]), (0, cols - a.shape[1])))


def _vmem_budget_bytes():
    """~75% of physical VMEM (96 MiB on 128 MiB v5e/v6e, 48 MiB on 64 MiB v7x);
    falls back to a v7x-safe 48 MiB if the query is unavailable."""
    cap = 64 * 1024 * 1024
    try:
        cap = int(pltpu.get_tpu_info().vmem_capacity_bytes)
    except Exception:
        pass
    return min((cap * 3) // 4, 112 * 1024 * 1024)


def _choose_tiles(n_pad, f_y_pad, f_out_pad, budget_bytes):
    """Pick (tm, tk, y_resident) for the aggregation kernel.

    Preference: VMEM-resident Y first (biggest HBM-traffic win), then the
    largest row tile that still leaves >= 2 row tiles (v7x megacore), then the
    largest K tile (TK = n_pad -> single K step, minimal per-step overhead).
    """
    fixed = 4 * 1024 * 1024  # W/b/d tiles, cast temporaries, compiler scratch headroom

    def usage(tm, tk, resident):
        u = 2 * tm * tk                                                  # int8 adj, 2 buffers
        u += 2 * n_pad * f_y_pad * 2 if resident else 2 * tk * f_y_pad * 2   # bf16 Y
        u += 2 * tm * f_out_pad * 4                                      # output tiles (<= f32)
        u += tm * max(f_y_pad, f_out_pad) * 4                            # f32 accumulator
        return u + fixed

    tms = [t for t in (1024, 512, 256, 128) if t <= n_pad and n_pad % t == 0]
    tms = [t for t in tms if n_pad // t >= 2] or tms[-1:]
    tks = [t for t in (n_pad, 4096, 2048, 1024, 512, 256, 128)
           if t <= n_pad and n_pad % t == 0]
    for resident in (True, False):
        for tm in tms:
            for tk in tks:
                if usage(tm, tk, resident) <= budget_bytes:
                    return tm, tk, resident
    return 128, 128, False


# ---------------------------------------------------------------------------
# Pallas kernels
# ---------------------------------------------------------------------------
def _xw_kernel(x_ref, w_ref, out_ref):
    """Row-tiled X @ W (bf16 in, bf16 out, f32 MXU accumulation)."""
    out_ref[...] = jnp.dot(
        x_ref[...], w_ref[...], preferred_element_type=jnp.float32
    ).astype(out_ref.dtype)


def _gcn_agg_kernel(adj_ref, y_ref, d_ref, *refs, tk, post_multiply, apply_relu,
                    apply_log_softmax, valid_cols):
    """One (row-tile, K-tile) step of  (A+I) @ Y  with fused epilogue.

    acc[TM, Fy] += A_hat[TM, TK] @ Y[TK, Fy]      (f32 MXU accumulation)
    last K step: row scale by D^-1/2, optional (@ W), + bias, optional ReLU,
    optional masked log_softmax, lane-dense store.
    """
    if post_multiply:
        w_ref, b_ref, out_ref, acc_ref = refs
    else:
        b_ref, out_ref, acc_ref = refs

    k = pl.program_id(1)

    @pl.when(k == 0)
    def _():
        acc_ref[...] = jnp.zeros_like(acc_ref)

    # int8 (exact 0/1) adjacency tile -> f32 -> bf16 for the MXU.
    a_blk = adj_ref[...].astype(jnp.float32).astype(jnp.bfloat16)

    if y_ref.shape[0] == tk:
        # Streamed K-block, or resident Y with a single K step.
        y_blk = y_ref[...]
    else:
        # VMEM-resident Y: slice this K window in-kernel (no re-DMA per row tile).
        start = pl.multiple_of(k * tk, 128)
        y_blk = y_ref[pl.ds(start, tk), :]

    acc_ref[...] += jnp.dot(a_blk, y_blk, preferred_element_type=jnp.float32)

    @pl.when(k == pl.num_programs(1) - 1)
    def _():
        h = acc_ref[...] * d_ref[...]                 # left D^-1/2 row scale (f32)
        if post_multiply:
            h = jnp.dot(h.astype(jnp.bfloat16), w_ref[...],
                        preferred_element_type=jnp.float32)
        h = h + b_ref[...]                            # b is [1, F_out_pad] f32
        if apply_relu:
            h = jnp.maximum(h, 0.0)
        if apply_log_softmax:
            col = jax.lax.broadcasted_iota(jnp.int32, h.shape, 1)
            valid = col < valid_cols
            h = jnp.where(valid, h, -jnp.inf)         # ignore padded classes
            m = jnp.max(h, axis=-1, keepdims=True)
            shifted = h - m
            lse = jnp.log(jnp.sum(jnp.exp(shifted), axis=-1, keepdims=True))
            h = jnp.where(valid, shifted - lse, 0.0)  # keep padded cols finite
        out_ref[...] = h.astype(out_ref.dtype)


# ---------------------------------------------------------------------------
# Wrappers
# ---------------------------------------------------------------------------
def xw_matmul(x, w, *, tm, vmem_limit):
    """Y = X @ W, row-tiled (only used when f_in_pad > f_out_pad)."""
    n_pad, f_in_pad = x.shape
    f_out_pad = w.shape[1]
    return pl.pallas_call(
        _xw_kernel,
        out_shape=jax.ShapeDtypeStruct((n_pad, f_out_pad), jnp.bfloat16),
        grid_spec=pltpu.PrefetchScalarGridSpec(
            num_scalar_prefetch=0,
            grid=(n_pad // tm,),
            in_specs=[
                pl.BlockSpec((tm, f_in_pad), lambda i: (i, 0)),
                pl.BlockSpec((f_in_pad, f_out_pad), lambda i: (0, 0)),
            ],
            out_specs=pl.BlockSpec((tm, f_out_pad), lambda i: (i, 0)),
        ),
        compiler_params=pltpu.CompilerParams(
            dimension_semantics=("parallel",),
            vmem_limit_bytes=vmem_limit,
        ),
    )(x, w)


def gcn_agg_layer(adj_i8, y, d_inv, w, b, *, tm, tk, y_resident, post_multiply,
                  apply_relu, apply_log_softmax, valid_cols, out_dtype, vmem_limit):
    """Tiled (A+I) @ Y with fused D^-1/2 scaling, optional @W, bias, ReLU/log_softmax."""
    n_pad = adj_i8.shape[0]
    f_y = y.shape[1]
    f_out = w.shape[1] if post_multiply else f_y

    kernel = functools.partial(
        _gcn_agg_kernel,
        tk=tk,
        post_multiply=post_multiply,
        apply_relu=apply_relu,
        apply_log_softmax=apply_log_softmax,
        valid_cols=valid_cols,
    )

    in_specs = [pl.BlockSpec((tm, tk), lambda i, k: (i, k))]                 # int8 adj stream
    if y_resident:
        in_specs.append(pl.BlockSpec((n_pad, f_y), lambda i, k: (0, 0)))     # VMEM-resident Y
    else:
        in_specs.append(pl.BlockSpec((tk, f_y), lambda i, k: (k, 0)))        # streamed Y
    in_specs.append(pl.BlockSpec((tm, 1), lambda i, k: (i, 0)))              # D^-1/2 row tile
    inputs = [adj_i8, y, d_inv]
    if post_multiply:
        in_specs.append(pl.BlockSpec(w.shape, lambda i, k: (0, 0)))
        inputs.append(w)
    in_specs.append(pl.BlockSpec((1, f_out), lambda i, k: (0, 0)))
    inputs.append(b)

    return pl.pallas_call(
        kernel,
        out_shape=jax.ShapeDtypeStruct((n_pad, f_out), out_dtype),
        grid_spec=pltpu.PrefetchScalarGridSpec(
            num_scalar_prefetch=0,
            grid=(n_pad // tm, n_pad // tk),
            in_specs=in_specs,
            out_specs=pl.BlockSpec((tm, f_out), lambda i, k: (i, 0)),
            scratch_shapes=[pltpu.VMEM((tm, f_y), jnp.float32)],
        ),
        compiler_params=pltpu.CompilerParams(
            dimension_semantics=("parallel", "arbitrary"),
            vmem_limit_bytes=vmem_limit,
        ),
    )(*inputs)


# ---------------------------------------------------------------------------
# Model: parameter init + forward
# ---------------------------------------------------------------------------
def glorot(key, fan_in, fan_out):
    limit = jnp.sqrt(6.0 / (fan_in + fan_out))
    return jax.random.uniform(key, (fan_in, fan_out), jnp.float32, -limit, limit)


def init_gcn_params(key, in_channels, hidden_channels, out_channels, num_layers):
    dims = [in_channels] + [hidden_channels] * (num_layers - 1) + [out_channels]
    params = []
    for i in range(num_layers):
        key, sub = jax.random.split(key)
        w = glorot(sub, dims[i], dims[i + 1])
        b = jnp.zeros((1, dims[i + 1]), jnp.float32)
        params.append((w, b))
    return params


def normalize_adj(adj):
    """Symmetric GCN normalization with self loops (reference only)."""
    n = adj.shape[0]
    a = adj + jnp.eye(n, dtype=adj.dtype)
    deg = jnp.sum(a, axis=1)
    d_inv_sqrt = jnp.where(deg > 0, 1.0 / jnp.sqrt(deg), 0.0)
    return a * d_inv_sqrt[:, None] * d_inv_sqrt[None, :]


def gcn_forward(x, adj, params):
    """Matches GCN.forward with training=False (dropout = identity),
    smooth/test_true path disabled (returns log_softmax only).

    `adj` is the dense binary adjacency without self loops; the GCN
    normalization is applied in factorized form (int8 A+I stream, f32 D^-1/2
    row scales)."""
    n, f_in = x.shape
    num_layers = len(params)
    out_channels = params[-1][0].shape[1]

    budget = _vmem_budget_bytes()
    n_pad = _round_up(n, 128)          # padded only to lane multiples, not to TK

    # Binary A+I (exact 0/1) as int8 -> halves the dominant N^2 HBM stream.
    a_hat = ((adj > 0) | jnp.eye(n, dtype=bool)).astype(jnp.int8)
    deg = jnp.sum(a_hat.astype(jnp.float32), axis=1)
    d_inv_sqrt = jnp.where(deg > 0, jax.lax.rsqrt(deg), 0.0)

    adj_p = _pad2(a_hat, n_pad, n_pad)                                # int8
    d_p = jnp.pad(d_inv_sqrt, (0, n_pad - n))[:, None]                # [N_pad, 1] f32
    h = _pad2(x, n_pad, _round_up(f_in, 128)).astype(jnp.bfloat16)

    for layer_idx, (w, b) in enumerate(params):
        is_last = layer_idx == num_layers - 1
        f_in_l, f_out_l = w.shape
        f_in_pad = _round_up(f_in_l, 128)
        f_out_pad = _round_up(f_out_l, 128)
        w_p = _pad2(w, f_in_pad, f_out_pad).astype(jnp.bfloat16)
        b_p = _pad2(b, 1, f_out_pad)                                  # stays f32

        # Right D^-1/2 factor: row-scale the kernel's Y operand (commutes with
        # the optional X @ W pre-multiply since both are per-node row scales).
        y = (h.astype(jnp.float32) * d_p).astype(jnp.bfloat16)

        # Association: fuse W into the aggregation epilogue unless the input
        # feature dim is strictly wider (then shrink it first with X @ W).
        post_multiply = f_out_pad >= f_in_pad
        if not post_multiply:
            tm_xw = max(t for t in (512, 256, 128) if n_pad % t == 0)
            y = xw_matmul(y, w_p, tm=tm_xw, vmem_limit=budget)
        f_y = y.shape[1]

        tm, tk, y_res = _choose_tiles(n_pad, f_y, f_out_pad, budget)

        h = gcn_agg_layer(
            adj_p, y, d_p, w_p, b_p,
            tm=tm, tk=tk, y_resident=y_res,
            post_multiply=post_multiply,
            apply_relu=not is_last,
            apply_log_softmax=is_last,
            valid_cols=f_out_l,
            out_dtype=jnp.float32 if is_last else jnp.bfloat16,
            vmem_limit=budget,
        )
        # dropout(training=False) -> identity

    return h[:n, :out_channels]


def gcn_reference(x, adj_norm, params):
    """Pure-JAX f32 reference for correctness checking."""
    h = x
    for layer_idx, (w, b) in enumerate(params):
        h = adj_norm @ (h @ w) + b
        if layer_idx < len(params) - 1:
            h = jnp.maximum(h, 0.0)
    return jax.nn.log_softmax(h, axis=1)


# ---------------------------------------------------------------------------
# Main
# ---------------------------------------------------------------------------
if __name__ == "__main__":
    key = jax.random.PRNGKey(0)

    # 1024 nodes -> 2 row tiles (exercises the tiling and v7x megacore split);
    # 16 input feats, 32 hidden, 8 classes, 3 layers.
    N, IN_C, HID_C, OUT_C, NUM_LAYERS = 1024, 16, 32, 8, 3

    key, kx, ka, kp = jax.random.split(key, 4)
    x = jax.random.normal(kx, (N, IN_C), jnp.float32)

    # Random symmetric binary adjacency (no self loops).
    raw = jax.random.uniform(ka, (N, N))
    adj = (raw + raw.T > 1.8).astype(jnp.float32)
    adj = adj * (1.0 - jnp.eye(N, dtype=jnp.float32))

    params = init_gcn_params(kp, IN_C, HID_C, OUT_C, NUM_LAYERS)

    out = gcn_forward(x, adj, params)
    jax.block_until_ready(out)

    assert out.shape == (N, OUT_C)

    # Sanity: log_softmax rows sum (in prob space) to ~1.
    row_prob_sum = jnp.sum(jnp.exp(out), axis=1)
    assert bool(jnp.all(jnp.abs(row_prob_sum - 1.0) < 1e-3))

    # Compare against the f32 pure-JAX reference (bf16 activations -> loose tol).
    ref = gcn_reference(x, normalize_adj(adj), params)
    max_diff = float(jnp.max(jnp.abs(out - ref)))
    assert max_diff < 0.15, f"max abs diff vs reference: {max_diff}"

    print("KERNEL_OK")
</pallas_src>

<mosaic_0001>
module attributes {stable_mosaic.version = 11 : i64} {
  func.func @_gcn_agg_kernel(%arg0: i32, %arg1: i32, %arg2: memref<512x1024xi8, #tpu.memory_space<vmem>>, %arg3: memref<1024x128xbf16, #tpu.memory_space<vmem>>, %arg4: memref<512x1xf32, #tpu.memory_space<vmem>>, %arg5: memref<128x128xbf16, #tpu.memory_space<vmem>>, %arg6: memref<1x128xf32, #tpu.memory_space<vmem>>, %arg7: memref<512x128xbf16, #tpu.memory_space<vmem>>, %arg8: memref<512x128xf32, #tpu.memory_space<vmem>>) attributes {dimension_semantics = [#tpu.dimension_semantics<parallel>, #tpu.dimension_semantics<arbitrary>], iteration_bounds = array<i64: 2, 1>, scalar_prefetch = 0 : i64, scratch_operands = 1 : i64, tpu.core_type = #tpu.core_type<tc>, window_params = [{transform_indices = @transform_0, window_bounds = array<i64: 512, 1024>}, {pipeline_mode = #tpu.pipeline_mode<synchronous>, transform_indices = @transform_1, window_bounds = array<i64: 1024, 128>}, {transform_indices = @transform_2, window_bounds = array<i64: 512, 1>}, {pipeline_mode = #tpu.pipeline_mode<synchronous>, transform_indices = @transform_3, window_bounds = array<i64: 128, 128>}, {pipeline_mode = #tpu.pipeline_mode<synchronous>, transform_indices = @transform_4, window_bounds = array<i64: 1, 128>}, {transform_indices = @transform_5, window_bounds = array<i64: 512, 128>}]} {
    %c0_i32 = arith.constant 0 : i32
    %0 = arith.cmpi eq, %arg1, %c0_i32 : i32
    %1 = arith.extui %0 : i1 to i32
    %c0_i32_0 = arith.constant 0 : i32
    %2 = arith.cmpi ne, %1, %c0_i32_0 : i32
    scf.if %2 {
      %cst_10 = arith.constant 0.000000e+00 : f32
      %14 = vector.broadcast %cst_10 : f32 to vector<512x128xf32>
      %c0_11 = arith.constant 0 : index
      %c0_12 = arith.constant 0 : index
      %15 = vector.load %arg8[%c0_11, %c0_12] : memref<512x128xf32, #tpu.memory_space<vmem>>, vector<512x128xf32>
      tpu.vector_store %arg8[%c0_11, %c0_12], %14 {strides = array<i32>} : memref<512x128xf32, #tpu.memory_space<vmem>>, vector<512x128xf32>,
    } else {
    }
    %c0 = arith.constant 0 : index
    %c0_1 = arith.constant 0 : index
    %3 = vector.load %arg2[%c0, %c0_1] : memref<512x1024xi8, #tpu.memory_space<vmem>>, vector<512x1024xi8>
    %4 = arith.sitofp %3 : vector<512x1024xi8> to vector<512x1024xf32>
    %5 = arith.truncf %4 : vector<512x1024xf32> to vector<512x1024xbf16>
    %c0_2 = arith.constant 0 : index
    %c0_3 = arith.constant 0 : index
    %6 = vector.load %arg3[%c0_2, %c0_3] : memref<1024x128xbf16, #tpu.memory_space<vmem>>, vector<1024x128xbf16>
    %c0_4 = arith.constant 0 : index
    %c0_5 = arith.constant 0 : index
    %7 = vector.load %arg8[%c0_4, %c0_5] : memref<512x128xf32, #tpu.memory_space<vmem>>, vector<512x128xf32>
    %cst = arith.constant dense<0.000000e+00> : vector<512x128xf32>
    %8 = tpu.matmul %5, %6, %cst {dimension_numbers = #tpu.dot_dimension_numbers<[1], [0], [0], [1], [0, 0, 1, 1], [], []>} : vector<512x1024xbf16>, vector<1024x128xbf16>, vector<512x128xf32> -> vector<512x128xf32>
    %9 = arith.addf %7, %8 : vector<512x128xf32>
    %c0_6 = arith.constant 0 : index
    %c0_7 = arith.constant 0 : index
    %10 = vector.load %arg8[%c0_6, %c0_7] : memref<512x128xf32, #tpu.memory_space<vmem>>, vector<512x128xf32>
    tpu.vector_store %arg8[%c0_6, %c0_7], %9 {strides = array<i32>} : memref<512x128xf32, #tpu.memory_space<vmem>>, vector<512x128xf32>,
    %c0_i32_8 = arith.constant 0 : i32
    %11 = arith.cmpi eq, %arg1, %c0_i32_8 : i32
    %12 = arith.extui %11 : i1 to i32
    %c0_i32_9 = arith.constant 0 : i32
    %13 = arith.cmpi ne, %12, %c0_i32_9 : i32
    scf.if %13 {
      %c0_10 = arith.constant 0 : index
      %c0_11 = arith.constant 0 : index
      %14 = vector.load %arg8[%c0_10, %c0_11] : memref<512x128xf32, #tpu.memory_space<vmem>>, vector<512x128xf32>
      %c0_12 = arith.constant 0 : index
      %c0_13 = arith.constant 0 : index
      %15 = vector.load %arg4[%c0_12, %c0_13] : memref<512x1xf32, #tpu.memory_space<vmem>>, vector<512x1xf32>
      %16 = vector.broadcast %15 : vector<512x1xf32> to vector<512x128xf32>
      %17 = arith.mulf %14, %16 : vector<512x128xf32>
      %18 = arith.truncf %17 : vector<512x128xf32> to vector<512x128xbf16>
      %c0_14 = arith.constant 0 : index
      %c0_15 = arith.constant 0 : index
      %19 = vector.load %arg5[%c0_14, %c0_15] : memref<128x128xbf16, #tpu.memory_space<vmem>>, vector<128x128xbf16>
      %cst_16 = arith.constant dense<0.000000e+00> : vector<512x128xf32>
      %20 = tpu.matmul %18, %19, %cst_16 {dimension_numbers = #tpu.dot_dimension_numbers<[1], [0], [0], [1], [0, 0, 1, 1], [], []>} : vector<512x128xbf16>, vector<128x128xbf16>, vector<512x128xf32> -> vector<512x128xf32>
      %c0_17 = arith.constant 0 : index
      %c0_18 = arith.constant 0 : index
      %21 = vector.load %arg6[%c0_17, %c0_18] : memref<1x128xf32, #tpu.memory_space<vmem>>, vector<1x128xf32>
      %22 = vector.broadcast %21 : vector<1x128xf32> to vector<512x128xf32>
      %23 = arith.addf %20, %22 : vector<512x128xf32>
      %cst_19 = arith.constant 0.000000e+00 : f32
      %24 = vector.broadcast %cst_19 : f32 to vector<512x128xf32>
      %25 = arith.maximumf %23, %24 : vector<512x128xf32>
      %26 = arith.truncf %25 : vector<512x128xf32> to vector<512x128xbf16>
      %c0_20 = arith.constant 0 : index
      %c0_21 = arith.constant 0 : index
      %27 = vector.load %arg7[%c0_20, %c0_21] : memref<512x128xbf16, #tpu.memory_space<vmem>>, vector<512x128xbf16>
      tpu.vector_store %arg7[%c0_20, %c0_21], %26 {strides = array<i32>} : memref<512x128xbf16, #tpu.memory_space<vmem>>, vector<512x128xbf16>,
    } else {
    }
    return
  }
  func.func @transform_0(%arg0: i32, %arg1: i32) -> (i32, i32) {
    %c0_i32 = arith.constant 0 : i32
    return %arg0, %arg1 : i32, i32
  }
  func.func @transform_1(%arg0: i32, %arg1: i32) -> (i32, i32) {
    %c0_i32 = arith.constant 0 : i32
    %c0_i32_0 = arith.constant 0 : i32
    %c0_i32_1 = arith.constant 0 : i32
    return %c0_i32, %c0_i32_0 : i32, i32
  }
  func.func @transform_2(%arg0: i32, %arg1: i32) -> (i32, i32) {
    %c0_i32 = arith.constant 0 : i32
    %c0_i32_0 = arith.constant 0 : i32
    return %arg0, %c0_i32 : i32, i32
  }
  func.func @transform_3(%arg0: i32, %arg1: i32) -> (i32, i32) {
    %c0_i32 = arith.constant 0 : i32
    %c0_i32_0 = arith.constant 0 : i32
    %c0_i32_1 = arith.constant 0 : i32
    return %c0_i32, %c0_i32_0 : i32, i32
  }
  func.func @transform_4(%arg0: i32, %arg1: i32) -> (i32, i32) {
    %c0_i32 = arith.constant 0 : i32
    %c0_i32_0 = arith.constant 0 : i32
    %c0_i32_1 = arith.constant 0 : i32
    return %c0_i32, %c0_i32_0 : i32, i32
  }
  func.func @transform_5(%arg0: i32, %arg1: i32) -> (i32, i32) {
    %c0_i32 = arith.constant 0 : i32
    %c0_i32_0 = arith.constant 0 : i32
    return %arg0, %c0_i32 : i32, i32
  }
}

</mosaic_0001>

<bundles_post_ra>
// kernel: tpu_custom_call.1
= control target key start
LH: loop header
LB: loop body
LE: loop exit
PB: predicated region body
PF: predicated region fallthrough
CT: control target
= control target key end

     0   :  { %10 = vsyncpa [#allocation4], 0  ;;  %s6218_s0 = inlined_call_operand.hbm [shape: s8[1024,1024], index: 0, kind: input, shape index: {}]   ;;  %s6219_s1 = inlined_call_operand.vmem [shape: bf16[1024,128], index: 1, kind: input, shape index: {}]   ;;  %s6220_s2 = inlined_call_operand.vmem [shape: f32[1024,1], index: 2, kind: input, shape index: {}]   ;;  %s6221_s3 = inlined_call_operand.vmem [shape: bf16[128,128], index: 3, kind: input, shape index: {}]   ;;  %s6222_s4 = inlined_call_operand.vmem [shape: f32[1,128], index: 4, kind: input, shape index: {}]   ;;  %s6223_s5 = inlined_call_operand.hbm [shape: bf16[1024,128], index: 5, kind: output, shape index: {}]  }
   0x1   :  { %12 = vsyncpa [#allocation4 + $0x1], 0 }
   0x2   :  { %13 = vsyncpa [#allocation5], 0 }
   0x3   :  { %15 = vsyncpa [#allocation5 + $0x1], 0  ;;  %s5176_s18 = smov 0   ;;  %s5178_s19 = smov 0  }
   0x4   :  { %s5180_s20 = smov 0   ;;  %s5182_s21 = smov 0  }
   0x5   :  { %s5184_s22 = smov 0   ;;  %s5186_s23 = smov 0  }
   0x6 LB: > { %s3999_s24 = sadd.s32 4294967295, %s5137_s23   ;;  %s4000_s25 = sadd.s32 4294967294, %s5137_s23   ;;  %s5137_s23 = sphi %s5186_s23, %s21_s23   ;;  %s5133_s22 = sphi %s5184_s22, %s6238_s22   ;;  %s5129_s21 = sphi %s5182_s21, %s6237_s21   ;;  %s5125_s20 = sphi %s5180_s20, %s6236_s20   ;;  %s5121_s19 = sphi %s5178_s19, %s6235_s19   ;;  %s5117_s18 = sphi %s5176_s18, %s6234_s18  }
   0x7   : > { %s33_s26 = sadd.s32 1, %s5133_s22  ;;  %s42_s27 = sadd.s32 1, %s5125_s20 }
   0x8   : > { %p35_p0 = scmp.ge.s32.totalorder %s33_s26, 2  ;;  %p49_p1 = scmp.ne.s32.totalorder %s5125_s20, %s5121_s19 }
   0x9   : > { %p50_p2 = scmp.eq.s32.totalorder %s5137_s23, 0  ;;  %p55_p3 = scmp.ne.s32.totalorder %s5121_s19, %s5117_s18 }
   0xa   : > { %s6240_s26 = smov (%p35_p0, %s33_s26), 0  ;;  %p56_p5 = scmp.eq.s32.totalorder %s3999_s24, 0 }
   0xb   : > { %p5217_p4 = por %p50_p2, %p49_p1  ;;  %s37_s29 = ssub.s32 %s5133_s22, %s6240_s26 }
   0xc   : > { %p168_p6 = scmp.eq.s32.totalorder %s3999_s24, 1  ;;  %p40_p7 = scmp.eq.s32.totalorder %s37_s29, 0 }
   0xd   : > { %p5223_p8 = por %p56_p5, %p55_p3  ;;  %p174_p10 = scmp.eq.s32.totalorder %s4000_s25, 1 }
   0xe   : > { %p5227_p9 = por %p168_p6, %p49_p1  ;;  %p4896_p13 = scmp.lt.s32.totalorder %s5137_s23, 2 }
   0xf   : > { %s5232_s7 = scalar_select %p40_p7, %s5125_s20, %s42_s27  }
  0x10   : > { %s6227_s6 = scalar_select %p5227_p9, 1, 0 }
  0x11   : > { %p5234_p11 = por %p174_p10, %p55_p3  ;;  %s203_s9 = sand.u32 1, %s5125_s20  }
  0x12   : > { %s4003_s10 = sshll.u32 %s203_s9, 10  ;;  %s4155_s11 = sshll.u32 %s5133_s22, 14 }
  0x13   : > { %s6228_s8 = scalar_select %p5234_p11, 1, 0 }
  0x14   : > { %s5245_s14 = scalar_lea.hbm %s6218_s0, %s4155_s11  ;;  %s207_s15 = scalar_lea.vmem [#allocation3], %s4003_s10 }
  0x15   : > { %s217_s16 = sshll.u32 %s207_s15, 4  ;;  %p5251_p0 = pnand %p4896_p13, %p5217_p4  ;;  %s5247_s16 = int_to_ptr.vmem [resolvable:$true] %s217_s16 }
  0x16   : > { %s5256_s24 = scalar_lea.sflag [#allocation4], %s203_s9  ;;  %s5025_s25 = scalar_lea.hbm %s5245_s14, 16384 }
  0x17   : > { %p5026_p2 = scmp.ne.s32.totalorder %s5245_s14, %s5025_s25  ;;  %p5027_p3 = pneg %p5251_p0 }
  0x18   : > { %s5030_s28 = scalar_lea.hbm %s6218_s0, 32768  ;;  %p5031_p4 = scmp.lt.u32.totalorder %s5245_s14, %s6218_s0 }
  0x19   : > { %p5028_p5 = pnand %p5027_p3, %p5026_p2  ;;  %p5032_p7 = scmp.lt.u32.totalorder %s5030_s28, %s5025_s25 }
  0x1a   : > { %p5034_p13 = scmp.lt.u32.totalorder %s5025_s25, %s5245_s14 }
  0x1b   : > { %p5029_p6 = pneg %p5028_p5  ;;  %p5033_p10 = por %p5032_p7, %p5031_p4 }
  0x1d   : > { %p5035_p12 = por %p5034_p13, %p5033_p10 }
  0x1f   : > { %p5036_p1 = pnand %p5035_p12, %p5029_p6 }
  0x21   : > { %5039 = shalt.err (!%p5036_p1)
}
  0x22   : > { %s5040_s9 = scalar_lea.vmem %s5247_s16, 16384  ;;  %s5139_s12 = smov [#allocation3]  }
  0x23   : > { %p5041_p2 = scmp.ne.s32.totalorder %s5247_s16, %s5040_s9  ;;  %s5045_s13 = sshll.u32 %s5139_s12, 4  ;;  %s5046_s13 = int_to_ptr.vmem [resolvable:$false] %s5045_s13 }
  0x24   : > { %s5047_s15 = scalar_lea.vmem %s5046_s13, 32768  ;;  %p5048_p9 = scmp.lt.s32.totalorder %s5247_s16, %s5046_s13 }
  0x25   : > { %p5043_p5 = pnand %p5041_p2, %p5027_p3  ;;  %p5049_p4 = scmp.lt.s32.totalorder %s5047_s15, %s5040_s9 }
  0x27   : > { %p5044_p11 = pneg %p5043_p5  ;;  %p5050_p7 = por %p5049_p4, %p5048_p9 }
  0x29   : > { %p5051_p10 = pnand %p5050_p7, %p5044_p11 }
  0x2b   : > { %5054 = shalt.err (!%p5051_p10)
}
  0x2c   : > { %s5140_s25 = smov 1024   ;;  %s5141_s27 = smov 64  }
  0x2d   : > { %4891 = dma.hbm_to_vmem [thread:$0]  (!%p5251_p0), %s5245_s14, 16384, %s5247_s16, %s5256_s24, %s5140_s25, %s5140_s25, %s5141_s27  }
  0x2e   : > { %p234_p12 = scmp.lt.s32.totalorder %s5137_s23, 3  ;;  %p6230_p1 = scmp.ge.s32.totalorder %s5137_s23, 1 }
  0x30   : > { %p235_p3 = pnand %p6230_p1, %p234_p12 }
  0x31   : > { %s5288_s29 = sand.u32 (!%p235_p3), 1, %s5121_s19  }
  0x32   : > { %238 = sbr.rel (%p235_p3) target bundleno = 1149 (0x47d), region = 40  ;;  %s4008_s28 = sshll.u32 (!%p235_p3), %s5288_s29, 10 }
  0x33   : > { %s241_s10 = scalar_lea.sflag (!%p235_p3), [#allocation4], %s5288_s29  ;;  %s5292_s11 = scalar_lea.vmem (!%p235_p3), [#allocation3], %s4008_s28 }
  0x39   : > { %5108 = dma.done.wait (%p5223_p8), %s241_s10, 16384  }
  0x3a   : > { %5110 = vsyncadd (%p5223_p8), %s241_s10, 4294950912  ;;  %v5142_v0 = vmov 0   ;;  %v4953_v1 = vld [vmem:[%s6219_s1] sm:$0xff]   ;;  %v4955_v3 = vld [vmem:[%s6219_s1 + $0x8] sm:$0xff]   ;;  %s4010_s28 = sshll.u32 %s5129_s21, 6  ;;  %s4009_s13 = sshll.u32 %s5288_s29, 8 }
  0x3b   : > { %1314 = vmatprep.subr.bf16.mxu1 %v5142_v0  ;;  %1603 = vmatprep.subr.bf16.mxu0 %v5142_v0  ;;  %v5308_v2 = vld [vmem:[%s6219_s1 + $0x80] sm:$0xff]   ;;  %v5318_v4 = vld [vmem:[%s6219_s1 + $0x88] sm:$0xff]   ;;  %v4957_v5 = vld [vmem:[%s6219_s1 + $0x10] sm:$0xff]   ;;  %p279_p8 = scmp.lt.s32.totalorder %s4010_s28, 127  ;;  %s6064_s15 = scalar_lea.vmem [#allocation6], %s4009_s13 }
  0x3c   : > { %4951 = vset.pattern.permute.xlu0 %v5142_v0  ;;  %4952 = vset.pattern.permute.xlu1 %v5142_v0  ;;  %v5329_v6 = vld [vmem:[%s6219_s1 + $0x90] sm:$0xff]   ;;  %v4959_v7 = vld [vmem:[%s6219_s1 + $0x18] sm:$0xff]   ;;  %v4961_v9 = vld [vmem:[%s6219_s1 + $0x20] sm:$0xff]   ;;  %s4220_s25 = sshll.u32 %s5129_s21, 12  ;;  %s3903_s27 = sshll.u32 %s6064_s15, 4  ;;  %s6167_s27 = int_to_ptr.vmem [resolvable:$true] %s3903_s27 }
  0x3d   : > { %1315 = vmatpush1.bf16.msra.mxu1 %v4953_v1  ;;  %1604 = vmatpush1.bf16.msra.mxu0 %v5308_v2  ;;  %v5340_v8 = vld [vmem:[%s6219_s1 + $0x98] sm:$0xff]   ;;  %v5351_v10 = vld [vmem:[%s6219_s1 + $0xa0] sm:$0xff]   ;;  %v4963_v11 = vld [vmem:[%s6219_s1 + $0x28] sm:$0xff]   ;;  %s6242_s28 = smov (!%p279_p8, %s4010_s28), 127  ;;  %s6165_s14 = scalar_lea.hbm %s6223_s5, %s4220_s25 }
  0x3e   : > { %1316 = vmatprep.subr.bf16.mxu1 %v5142_v0  ;;  %1605 = vmatprep.subr.bf16.mxu0 %v5142_v0  ;;  %v5362_v12 = vld [vmem:[%s6219_s1 + $0xa8] sm:$0xff]   ;;  %v4965_v13 = vld [vmem:[%s6219_s1 + $0x30] sm:$0xff]   ;;  %v4967_v15 = vld [vmem:[%s6219_s1 + $0x38] sm:$0xff]   ;;  %s4011_s10 = sshll.u32 %s6242_s28, 3  ;;  %s3890_s21 = scalar_lea.sflag [#allocation5], %s5288_s29 }
  0x3f   : > { %v5373_v14 = vld [vmem:[%s6219_s1 + $0xb0] sm:$0xff]   ;;  %v5384_v16 = vld [vmem:[%s6219_s1 + $0xb8] sm:$0xff]   ;;  %v4969_v17 = vld [vmem:[%s6219_s1 + $0x40] sm:$0xff]   ;;  %s5754_s17 = scalar_lea.vmem %s6220_s2, %s4011_s10  ;;  %s5055_s16 = scalar_lea.vmem %s6167_s27, 4096 }
  0x40   : > { %v5395_v18 = vld [vmem:[%s6219_s1 + $0xc0] sm:$0xff]   ;;  %v5399_v19 = vld [vmem:[%s5292_s11 + $0x8] sm:$0xff]  ;;  %v5402_v20 = vld [vmem:[%s5292_s11 + $0x18] sm:$0xff]  ;;  %p5056_p9 = scmp.ne.s32.totalorder %s6167_s27, %s5055_s16  ;;  %p6231_p11 = scmp.ne.s32.totalorder %s6227_s6, 0 }
  0x41   : > { %1317 = vmatpush1.bf16.msra.mxu1 %v4955_v3  ;;  %1606 = vmatpush1.bf16.msra.mxu0 %v5318_v4  ;;  %v483_v21 = vunpack.c.l.s8.bf16 %v5399_v19  ;;  %v485_v22 = vunpack.c.l.s8.bf16 %v5402_v20  ;;  %v4971_v23 = vld [vmem:[%s6219_s1 + $0x48] sm:$0xff]   ;;  %v4973_v25 = vld [vmem:[%s6219_s1 + $0x50] sm:$0xff]   ;;  %v4975_v27 = vld [vmem:[%s6219_s1 + $0x58] sm:$0xff]   ;;  %v491_v40 = vunpack.c.h.s8.bf16 %v5399_v19  ;;  %v493_v42 = vunpack.c.h.s8.bf16 %v5402_v20 }
  0x42   : > { %1318 = vmatprep.subr.bf16.mxu1 %v5142_v0  ;;  %1607 = vmatprep.subr.bf16.mxu0 %v5142_v0  ;;  %v5414_v24 = vld [vmem:[%s6219_s1 + $0xc8] sm:$0xff]   ;;  %v5425_v26 = vld [vmem:[%s6219_s1 + $0xd0] sm:$0xff]   ;;  %v5436_v28 = vld [vmem:[%s6219_s1 + $0xd8] sm:$0xff]   ;;  %p5057_p0 = pnand %p5056_p9, %p6231_p11 }
  0x43   : > { %1346 = vmatprep.mubr.bf16.mxu1 %v483_v21  ;;  %1635 = vmatprep.mubr.bf16.mxu0 %v485_v22  ;;  %v4977_v29 = vld [vmem:[%s6219_s1 + $0x60] sm:$0xff]   ;;  %v4979_v31 = vld [vmem:[%s6219_s1 + $0x68] sm:$0xff]   ;;  %v4981_v33 = vld [vmem:[%s6219_s1 + $0x70] sm:$0xff]  }
  0x44   : > { %v5447_v30 = vld [vmem:[%s6219_s1 + $0xe0] sm:$0xff]   ;;  %v5458_v32 = vld [vmem:[%s6219_s1 + $0xe8] sm:$0xff]   ;;  %v5469_v34 = vld [vmem:[%s6219_s1 + $0xf0] sm:$0xff]   ;;  %p5058_p6 = pneg %p5057_p0 }
  0x45   : > { %1319 = vmatpush1.bf16.msra.mxu1 %v4957_v5  ;;  %1608 = vmatpush1.bf16.msra.mxu0 %v5329_v6  ;;  %v4983_v35 = vld [vmem:[%s6219_s1 + $0x78] sm:$0xff]   ;;  %v354_v37 = vld [vmem:[%s5292_s11] sm:$0xff]  ;;  %v356_v38 = vld [vmem:[%s5292_s11 + $0x10] sm:$0xff] }
  0x46   : > { %1320 = vmatprep.subr.bf16.mxu1 %v5142_v0  ;;  %1609 = vmatprep.subr.bf16.mxu0 %v5142_v0  ;;  %v5478_v36 = vld [vmem:[%s6219_s1 + $0xf8] sm:$0xff]   ;;  %v482_v39 = vunpack.c.l.s8.bf16 %v354_v37  ;;  %v484_v41 = vunpack.c.l.s8.bf16 %v356_v38  ;;  %v4985_v43 = vld [vmem:[%s6219_s1 + $0x100] sm:$0xff]   ;;  %v4986_v44 = vld [vmem:[%s6219_s1 + $0x108] sm:$0xff]   ;;  %v490_v47 = vunpack.c.h.s8.bf16 %v354_v37  ;;  %v492_v49 = vunpack.c.h.s8.bf16 %v356_v38 }
  0x47   : > { %v363_v45 = vld [vmem:[%s5292_s11 + $0x48] sm:$0xff]  ;;  %v365_v46 = vld [vmem:[%s5292_s11 + $0x58] sm:$0xff]  ;;  %v4987_v48 = vld [vmem:[%s6219_s1 + $0x110] sm:$0xff]  }
  0x48   : > { %v499_v50 = vunpack.c.l.s8.bf16 %v363_v45  ;;  %v501_v51 = vunpack.c.l.s8.bf16 %v365_v46  ;;  %v4988_v52 = vld [vmem:[%s6219_s1 + $0x118] sm:$0xff]   ;;  %v362_v53 = vld [vmem:[%s5292_s11 + $0x40] sm:$0xff]  ;;  %v364_v54 = vld [vmem:[%s5292_s11 + $0x50] sm:$0xff]  ;;  %v507_v57 = vunpack.c.h.s8.bf16 %v363_v45  ;;  %v509_v59 = vunpack.c.h.s8.bf16 %v365_v46 }
  0x49   : > { %1321 = vmatpush1.bf16.msra.mxu1 %v4959_v7  ;;  %1610 = vmatpush1.bf16.msra.mxu0 %v5340_v8  ;;  %v498_v55 = vunpack.c.l.s8.bf16 %v362_v53  ;;  %v500_v56 = vunpack.c.l.s8.bf16 %v364_v54  ;;  %v4989_v58 = vld [vmem:[%s6219_s1 + $0x120] sm:$0xff]   ;;  %v4990_v60 = vld [vmem:[%s6219_s1 + $0x128] sm:$0xff]   ;;  %v373_v62 = vld [vmem:[%s5292_s11 + $0x98] sm:$0xff]  ;;  %v506_v63 = vunpack.c.h.s8.bf16 %v362_v53  ;;  %v508_v1 = vunpack.c.h.s8.bf16 %v364_v54 }
  0x4a   : > { %1322 = vmatprep.subr.bf16.mxu1 %v5142_v0  ;;  %1611 = vmatprep.subr.bf16.mxu0 %v5142_v0  ;;  %v371_v61 = vld [vmem:[%s5292_s11 + $0x88] sm:$0xff]  ;;  %v4991_v3 = vld [vmem:[%s6219_s1 + $0x130] sm:$0xff]   ;;  %v370_v5 = vld [vmem:[%s5292_s11 + $0x80] sm:$0xff] }
  0x4b   : > { %v372_v7 = vld [vmem:[%s5292_s11 + $0x90] sm:$0xff]  ;;  %v4996_v22 = vld [vmem:[%s6219_s1 + $0x158] sm:$0xff]   ;;  %v5001_v45 = vld [vmem:[%s6219_s1 + $0x180] sm:$0xff]  }
  0x4c   : > { %v4995_v20 = vld [vmem:[%s6219_s1 + $0x150] sm:$0xff]   ;;  %v394_v53 = vld [vmem:[%s5292_s11 + $0x140] sm:$0xff] }
  0x4d   : > { %1323 = vmatpush1.bf16.msra.mxu1 %v4961_v9  ;;  %1612 = vmatpush1.bf16.msra.mxu0 %v5351_v10  ;;  %v516_v9 = vunpack.c.l.s8.bf16 %v372_v7  ;;  %v366_v54 = vld [vmem:[%s5292_s11 + $0x60] sm:$0xff] }
  0x4e   : > { %1324 = vmatprep.subr.bf16.mxu1 %v5142_v0  ;;  %1613 = vmatprep.subr.bf16.mxu0 %v5142_v0 }
  0x51   : > { %1325 = vmatpush1.bf16.msra.mxu1 %v4963_v11  ;;  %1614 = vmatpush1.bf16.msra.mxu0 %v5362_v12  ;;  %v4993_v11 = vld [vmem:[%s6219_s1 + $0x140] sm:$0xff]  }
  0x52   : > { %1326 = vmatprep.subr.bf16.mxu1 %v5142_v0  ;;  %1615 = vmatprep.subr.bf16.mxu0 %v5142_v0 }
  0x55   : > { %1327 = vmatpush1.bf16.msra.mxu1 %v4965_v13  ;;  %1616 = vmatpush1.bf16.msra.mxu0 %v5373_v14  ;;  %v4994_v13 = vld [vmem:[%s6219_s1 + $0x148] sm:$0xff]  }
  0x56   : > { %1328 = vmatprep.subr.bf16.mxu1 %v5142_v0  ;;  %1617 = vmatprep.subr.bf16.mxu0 %v5142_v0 }
  0x59   : > { %1329 = vmatpush1.bf16.msra.mxu1 %v4967_v15  ;;  %1618 = vmatpush1.bf16.msra.mxu0 %v5384_v16  ;;  %v381_v15 = vld [vmem:[%s5292_s11 + $0xd8] sm:$0xff] }
  0x5a   : > { %1330 = vmatprep.subr.bf16.mxu1 %v5142_v0  ;;  %1619 = vmatprep.subr.bf16.mxu0 %v5142_v0  ;;  %v533_v21 = vunpack.c.l.s8.bf16 %v381_v15 }
  0x5d   : > { %1331 = vmatpush1.bf16.msra.mxu1 %v4969_v17  ;;  %1620 = vmatpush1.bf16.msra.mxu0 %v5395_v18  ;;  %v522_v17 = vunpack.c.h.s8.bf16 %v370_v5 }
  0x5e   : > { %1332 = vmatprep.subr.bf16.mxu1 %v5142_v0  ;;  %1621 = vmatprep.subr.bf16.mxu0 %v5142_v0 }
  0x61   : > { %1333 = vmatpush1.bf16.msra.mxu1 %v4971_v23  ;;  %1622 = vmatpush1.bf16.msra.mxu0 %v5414_v24  ;;  %v380_v23 = vld [vmem:[%s5292_s11 + $0xd0] sm:$0xff] }
  0x62   : > { %1334 = vmatprep.subr.bf16.mxu1 %v5142_v0  ;;  %1623 = vmatprep.subr.bf16.mxu0 %v5142_v0 }
  0x65   : > { %1335 = vmatpush1.bf16.msra.mxu1 %v4973_v25  ;;  %1624 = vmatpush1.bf16.msra.mxu0 %v5425_v26 }
  0x66   : > { %1336 = vmatprep.subr.bf16.mxu1 %v5142_v0  ;;  %1625 = vmatprep.subr.bf16.mxu0 %v5142_v0 }
  0x69   : > { %1337 = vmatpush1.bf16.msra.mxu1 %v4975_v27  ;;  %1626 = vmatpush1.bf16.msra.mxu0 %v5436_v28 }
  0x6a   : > { %1338 = vmatprep.subr.bf16.mxu1 %v5142_v0  ;;  %1627 = vmatprep.subr.bf16.mxu0 %v5142_v0 }
  0x6d   : > { %1339 = vmatpush1.bf16.msra.mxu1 %v4977_v29  ;;  %1628 = vmatpush1.bf16.msra.mxu0 %v5447_v30  ;;  %v4997_v29 = vld [vmem:[%s6219_s1 + $0x160] sm:$0xff]  }
  0x6e   : > { %1340 = vmatprep.subr.bf16.mxu1 %v5142_v0  ;;  %1629 = vmatprep.subr.bf16.mxu0 %v5142_v0 }
  0x71   : > { %1341 = vmatpush1.bf16.msra.mxu1 %v4979_v31  ;;  %1630 = vmatpush1.bf16.msra.mxu0 %v5458_v32  ;;  %v541_v31 = vunpack.c.h.s8.bf16 %v381_v15  ;;  %v5010_v15 = vld [vmem:[%s6219_s1 + $0x1c8] sm:$0xff]  }
  0x72   : > { %1342 = vmatprep.subr.bf16.mxu1 %v5142_v0  ;;  %1631 = vmatprep.subr.bf16.mxu0 %v5142_v0 }
  0x75   : > { %1343 = vmatpush1.bf16.msra.mxu1 %v4981_v33  ;;  %1632 = vmatpush1.bf16.msra.mxu0 %v5469_v34  ;;  %v387_v33 = vld [vmem:[%s5292_s11 + $0x108] sm:$0xff] }
  0x76   : > { %1344 = vmatprep.subr.bf16.mxu1 %v5142_v0  ;;  %1633 = vmatprep.subr.bf16.mxu0 %v5142_v0  ;;  %v547_v38 = vunpack.c.l.s8.bf16 %v387_v33 }
  0x79   : > { %1345 = vmatpush1.bf16.msra.mxu1 %v4983_v35  ;;  %1634 = vmatpush1.bf16.msra.mxu0 %v5478_v36  ;;  %v359_v35 = vld [vmem:[%s5292_s11 + $0x28] sm:$0xff] }
  0x7a   : > { %4532 = vmatprep.subr.bf16.mxu1 %v5142_v0  ;;  %1892 = vmatprep.subr.bf16.mxu0 %v5142_v0  ;;  %v495_v46 = vunpack.c.h.s8.bf16 %v359_v35 }
  0x7c   : > { %1347 = vmatmul.mubr.bf16.vlgmr.msra.gmra.mrb[0].mxu1 %v482_v39  ;;  %1636 = vmatmul.mubr.bf16.vlgmr.msra.gmra.mrb[0].mxu0 %v484_v41  ;;  %v4999_v39 = vld [vmem:[%s6219_s1 + $0x170] sm:$0xff]   ;;  %v5000_v41 = vld [vmem:[%s6219_s1 + $0x178] sm:$0xff]  }
  0x7d   : > { %1354 = vmatprep.mubr.bf16.mxu1 %v491_v40  ;;  %1893 = vmatpush1.bf16.msra.mxu0 %v4985_v43  ;;  %v487_v40 = vunpack.c.l.s8.bf16 %v359_v35 }
  0x7e   : > { %1643 = vmatprep.mubr.bf16.mxu0 %v493_v42  ;;  %1894 = vmatprep.subr.bf16.mxu0 %v5142_v0  ;;  %v358_v42 = vld [vmem:[%s5292_s11 + $0x20] sm:$0xff] }
  0x7f   : > { %4548 = vmatpush1.bf16.msra.mxu1 %v5308_v2  ;;  %v515_v2 = vunpack.c.l.s8.bf16 %v371_v61 }
  0x80   : > { %4533 = vmatprep.subr.bf16.mxu1 %v5142_v0 }
  0x81   : > { %1895 = vmatpush1.bf16.msra.mxu0 %v4986_v44  ;;  %v555_v44 = vunpack.c.h.s8.bf16 %v387_v33  ;;  %v391_v33 = vld [vmem:[%s5292_s11 + $0x128] sm:$0xff] }
  0x82   : > { %1896 = vmatprep.subr.bf16.mxu0 %v5142_v0 }
  0x83   : > { %4549 = vmatpush1.bf16.msra.mxu1 %v5318_v4  ;;  %v517_v4 = vunpack.c.l.s8.bf16 %v373_v62 }
  0x84   : > { %1355 = vmatmul.mubr.bf16.gmra.mrb[4].mxu1 %v490_v47  ;;  %4534 = vmatprep.subr.bf16.mxu1 %v5142_v0  ;;  %v5002_v47 = vld [vmem:[%s6219_s1 + $0x188] sm:$0xff]  }
  0x85   : > { %1644 = vmatmul.mubr.bf16.gmra.mrb[4].mxu0 %v492_v49  ;;  %1362 = vmatprep.mubr.bf16.mxu1 %v499_v50  ;;  %v494_v50 = vunpack.c.h.s8.bf16 %v358_v42 }
  0x86   : > { %1897 = vmatpush1.bf16.msra.mxu0 %v4987_v48  ;;  %1651 = vmatprep.mubr.bf16.mxu0 %v501_v51  ;;  %v367_v48 = vld [vmem:[%s5292_s11 + $0x68] sm:$0xff] }
  0x87   : > { %1898 = vmatprep.subr.bf16.mxu0 %v5142_v0  ;;  %4550 = vmatpush1.bf16.msra.mxu1 %v5329_v6  ;;  %v4992_v6 = vld [vmem:[%s6219_s1 + $0x138] sm:$0xff]  }
  0x88   : > { %4535 = vmatprep.subr.bf16.mxu1 %v5142_v0 }
  0x8a   : > { %1899 = vmatpush1.bf16.msra.mxu0 %v4988_v52  ;;  %v503_v52 = vunpack.c.l.s8.bf16 %v367_v48 }
  0x8b   : > { %1900 = vmatprep.subr.bf16.mxu0 %v5142_v0  ;;  %4551 = vmatpush1.bf16.msra.mxu1 %v5340_v8  ;;  %v514_v8 = vunpack.c.l.s8.bf16 %v370_v5  ;;  %v5007_v5 = vld [vmem:[%s6219_s1 + $0x1b0] sm:$0xff]  }
  0x8c   : > { %1363 = vmatmul.mubr.bf16.gmra.mrb[8].mxu1 %v498_v55  ;;  %4536 = vmatprep.subr.bf16.mxu1 %v5142_v0  ;;  %v5004_v55 = vld [vmem:[%s6219_s1 + $0x198] sm:$0xff]  }
  0x8d   : > { %1652 = vmatmul.mubr.bf16.gmra.mrb[8].mxu0 %v500_v56  ;;  %1370 = vmatprep.mubr.bf16.mxu1 %v507_v57  ;;  %v562_v56 = vunpack.c.l.s8.bf16 %v394_v53  ;;  %v502_v57 = vunpack.c.l.s8.bf16 %v366_v54 }
  0x8e   : > { %1901 = vmatpush1.bf16.msra.mxu0 %v4989_v58  ;;  %1659 = vmatprep.mubr.bf16.mxu0 %v509_v59  ;;  %v511_v59 = vunpack.c.h.s8.bf16 %v367_v48 }
  0x8f   : > { %1902 = vmatprep.subr.bf16.mxu0 %v5142_v0  ;;  %4552 = vmatpush1.bf16.msra.mxu1 %v5351_v10  ;;  %v523_v10 = vunpack.c.h.s8.bf16 %v371_v61  ;;  %v403_v61 = vld [vmem:[%s5292_s11 + $0x188] sm:$0xff] }
  0x90   : > { %4537 = vmatprep.subr.bf16.mxu1 %v5142_v0 }
  0x92   : > { %1903 = vmatpush1.bf16.msra.mxu0 %v4990_v60  ;;  %v5005_v60 = vld [vmem:[%s6219_s1 + $0x1a0] sm:$0xff]  }
  0x93   : > { %1904 = vmatprep.subr.bf16.mxu0 %v5142_v0  ;;  %4553 = vmatpush1.bf16.msra.mxu1 %v5362_v12  ;;  %v525_v12 = vunpack.c.h.s8.bf16 %v373_v62  ;;  %v5006_v62 = vld [vmem:[%s6219_s1 + $0x1a8] sm:$0xff]  }
  0x94   : > { %1371 = vmatmul.mubr.bf16.gmra.mrb[12].mxu1 %v506_v63  ;;  %4538 = vmatprep.subr.bf16.mxu1 %v5142_v0  ;;  %v375_v63 = vld [vmem:[%s5292_s11 + $0xa8] sm:$0xff] }
  0x95   : > { %1660 = vmatmul.mubr.bf16.gmra.mrb[12].mxu0 %v508_v1  ;;  %1378 = vmatprep.mubr.bf16.mxu1 %v515_v2  ;;  %v570_v1 = vunpack.c.h.s8.bf16 %v394_v53  ;;  %v510_v2 = vunpack.c.h.s8.bf16 %v366_v54  ;;  %v5014_v54 = vld [vmem:[%s6219_s1 + $0x1e8] sm:$0xff]  }
  0x96   : > { %1905 = vmatpush1.bf16.msra.mxu0 %v4991_v3  ;;  %1667 = vmatprep.mubr.bf16.mxu0 %v517_v4  ;;  %v579_v3 = vunpack.c.l.s8.bf16 %v403_v61  ;;  %v519_v4 = vunpack.c.l.s8.bf16 %v375_v63 }
  0x97   : > { %1906 = vmatprep.subr.bf16.mxu0 %v5142_v0  ;;  %4554 = vmatpush1.bf16.msra.mxu1 %v5373_v14  ;;  %v379_v14 = vld [vmem:[%s5292_s11 + $0xc8] sm:$0xff] }
  0x98   : > { %4539 = vmatprep.subr.bf16.mxu1 %v5142_v0  ;;  %v531_v19 = vunpack.c.l.s8.bf16 %v379_v14  ;;  %v539_v27 = vunpack.c.h.s8.bf16 %v379_v14  ;;  %v411_v14 = vld [vmem:[%s5292_s11 + $0x1c8] sm:$0xff] }
  0x9a   : > { %1907 = vmatpush1.bf16.msra.mxu0 %v4992_v6  ;;  %v402_v6 = vld [vmem:[%s5292_s11 + $0x180] sm:$0xff] }
  0x9b   : > { %1908 = vmatprep.subr.bf16.mxu0 %v5142_v0  ;;  %4555 = vmatpush1.bf16.msra.mxu1 %v5384_v16  ;;  %v524_v16 = vunpack.c.h.s8.bf16 %v372_v7  ;;  %v374_v7 = vld [vmem:[%s5292_s11 + $0xa0] sm:$0xff] }
  0x9c   : > { %1379 = vmatmul.mubr.bf16.gmra.mrb[16].mxu1 %v514_v8  ;;  %4540 = vmatprep.subr.bf16.mxu1 %v5142_v0  ;;  %v5008_v8 = vld [vmem:[%s6219_s1 + $0x1b8] sm:$0xff]  }
  0x9d   : > { %1668 = vmatmul.mubr.bf16.gmra.mrb[16].mxu0 %v516_v9  ;;  %1386 = vmatprep.mubr.bf16.mxu1 %v523_v10  ;;  %v578_v9 = vunpack.c.l.s8.bf16 %v402_v6  ;;  %v518_v10 = vunpack.c.l.s8.bf16 %v374_v7 }
  0x9e   : > { %1909 = vmatpush1.bf16.msra.mxu0 %v4993_v11  ;;  %1675 = vmatprep.mubr.bf16.mxu0 %v525_v12  ;;  %v587_v11 = vunpack.c.h.s8.bf16 %v403_v61  ;;  %v527_v12 = vunpack.c.h.s8.bf16 %v375_v63  ;;  %v434_v61 = vld [vmem:[%s5292_s11 + $0x280] sm:$0xff] }
  0x9f   : > { %1910 = vmatprep.subr.bf16.mxu0 %v5142_v0  ;;  %4556 = vmatpush1.bf16.msra.mxu1 %v5395_v18  ;;  %v378_v18 = vld [vmem:[%s5292_s11 + $0xc0] sm:$0xff]  ;;  %v642_v63 = vunpack.c.l.s8.bf16 %v434_v61 }
  0xa0   : > { %4541 = vmatprep.subr.bf16.mxu1 %v5142_v0  ;;  %v530_v25 = vunpack.c.l.s8.bf16 %v378_v18  ;;  %v538_v37 = vunpack.c.h.s8.bf16 %v378_v18  ;;  %v5011_v18 = vld [vmem:[%s6219_s1 + $0x1d0] sm:$0xff]  }
  0xa2   : > { %1911 = vmatpush1.bf16.msra.mxu0 %v4994_v13  ;;  %v5009_v13 = vld [vmem:[%s6219_s1 + $0x1c0] sm:$0xff]  }
  0xa3   : > { %1912 = vmatprep.subr.bf16.mxu0 %v5142_v0  ;;  %4557 = vmatpush1.bf16.msra.mxu1 %v5414_v24  ;;  %v532_v24 = vunpack.c.l.s8.bf16 %v380_v23 }
  0xa4   : > { %1387 = vmatmul.mubr.bf16.gmra.mrb[20].mxu1 %v522_v17  ;;  %4542 = vmatprep.subr.bf16.mxu1 %v5142_v0  ;;  %v383_v17 = vld [vmem:[%s5292_s11 + $0xe8] sm:$0xff] }
  0xa5   : > { %1676 = vmatmul.mubr.bf16.gmra.mrb[20].mxu0 %v524_v16  ;;  %1394 = vmatprep.mubr.bf16.mxu1 %v531_v19  ;;  %v586_v16 = vunpack.c.h.s8.bf16 %v402_v6  ;;  %v526_v19 = vunpack.c.h.s8.bf16 %v374_v7  ;;  %v415_v6 = vld [vmem:[%s5292_s11 + $0x1e8] sm:$0xff]  ;;  %v650_v7 = vunpack.c.h.s8.bf16 %v434_v61 }
  0xa6   : > { %1913 = vmatpush1.bf16.msra.mxu0 %v4995_v20  ;;  %1683 = vmatprep.mubr.bf16.mxu0 %v533_v21  ;;  %v595_v20 = vunpack.c.l.s8.bf16 %v411_v14  ;;  %v535_v21 = vunpack.c.l.s8.bf16 %v383_v17  ;;  %v475_v61 = vld [vmem:[%s5292_s11 + $0x3c8] sm:$0xff] }
  0xa7   : > { %1914 = vmatprep.subr.bf16.mxu0 %v5142_v0  ;;  %4558 = vmatpush1.bf16.msra.mxu1 %v5425_v26  ;;  %v4998_v26 = vld [vmem:[%s6219_s1 + $0x168] sm:$0xff]  }
  0xa8   : > { %4543 = vmatprep.subr.bf16.mxu1 %v5142_v0 }
  0xaa   : > { %1915 = vmatpush1.bf16.msra.mxu0 %v4996_v22  ;;  %v410_v22 = vld [vmem:[%s5292_s11 + $0x1c0] sm:$0xff] }
  0xab   : > { %1916 = vmatprep.subr.bf16.mxu0 %v5142_v0  ;;  %4559 = vmatpush1.bf16.msra.mxu1 %v5436_v28  ;;  %v540_v28 = vunpack.c.h.s8.bf16 %v380_v23  ;;  %v382_v23 = vld [vmem:[%s5292_s11 + $0xe0] sm:$0xff]  ;;  %v602_v35 = vunpack.c.h.s8.bf16 %v410_v22 }
  0xac   : > { %1395 = vmatmul.mubr.bf16.gmra.mrb[24].mxu1 %v530_v25  ;;  %4544 = vmatprep.subr.bf16.mxu1 %v5142_v0  ;;  %v594_v25 = vunpack.c.l.s8.bf16 %v410_v22 }
  0xad   : > { %1684 = vmatmul.mubr.bf16.gmra.mrb[24].mxu0 %v532_v24  ;;  %1402 = vmatprep.mubr.bf16.mxu1 %v539_v27  ;;  %v534_v24 = vunpack.c.l.s8.bf16 %v382_v23  ;;  %v603_v27 = vunpack.c.h.s8.bf16 %v411_v14 }
  0xae   : > { %1917 = vmatpush1.bf16.msra.mxu0 %v4997_v29  ;;  %1691 = vmatprep.mubr.bf16.mxu0 %v541_v31  ;;  %v543_v29 = vunpack.c.h.s8.bf16 %v383_v17  ;;  %v5012_v31 = vld [vmem:[%s6219_s1 + $0x1d8] sm:$0xff]   ;;  %v607_v17 = vunpack.c.h.s8.bf16 %v415_v6 }
  0xaf   : > { %1918 = vmatprep.subr.bf16.mxu0 %v5142_v0  ;;  %4560 = vmatpush1.bf16.msra.mxu1 %v5447_v30  ;;  %v386_v30 = vld [vmem:[%s5292_s11 + $0x100] sm:$0xff] }
  0xb0   : > { %4545 = vmatprep.subr.bf16.mxu1 %v5142_v0  ;;  %v546_v43 = vunpack.c.l.s8.bf16 %v386_v30  ;;  %v554_v49 = vunpack.c.h.s8.bf16 %v386_v30 }
  0xb2   : > { %1919 = vmatpush1.bf16.msra.mxu0 %v4998_v26  ;;  %v419_v26 = vld [vmem:[%s5292_s11 + $0x208] sm:$0xff] }
  0xb3   : > { %1920 = vmatprep.subr.bf16.mxu0 %v5142_v0  ;;  %4561 = vmatpush1.bf16.msra.mxu1 %v5458_v32  ;;  %v486_v32 = vunpack.c.l.s8.bf16 %v358_v42  ;;  %v619_v42 = vunpack.c.h.s8.bf16 %v419_v26 }
  0xb4   : > { %1403 = vmatmul.mubr.bf16.gmra.mrb[28].mxu1 %v538_v37  ;;  %4546 = vmatprep.subr.bf16.mxu1 %v5142_v0  ;;  %v542_v37 = vunpack.c.h.s8.bf16 %v382_v23  ;;  %v450_v23 = vld [vmem:[%s5292_s11 + $0x300] sm:$0xff] }
  0xb5   : > { %1692 = vmatmul.mubr.bf16.gmra.mrb[28].mxu0 %v540_v28  ;;  %1410 = vmatprep.mubr.bf16.mxu1 %v547_v38  ;;  %v611_v28 = vunpack.c.l.s8.bf16 %v419_v26  ;;  %v551_v38 = vunpack.c.l.s8.bf16 %v391_v33  ;;  %v459_v26 = vld [vmem:[%s5292_s11 + $0x348] sm:$0xff] }
  0xb6   : > { %1921 = vmatpush1.bf16.msra.mxu0 %v4999_v39  ;;  %1924 = vmatprep.mubr.bf16.mxu0 %v487_v40  ;;  %v418_v39 = vld [vmem:[%s5292_s11 + $0x200] sm:$0xff] }
  0xb7   : > { %1922 = vmatprep.subr.bf16.mxu0 %v5142_v0  ;;  %4562 = vmatpush1.bf16.msra.mxu1 %v5469_v34  ;;  %v395_v34 = vld [vmem:[%s5292_s11 + $0x148] sm:$0xff]  ;;  %v390_v40 = vld [vmem:[%s5292_s11 + $0x120] sm:$0xff]  ;;  %v610_v30 = vunpack.c.l.s8.bf16 %v418_v39 }
  0xb8   : > { %4547 = vmatprep.subr.bf16.mxu1 %v5142_v0  ;;  %v563_v51 = vunpack.c.l.s8.bf16 %v395_v34  ;;  %v571_v58 = vunpack.c.h.s8.bf16 %v395_v34  ;;  %v558_v34 = vunpack.c.h.s8.bf16 %v390_v40 }
  0xba   : > { %1923 = vmatpush1.bf16.msra.mxu0 %v5000_v41  ;;  %v550_v41 = vunpack.c.l.s8.bf16 %v390_v40  ;;  %v430_v40 = vld [vmem:[%s5292_s11 + $0x260] sm:$0xff] }
  0xbb   : > { %2181 = vmatprep.subr.bf16.mxu0 %v5142_v0  ;;  %4563 = vmatpush1.bf16.msra.mxu1 %v5478_v36  ;;  %v5003_v36 = vld [vmem:[%s6219_s1 + $0x190] sm:$0xff]  }
  0xbc   : > { %1411 = vmatmul.mubr.bf16.gmra.mrb[32].mxu1 %v546_v43  ;;  %v559_v43 = vunpack.c.h.s8.bf16 %v391_v33  ;;  %v431_v33 = vld [vmem:[%s5292_s11 + $0x268] sm:$0xff] }
  0xbd   : > { %1925 = vmatmul.mubr.bf16.vlgmr.msra.gmra.mrb[0].mxu0 %v486_v32  ;;  %1418 = vmatprep.mubr.bf16.mxu1 %v555_v44  ;;  %v5013_v32 = vld [vmem:[%s6219_s1 + $0x1e0] sm:$0xff]   ;;  %v427_v44 = vld [vmem:[%s5292_s11 + $0x248] sm:$0xff] }
  0xbe   : > { %2182 = vmatpush1.bf16.msra.mxu0 %v5001_v45  ;;  %1932 = vmatprep.mubr.bf16.mxu0 %v495_v46  ;;  %v399_v45 = vld [vmem:[%s5292_s11 + $0x168] sm:$0xff]  ;;  %v618_v46 = vunpack.c.h.s8.bf16 %v418_v39  ;;  %v458_v39 = vld [vmem:[%s5292_s11 + $0x340] sm:$0xff] }
  0xbf   : > { %2183 = vmatprep.subr.bf16.mxu0 %v5142_v0  ;;  %v567_v48 = vunpack.c.l.s8.bf16 %v399_v45  ;;  %v575_v53 = vunpack.c.h.s8.bf16 %v399_v45 }
  0xc2   : > { %2184 = vmatpush1.bf16.msra.mxu0 %v5002_v47  ;;  %v627_v47 = vunpack.c.l.s8.bf16 %v427_v44 }
  0xc3   : > { %2185 = vmatprep.subr.bf16.mxu0 %v5142_v0 }
  0xc4   : > { %1419 = vmatmul.mubr.bf16.gmra.mrb[36].mxu1 %v554_v49  ;;  %v426_v49 = vld [vmem:[%s5292_s11 + $0x240] sm:$0xff] }
  0xc5   : > { %1933 = vmatmul.mubr.bf16.gmra.mrb[4].mxu0 %v494_v50  ;;  %1426 = vmatprep.mubr.bf16.mxu1 %v563_v51  ;;  %v398_v50 = vld [vmem:[%s5292_s11 + $0x160] sm:$0xff]  ;;  %v626_v51 = vunpack.c.l.s8.bf16 %v426_v49 }
  0xc6   : > { %1940 = vmatprep.mubr.bf16.mxu0 %v503_v52  ;;  %2186 = vmatpush1.bf16.msra.mxu0 %v5003_v36  ;;  %v566_v52 = vunpack.c.l.s8.bf16 %v398_v50  ;;  %v635_v36 = vunpack.c.h.s8.bf16 %v427_v44  ;;  %v439_v44 = vld [vmem:[%s5292_s11 + $0x2a8] sm:$0xff] }
  0xc7   : > { %2187 = vmatprep.subr.bf16.mxu0 %v5142_v0 }
  0xca   : > { %2188 = vmatpush1.bf16.msra.mxu0 %v5004_v55  ;;  %v435_v55 = vld [vmem:[%s5292_s11 + $0x288] sm:$0xff] }
  0xcb   : > { %2189 = vmatprep.subr.bf16.mxu0 %v5142_v0 }
  0xcc   : > { %1427 = vmatmul.mubr.bf16.gmra.mrb[40].mxu1 %v562_v56  ;;  %v407_v56 = vld [vmem:[%s5292_s11 + $0x1a8] sm:$0xff] }
  0xcd   : > { %1941 = vmatmul.mubr.bf16.gmra.mrb[8].mxu0 %v502_v57  ;;  %1434 = vmatprep.mubr.bf16.mxu1 %v571_v58  ;;  %v634_v57 = vunpack.c.h.s8.bf16 %v426_v49  ;;  %v574_v58 = vunpack.c.h.s8.bf16 %v398_v50  ;;  %v647_v50 = vunpack.c.l.s8.bf16 %v439_v44 }
  0xce   : > { %1948 = vmatprep.mubr.bf16.mxu0 %v511_v59  ;;  %2190 = vmatpush1.bf16.msra.mxu0 %v5005_v60  ;;  %v643_v59 = vunpack.c.l.s8.bf16 %v435_v55  ;;  %v583_v60 = vunpack.c.l.s8.bf16 %v407_v56 }
  0xcf   : > { %2191 = vmatprep.subr.bf16.mxu0 %v5142_v0 }
  0xd2   : > { %2192 = vmatpush1.bf16.msra.mxu0 %v5006_v62  ;;  %v406_v62 = vld [vmem:[%s5292_s11 + $0x1a0] sm:$0xff] }
  0xd3   : > { %2193 = vmatprep.subr.bf16.mxu0 %v5142_v0 }
  0xd4   : > { %1435 = vmatmul.mubr.bf16.gmra.mrb[44].mxu1 %v570_v1  ;;  %v582_v1 = vunpack.c.l.s8.bf16 %v406_v62 }
  0xd5   : > { %1949 = vmatmul.mubr.bf16.gmra.mrb[12].mxu0 %v510_v2  ;;  %1442 = vmatprep.mubr.bf16.mxu1 %v579_v3  ;;  %v651_v2 = vunpack.c.h.s8.bf16 %v435_v55  ;;  %v591_v3 = vunpack.c.h.s8.bf16 %v407_v56 }
  0xd6   : > { %1956 = vmatprep.mubr.bf16.mxu0 %v519_v4  ;;  %2194 = vmatpush1.bf16.msra.mxu0 %v5007_v5  ;;  %v5015_v4 = vld [vmem:[%s6219_s1 + $0x1f0] sm:$0xff]   ;;  %v443_v5 = vld [vmem:[%s5292_s11 + $0x2c8] sm:$0xff] }
  0xd7   : > { %2195 = vmatprep.subr.bf16.mxu0 %v5142_v0 }
  0xda   : > { %2196 = vmatpush1.bf16.msra.mxu0 %v5008_v8  ;;  %v590_v8 = vunpack.c.h.s8.bf16 %v406_v62  ;;  %v447_v62 = vld [vmem:[%s5292_s11 + $0x2e8] sm:$0xff] }
  0xdb   : > { %2197 = vmatprep.subr.bf16.mxu0 %v5142_v0 }
  0xdc   : > { %1443 = vmatmul.mubr.bf16.gmra.mrb[48].mxu1 %v578_v9  ;;  %v659_v9 = vunpack.c.l.s8.bf16 %v443_v5 }
  0xdd   : > { %1957 = vmatmul.mubr.bf16.gmra.mrb[16].mxu0 %v518_v10  ;;  %1450 = vmatprep.mubr.bf16.mxu1 %v587_v11  ;;  %v599_v10 = vunpack.c.l.s8.bf16 %v415_v6  ;;  %v442_v11 = vld [vmem:[%s5292_s11 + $0x2c0] sm:$0xff]  ;;  %v663_v6 = vunpack.c.l.s8.bf16 %v447_v62 }
  0xde   : > { %1964 = vmatprep.mubr.bf16.mxu0 %v527_v12  ;;  %2198 = vmatpush1.bf16.msra.mxu0 %v5009_v13  ;;  %v414_v12 = vld [vmem:[%s5292_s11 + $0x1e0] sm:$0xff]  ;;  %v658_v13 = vunpack.c.l.s8.bf16 %v442_v11 }
  0xdf   : > { %2199 = vmatprep.subr.bf16.mxu0 %v5142_v0  ;;  %v598_v14 = vunpack.c.l.s8.bf16 %v414_v12 }
  0xe2   : > { %2200 = vmatpush1.bf16.msra.mxu0 %v5010_v15  ;;  %v667_v15 = vunpack.c.h.s8.bf16 %v443_v5 }
  0xe3   : > { %2201 = vmatprep.subr.bf16.mxu0 %v5142_v0 }
  0xe4   : > { %1451 = vmatmul.mubr.bf16.gmra.mrb[52].mxu1 %v586_v16  ;;  %v451_v16 = vld [vmem:[%s5292_s11 + $0x308] sm:$0xff] }
  0xe5   : > { %1965 = vmatmul.mubr.bf16.gmra.mrb[20].mxu0 %v526_v19  ;;  %1458 = vmatprep.mubr.bf16.mxu1 %v595_v20  ;;  %v423_v19 = vld [vmem:[%s5292_s11 + $0x228] sm:$0xff]  ;;  %v666_v20 = vunpack.c.h.s8.bf16 %v442_v11 }
  0xe6   : > { %1972 = vmatprep.mubr.bf16.mxu0 %v535_v21  ;;  %2202 = vmatpush1.bf16.msra.mxu0 %v5011_v18  ;;  %v606_v21 = vunpack.c.h.s8.bf16 %v414_v12  ;;  %v675_v18 = vunpack.c.l.s8.bf16 %v451_v16  ;;  %v615_v22 = vunpack.c.l.s8.bf16 %v423_v19 }
  0xe7   : > { %2203 = vmatprep.subr.bf16.mxu0 %v5142_v0 }
  0xea   : > { %2204 = vmatpush1.bf16.msra.mxu0 %v5012_v31  ;;  %v623_v31 = vunpack.c.h.s8.bf16 %v423_v19  ;;  %v455_v19 = vld [vmem:[%s5292_s11 + $0x328] sm:$0xff] }
  0xeb   : > { %2205 = vmatprep.subr.bf16.mxu0 %v5142_v0 }
  0xec   : > { %1459 = vmatmul.mubr.bf16.gmra.mrb[56].mxu1 %v594_v25  ;;  %v422_v25 = vld [vmem:[%s5292_s11 + $0x220] sm:$0xff] }
  0xed   : > { %1973 = vmatmul.mubr.bf16.gmra.mrb[24].mxu0 %v534_v24  ;;  %1466 = vmatprep.mubr.bf16.mxu1 %v603_v27  ;;  %v674_v24 = vunpack.c.l.s8.bf16 %v450_v23  ;;  %v614_v27 = vunpack.c.l.s8.bf16 %v422_v25 }
  0xee   : > { %1980 = vmatprep.mubr.bf16.mxu0 %v543_v29  ;;  %2206 = vmatpush1.bf16.msra.mxu0 %v5013_v32  ;;  %v683_v29 = vunpack.c.h.s8.bf16 %v451_v16  ;;  %v467_v32 = vld [vmem:[%s5292_s11 + $0x388] sm:$0xff]  ;;  %v389_v16 = vld [vmem:[%s5292_s11 + $0x118] sm:$0xff] }
  0xef   : > { %2207 = vmatprep.subr.bf16.mxu0 %v5142_v0 }
  0xf2   : > { %2208 = vmatpush1.bf16.msra.mxu0 %v5014_v54 }
  0xf3   : > { %2209 = vmatprep.subr.bf16.mxu0 %v5142_v0 }
  0xf4   : > { %1467 = vmatmul.mubr.bf16.gmra.mrb[60].mxu1 %v602_v35  ;;  %v682_v35 = vunpack.c.h.s8.bf16 %v450_v23  ;;  %v549_v23 = vunpack.c.l.s8.bf16 %v389_v16 }
  0xf5   : > { %1981 = vmatmul.mubr.bf16.gmra.mrb[28].mxu0 %v542_v37  ;;  %1474 = vmatprep.mubr.bf16.mxu1 %v611_v28  ;;  %v622_v37 = vunpack.c.h.s8.bf16 %v422_v25  ;;  %v691_v28 = vunpack.c.l.s8.bf16 %v459_v26 }
  0xf6   : > { %1988 = vmatprep.mubr.bf16.mxu0 %v551_v38  ;;  %2210 = vmatpush1.bf16.msra.mxu0 %v5015_v4  ;;  %v631_v38 = vunpack.c.l.s8.bf16 %v431_v33  ;;  %v723_v4 = vunpack.c.l.s8.bf16 %v475_v61 }
  0xf7   : > { %2211 = vmatprep.subr.bf16.mxu0 %v5142_v0  ;;  %v5016_v0 = vld [vmem:[%s6219_s1 + $0x1f8] sm:$0xff]  }
  0xfa   : > { %2212 = vmatpush1.bf16.msra.mxu0 %v5016_v0 }
  0xfc   : > { %1475 = vmatmul.mubr.bf16.gmra.mrb[64].mxu1 %v610_v30  ;;  %v690_v30 = vunpack.c.l.s8.bf16 %v458_v39 }
  0xfd   : > { %1989 = vmatmul.mubr.bf16.gmra.mrb[32].mxu0 %v550_v41  ;;  %1482 = vmatprep.mubr.bf16.mxu1 %v619_v42  ;;  %v630_v41 = vunpack.c.l.s8.bf16 %v430_v40  ;;  %v699_v42 = vunpack.c.h.s8.bf16 %v459_v26 }
  0xfe   : > { %1996 = vmatprep.mubr.bf16.mxu0 %v559_v43  ;;  %v639_v43 = vunpack.c.h.s8.bf16 %v431_v33 }
 0x104   : > { %1483 = vmatmul.mubr.bf16.gmra.mrb[68].mxu1 %v618_v46  ;;  %v698_v46 = vunpack.c.h.s8.bf16 %v458_v39  ;;  %v687_v39 = vunpack.c.h.s8.bf16 %v455_v19 }
 0x105   : > { %1997 = vmatmul.mubr.bf16.gmra.mrb[36].mxu0 %v558_v34  ;;  %1490 = vmatprep.mubr.bf16.mxu1 %v627_v47  ;;  %v638_v47 = vunpack.c.h.s8.bf16 %v430_v40 }
 0x106   : > { %2004 = vmatprep.mubr.bf16.mxu0 %v567_v48  ;;  %v707_v48 = vunpack.c.l.s8.bf16 %v467_v32 }
 0x10c   : > { %1491 = vmatmul.mubr.bf16.gmra.mrb[72].mxu1 %v626_v51 }
 0x10d   : > { %2005 = vmatmul.mubr.bf16.gmra.mrb[40].mxu0 %v566_v52  ;;  %1498 = vmatprep.mubr.bf16.mxu1 %v635_v36  ;;  %v466_v52 = vld [vmem:[%s5292_s11 + $0x380] sm:$0xff] }
 0x10e   : > { %2012 = vmatprep.mubr.bf16.mxu0 %v575_v53  ;;  %v438_v36 = vld [vmem:[%s5292_s11 + $0x2a0] sm:$0xff]  ;;  %v706_v54 = vunpack.c.l.s8.bf16 %v466_v52 }
 0x10f   : > { %v646_v56 = vunpack.c.l.s8.bf16 %v438_v36 }
 0x114   : > { %1499 = vmatmul.mubr.bf16.gmra.mrb[76].mxu1 %v634_v57  ;;  %v715_v57 = vunpack.c.h.s8.bf16 %v467_v32 }
 0x115   : > { %2013 = vmatmul.mubr.bf16.gmra.mrb[44].mxu0 %v574_v58  ;;  %1506 = vmatprep.mubr.bf16.mxu1 %v643_v59  ;;  %v655_v59 = vunpack.c.h.s8.bf16 %v439_v44 }
 0x116   : > { %2020 = vmatprep.mubr.bf16.mxu0 %v583_v60 }
 0x11c   : > { %1507 = vmatmul.mubr.bf16.gmra.mrb[80].mxu1 %v642_v63 }
 0x11d   : > { %2021 = vmatmul.mubr.bf16.gmra.mrb[48].mxu0 %v582_v1  ;;  %1514 = vmatprep.mubr.bf16.mxu1 %v651_v2  ;;  %v714_v1 = vunpack.c.h.s8.bf16 %v466_v52 }
 0x11e   : > { %2028 = vmatprep.mubr.bf16.mxu0 %v591_v3  ;;  %v654_v3 = vunpack.c.h.s8.bf16 %v438_v36 }
 0x124   : > { %1515 = vmatmul.mubr.bf16.gmra.mrb[84].mxu1 %v650_v7 }
 0x125   : > { %2029 = vmatmul.mubr.bf16.gmra.mrb[52].mxu0 %v590_v8  ;;  %1522 = vmatprep.mubr.bf16.mxu1 %v659_v9  ;;  %v474_v8 = vld [vmem:[%s5292_s11 + $0x3c0] sm:$0xff] }
 0x126   : > { %2036 = vmatprep.mubr.bf16.mxu0 %v599_v10  ;;  %v446_v9 = vld [vmem:[%s5292_s11 + $0x2e0] sm:$0xff]  ;;  %v722_v11 = vunpack.c.l.s8.bf16 %v474_v8 }
 0x12c   : > { %1523 = vmatmul.mubr.bf16.gmra.mrb[88].mxu1 %v658_v13  ;;  %v662_v13 = vunpack.c.l.s8.bf16 %v446_v9 }
 0x12d   : > { %2037 = vmatmul.mubr.bf16.gmra.mrb[56].mxu0 %v598_v14  ;;  %1530 = vmatprep.mubr.bf16.mxu1 %v667_v15  ;;  %v731_v14 = vunpack.c.h.s8.bf16 %v475_v61  ;;  %v405_v61 = vld [vmem:[%s5292_s11 + $0x198] sm:$0xff] }
 0x12e   : > { %2044 = vmatprep.mubr.bf16.mxu0 %v607_v17  ;;  %v671_v17 = vunpack.c.h.s8.bf16 %v447_v62  ;;  %v471_v62 = vld [vmem:[%s5292_s11 + $0x3a8] sm:$0xff] }
 0x134   : > { %1531 = vmatmul.mubr.bf16.gmra.mrb[92].mxu1 %v666_v20 }
 0x135   : > { %2045 = vmatmul.mubr.bf16.gmra.mrb[60].mxu0 %v606_v21  ;;  %1538 = vmatprep.mubr.bf16.mxu1 %v675_v18  ;;  %v730_v21 = vunpack.c.h.s8.bf16 %v474_v8  ;;  %v2667_v8 = vld [vmem:[%s5754_s17 + $0x10] sm:$0xff] }
 0x136   : > { %2052 = vmatprep.mubr.bf16.mxu0 %v615_v22  ;;  %v670_v22 = vunpack.c.h.s8.bf16 %v446_v9  ;;  %v404_v9 = vld [vmem:[%s5292_s11 + $0x190] sm:$0xff]  ;;  %2741 = vperm.xlu1 %4952, %v2667_v8  }
 0x13c   : > { %1539 = vmatmul.mubr.bf16.gmra.mrb[96].mxu1 %v674_v24  ;;  %v679_v24 = vunpack.c.l.s8.bf16 %v455_v19  ;;  %v2670_v19 = vld [vmem:[%s5754_s17 + $0x28] sm:$0xff] }
 0x13d   : > { %2053 = vmatmul.mubr.bf16.gmra.mrb[64].mxu0 %v614_v27  ;;  %1546 = vmatprep.mubr.bf16.mxu1 %v683_v29  ;;  %v388_v29 = vld [vmem:[%s5292_s11 + $0x110] sm:$0xff] }
 0x13e   : > { %2060 = vmatprep.mubr.bf16.mxu0 %v623_v31  ;;  %v454_v31 = vld [vmem:[%s5292_s11 + $0x320] sm:$0xff]  ;;  %v548_v33 = vunpack.c.l.s8.bf16 %v388_v29 }
 0x13f   : > { %v686_v44 = vunpack.c.h.s8.bf16 %v454_v31 }
 0x144   : > { %1547 = vmatmul.mubr.bf16.gmra.mrb[100].mxu1 %v682_v35 }
 0x145   : > { %2061 = vmatmul.mubr.bf16.gmra.mrb[68].mxu0 %v622_v37  ;;  %1554 = vmatprep.mubr.bf16.mxu1 %v691_v28  ;;  %v678_v37 = vunpack.c.l.s8.bf16 %v454_v31  ;;  %v557_v28 = vunpack.c.h.s8.bf16 %v389_v16  ;;  %v719_v16 = vunpack.c.h.s8.bf16 %v471_v62 }
 0x146   : > { %2068 = vmatprep.mubr.bf16.mxu0 %v631_v38 }
 0x14c   : > { %1555 = vmatmul.mubr.bf16.gmra.mrb[104].mxu1 %v690_v30  ;;  %v397_v30 = vld [vmem:[%s5292_s11 + $0x158] sm:$0xff] }
 0x14d   : > { %2069 = vmatmul.mubr.bf16.gmra.mrb[72].mxu0 %v630_v41  ;;  %1562 = vmatprep.mubr.bf16.mxu1 %v699_v42  ;;  %v463_v41 = vld [vmem:[%s5292_s11 + $0x368] sm:$0xff] }
 0x14e   : > { %2076 = vmatprep.mubr.bf16.mxu0 %v639_v43  ;;  %v556_v43 = vunpack.c.h.s8.bf16 %v388_v29 }
 0x14f   : > { %v5702_v45 = vpop.f32.mrb[0].mxu1 }
 0x150   : > { %v1350_v34 = vpop.f32.mrb[1].mxu1 }
 0x151   : > { %v5704_v49 = vpop.f32.mrb[2].mxu1 }
 0x152   : > { %v1353_v51 = vpop.f32.mrb[3].mxu1 }
 0x153   : > { %v462_v51 = vld [vmem:[%s5292_s11 + $0x360] sm:$0xff] }
 0x154   : > { %1563 = vmatmul.mubr.bf16.gmra.mrb[108].mxu1 %v698_v46  ;;  %v565_v46 = vunpack.c.l.s8.bf16 %v397_v30 }
 0x155   : > { %2077 = vmatmul.mubr.bf16.gmra.mrb[76].mxu0 %v638_v47  ;;  %1570 = vmatprep.mubr.bf16.mxu1 %v707_v48  ;;  %v695_v47 = vunpack.c.l.s8.bf16 %v463_v41 }
 0x156   : > { %2084 = vmatprep.mubr.bf16.mxu0 %v647_v50  ;;  %v396_v50 = vld [vmem:[%s5292_s11 + $0x150] sm:$0xff] }
 0x157   : > { %v5708_v53 = vpop.f32.mrb[4].mxu1  ;;  %v564_v36 = vunpack.c.l.s8.bf16 %v396_v50 }
 0x158   : > { %v1358_v55 = vpop.f32.mrb[5].mxu1 }
 0x159   : > { %v5710_v58 = vpop.f32.mrb[6].mxu1  ;;  %v694_v55 = vunpack.c.l.s8.bf16 %v462_v51 }
 0x15a   : > { %v1361_v60 = vpop.f32.mrb[7].mxu1 }
 0x15c   : > { %1571 = vmatmul.mubr.bf16.gmra.mrb[112].mxu1 %v706_v54 }
 0x15d   : > { %2085 = vmatmul.mubr.bf16.gmra.mrb[80].mxu0 %v646_v56  ;;  %1578 = vmatprep.mubr.bf16.mxu1 %v715_v57  ;;  %v573_v56 = vunpack.c.h.s8.bf16 %v397_v30 }
 0x15e   : > { %2092 = vmatprep.mubr.bf16.mxu0 %v655_v59  ;;  %v703_v59 = vunpack.c.h.s8.bf16 %v463_v41  ;;  %v2676_v41 = vld [vmem:[%s5754_s17 + $0x58] sm:$0xff] }
 0x15f   : > { %v5714_v63 = vpop.f32.mrb[8].mxu1 }
 0x160   : > { %v1366_v2 = vpop.f32.mrb[9].mxu1 }
 0x161   : > { %v5716_v5 = vpop.f32.mrb[10].mxu1  ;;  %v2665_v2 = vld [vmem:[%s5754_s17] sm:$0xff] }
 0x162   : > { %v1369_v7 = vpop.f32.mrb[11].mxu1  ;;  %2731 = vperm.xlu0 %4951, %v2665_v2   ;;  %v2685_v2 = vld [vmem:[%s5754_s17 + $0xa0] sm:$0xff] }
 0x163   : > { %v2666_v7 = vld [vmem:[%s5754_s17 + $0x8] sm:$0xff] }
 0x164   : > { %1579 = vmatmul.mubr.bf16.gmra.mrb[116].mxu1 %v714_v1  ;;  %v572_v1 = vunpack.c.h.s8.bf16 %v396_v50  ;;  %v361_v50 = vld [vmem:[%s5292_s11 + $0x38] sm:$0xff] }
 0x165   : > { %2093 = vmatmul.mubr.bf16.gmra.mrb[84].mxu0 %v654_v3  ;;  %1586 = vmatprep.mubr.bf16.mxu1 %v723_v4  ;;  %v702_v3 = vunpack.c.h.s8.bf16 %v462_v51  ;;  %v581_v4 = vunpack.c.l.s8.bf16 %v405_v61  ;;  %v2681_v51 = vld [vmem:[%s5754_s17 + $0x80] sm:$0xff]  ;;  %v497_v8 = vunpack.c.h.s8.bf16 %v361_v50 }
 0x166   : > { %2100 = vmatprep.mubr.bf16.mxu0 %v663_v6  ;;  %v711_v6 = vunpack.c.l.s8.bf16 %v471_v62  ;;  %2736 = vperm.xlu0 %4951, %v2666_v7   ;;  %v2683_v62 = vld [vmem:[%s5754_s17 + $0x90] sm:$0xff] }
 0x167   : > { %v5720_v10 = vpop.f32.mrb[12].mxu1 }
 0x168   : > { %v1374_v12 = vpop.f32.mrb[13].mxu1 }
 0x169   : > { %v5722_v15 = vpop.f32.mrb[14].mxu1  ;;  %v2669_v12 = vld [vmem:[%s5754_s17 + $0x20] sm:$0xff] }
 0x16a   : > { %v1377_v0 = vpop.f32.mrb[15].mxu1  ;;  %2751 = vperm.xlu0 %4951, %v2669_v12   ;;  %v429_v12 = vld [vmem:[%s5292_s11 + $0x258] sm:$0xff] }
 0x16b   : > { %v589_v0 = vunpack.c.h.s8.bf16 %v405_v61  ;;  %v420_v61 = vld [vmem:[%s5292_s11 + $0x210] sm:$0xff] }
 0x16c   : > { %1587 = vmatmul.mubr.bf16.gmra.mrb[120].mxu1 %v722_v11  ;;  %v470_v11 = vld [vmem:[%s5292_s11 + $0x3a0] sm:$0xff] }
 0x16d   : > { %2101 = vmatmul.mubr.bf16.gmra.mrb[88].mxu0 %v662_v13  ;;  %1594 = vmatprep.mubr.bf16.mxu1 %v731_v14  ;;  %v580_v13 = vunpack.c.l.s8.bf16 %v404_v9  ;;  %v2668_v14 = vld [vmem:[%s5754_s17 + $0x18] sm:$0xff]  ;;  %v718_v29 = vunpack.c.h.s8.bf16 %v470_v11 }
 0x16e   : > { %2108 = vmatprep.mubr.bf16.mxu0 %v671_v17  ;;  %v710_v17 = vunpack.c.l.s8.bf16 %v470_v11  ;;  %2746 = vperm.xlu1 %4952, %v2668_v14   ;;  %v2687_v11 = vld [vmem:[%s5754_s17 + $0xb0] sm:$0xff]  ;;  %v2689_v14 = vld [vmem:[%s5754_s17 + $0xc0] sm:$0xff] }
 0x16f   : > { %v5726_v20 = vpop.f32.mrb[16].mxu1 }
 0x170   : > { %v1382_v18 = vpop.f32.mrb[17].mxu1 }
 0x171   : > { %v5728_v25 = vpop.f32.mrb[18].mxu1  ;;  %v413_v18 = vld [vmem:[%s5292_s11 + $0x1d8] sm:$0xff] }
 0x172   : > { %v1385_v27 = vpop.f32.mrb[19].mxu1  ;;  %2756 = vperm.xlu1 %4952, %v2670_v19   ;;  %v597_v31 = vunpack.c.l.s8.bf16 %v413_v18  ;;  %v629_v19 = vunpack.c.l.s8.bf16 %v429_v12 }
 0x173   : > { %v2672_v27 = vld [vmem:[%s5754_s17 + $0x38] sm:$0xff] }
 0x174   : > { %1595 = vmatmul.mubr.bf16.gmra.mrb[124].mxu1 %v730_v21  ;;  %v2671_v21 = vld [vmem:[%s5754_s17 + $0x30] sm:$0xff] }
 0x175   : > { %2109 = vmatmul.mubr.bf16.gmra.mrb[92].mxu0 %v670_v22  ;;  %1699 = vmatprep.mubr.bf16.mxu1 %v549_v23  ;;  %v479_v22 = vld [vmem:[%s5292_s11 + $0x3e8] sm:$0xff]  ;;  %v2673_v23 = vld [vmem:[%s5754_s17 + $0x40] sm:$0xff] }
 0x176   : > { %2116 = vmatprep.mubr.bf16.mxu0 %v679_v24  ;;  %2761 = vperm.xlu0 %4951, %v2671_v21   ;;  %v588_v24 = vunpack.c.h.s8.bf16 %v404_v9  ;;  %v2686_v9 = vld [vmem:[%s5754_s17 + $0xa8] sm:$0xff] }
 0x177   : > { %v5732_v26 = vpop.f32.mrb[20].mxu1  ;;  %2766 = vperm.xlu1 %4952, %v2672_v27   ;;  %v2693_v27 = vld [vmem:[%s5754_s17 + $0xe0] sm:$0xff] }
 0x178   : > { %v1390_v35 = vpop.f32.mrb[21].mxu1 }
 0x179   : > { %v5734_v38 = vpop.f32.mrb[22].mxu1  ;;  %v2674_v35 = vld [vmem:[%s5754_s17 + $0x48] sm:$0xff] }
 0x17a   : > { %v1393_v40 = vpop.f32.mrb[23].mxu1  ;;  %2771 = vperm.xlu0 %4951, %v2673_v23   ;;  %v2691_v23 = vld [vmem:[%s5754_s17 + $0xd0] sm:$0xff] }
 0x17b   : > { %2776 = vperm.xlu1 %4952, %v2674_v35   ;;  %v2677_v40 = vld [vmem:[%s5754_s17 + $0x60] sm:$0xff]  ;;  %v637_v35 = vunpack.c.h.s8.bf16 %v429_v12 }
 0x17c   : > { %1700 = vmatmul.mubr.bf16.vlgmr.msra.gmra.mrb[32].mxu1 %v548_v33  ;;  %v727_v33 = vunpack.c.l.s8.bf16 %v479_v22  ;;  %v2705_v12 = vld [vmem:[%s5754_s17 + $0x140] sm:$0xff] }
 0x17d   : > { %2117 = vmatmul.mubr.bf16.gmra.mrb[96].mxu0 %v678_v37  ;;  %1707 = vmatprep.mubr.bf16.mxu1 %v557_v28  ;;  %v412_v37 = vld [vmem:[%s5292_s11 + $0x1d0] sm:$0xff] }
 0x17e   : > { %2124 = vmatprep.mubr.bf16.mxu0 %v687_v39  ;;  %v2675_v28 = vld [vmem:[%s5754_s17 + $0x50] sm:$0xff]  ;;  %v478_v39 = vld [vmem:[%s5292_s11 + $0x3e0] sm:$0xff]  ;;  %v596_v30 = vunpack.c.l.s8.bf16 %v412_v37 }
 0x17f   : > { %v5738_v42 = vpop.f32.mrb[24].mxu1  ;;  %2781 = vperm.xlu0 %4951, %v2675_v28   ;;  %2786 = vperm.xlu1 %4952, %v2676_v41   ;;  %v2694_v28 = vld [vmem:[%s5754_s17 + $0xe8] sm:$0xff] }
 0x180   : > { %v1398_v32 = vpop.f32.mrb[25].mxu1 }
 0x181   : > { %v5740_v34 = vpop.f32.mrb[26].mxu1  ;;  %v605_v32 = vunpack.c.h.s8.bf16 %v413_v18  ;;  %v2690_v18 = vld [vmem:[%s5754_s17 + $0xc8] sm:$0xff] }
 0x182   : > { %v1401_v48 = vpop.f32.mrb[27].mxu1 }
 0x183   : > { %2791 = vperm.xlu0 %4951, %v2677_v40   ;;  %v421_v48 = vld [vmem:[%s5292_s11 + $0x218] sm:$0xff] }
 0x184   : > { %1708 = vmatmul.mubr.bf16.gmra.mrb[36].mxu1 %v556_v43  ;;  %v726_v43 = vunpack.c.l.s8.bf16 %v478_v39  ;;  %v621_v7 = vunpack.c.h.s8.bf16 %v421_v48  ;;  %v377_v40 = vld [vmem:[%s5292_s11 + $0xb8] sm:$0xff] }
 0x185   : > { %2125 = vmatmul.mubr.bf16.gmra.mrb[100].mxu0 %v686_v44  ;;  %1715 = vmatprep.mubr.bf16.mxu1 %v565_v46  ;;  %v735_v44 = vunpack.c.h.s8.bf16 %v479_v22  ;;  %v2678_v46 = vld [vmem:[%s5754_s17 + $0x68] sm:$0xff]  ;;  %v428_v22 = vld [vmem:[%s5292_s11 + $0x250] sm:$0xff] }
 0x186   : > { %2132 = vmatprep.mubr.bf16.mxu0 %v695_v47  ;;  %v2679_v47 = vld [vmem:[%s5754_s17 + $0x70] sm:$0xff]  ;;  %2796 = vperm.xlu1 %4952, %v2678_v46   ;;  %v636_v41 = vunpack.c.h.s8.bf16 %v428_v22  ;;  %v521_v46 = vunpack.c.l.s8.bf16 %v377_v40 }
 0x187   : > { %v5744_v52 = vpop.f32.mrb[28].mxu1  ;;  %2801 = vperm.xlu0 %4951, %v2679_v47   ;;  %v2697_v47 = vld [vmem:[%s5754_s17 + $0x100] sm:$0xff] }
 0x188   : > { %v1406_v54 = vpop.f32.mrb[29].mxu1 }
 0x189   : > { %v5746_v57 = vpop.f32.mrb[30].mxu1  ;;  %v2680_v54 = vld [vmem:[%s5754_s17 + $0x78] sm:$0xff] }
 0x18a   : > { %v1409_v60 = vpop.f32.mrb[31].mxu1  ;;  %2806 = vperm.xlu1 %4952, %v2680_v54  }
 0x18b   : > { %2811 = vperm.xlu0 %4951, %v2681_v51   ;;  %v2682_v60 = vld [vmem:[%s5754_s17 + $0x88] sm:$0xff]  ;;  %v376_v51 = vld [vmem:[%s5292_s11 + $0xb0] sm:$0xff] }
 0x18c   : > { %1716 = vmatmul.mubr.bf16.gmra.mrb[40].mxu1 %v564_v36  ;;  %v604_v36 = vunpack.c.h.s8.bf16 %v412_v37 }
 0x18d   : > { %2133 = vmatmul.mubr.bf16.gmra.mrb[104].mxu0 %v694_v55  ;;  %1723 = vmatprep.mubr.bf16.mxu1 %v573_v56  ;;  %v734_v55 = vunpack.c.h.s8.bf16 %v478_v39  ;;  %v613_v56 = vunpack.c.l.s8.bf16 %v421_v48  ;;  %v437_v39 = vld [vmem:[%s5292_s11 + $0x298] sm:$0xff]  ;;  %v2698_v48 = vld [vmem:[%s5754_s17 + $0x108] sm:$0xff] }
 0x18e   : > { %2140 = vmatprep.mubr.bf16.mxu0 %v703_v59  ;;  %v489_v59 = vunpack.c.l.s8.bf16 %v361_v50  ;;  %2816 = vperm.xlu1 %4952, %v2682_v60   ;;  %v436_v50 = vld [vmem:[%s5292_s11 + $0x290] sm:$0xff]  ;;  %v653_v60 = vunpack.c.h.s8.bf16 %v437_v39 }
 0x18f   : > { %2821 = vperm.xlu0 %4951, %v2683_v62   ;;  %v644_v54 = vunpack.c.l.s8.bf16 %v436_v50  ;;  %v2701_v62 = vld [vmem:[%s5754_s17 + $0x120] sm:$0xff] }
 0x193   : > { %2831 = vperm.xlu0 %4951, %v2685_v2   ;;  %v445_v2 = vld [vmem:[%s5292_s11 + $0x2d8] sm:$0xff] }
 0x194   : > { %1724 = vmatmul.mubr.bf16.gmra.mrb[44].mxu1 %v572_v1  ;;  %v360_v1 = vld [vmem:[%s5292_s11 + $0x30] sm:$0xff] }
 0x195   : > { %2141 = vmatmul.mubr.bf16.gmra.mrb[108].mxu0 %v702_v3  ;;  %1731 = vmatprep.mubr.bf16.mxu1 %v581_v4  ;;  %v612_v3 = vunpack.c.l.s8.bf16 %v420_v61  ;;  %v2684_v4 = vld [vmem:[%s5754_s17 + $0x98] sm:$0xff] }
 0x196   : > { %2148 = vmatprep.mubr.bf16.mxu0 %v711_v6  ;;  %v488_v6 = vunpack.c.l.s8.bf16 %v360_v1  ;;  %2826 = vperm.xlu1 %4952, %v2684_v4   ;;  %v2703_v4 = vld [vmem:[%s5754_s17 + $0x130] sm:$0xff] }
 0x197   : > { %2841 = vperm.xlu0 %4951, %v2687_v11  }
 0x19a   : > { %2836 = vperm.xlu1 %4952, %v2686_v9   ;;  %v661_v9 = vunpack.c.l.s8.bf16 %v445_v2 }
 0x19b   : > { %2851 = vperm.xlu0 %4951, %v2689_v14   ;;  %v444_v14 = vld [vmem:[%s5292_s11 + $0x2d0] sm:$0xff] }
 0x19c   : > { %1732 = vmatmul.mubr.bf16.gmra.mrb[48].mxu1 %v580_v13  ;;  %v369_v13 = vld [vmem:[%s5292_s11 + $0x78] sm:$0xff] }
 0x19d   : > { %2149 = vmatmul.mubr.bf16.gmra.mrb[112].mxu0 %v710_v17  ;;  %1739 = vmatprep.mubr.bf16.mxu1 %v589_v0  ;;  %v620_v17 = vunpack.c.h.s8.bf16 %v420_v61  ;;  %v2688_v0 = vld [vmem:[%s5754_s17 + $0xb8] sm:$0xff]  ;;  %v505_v21 = vunpack.c.l.s8.bf16 %v369_v13  ;;  %v513_v37 = vunpack.c.h.s8.bf16 %v369_v13  ;;  %v529_v61 = vunpack.c.h.s8.bf16 %v377_v40  ;;  %v2706_v13 = vld [vmem:[%s5754_s17 + $0x148] sm:$0xff] }
 0x19e   : > { %2156 = vmatprep.mubr.bf16.mxu0 %v719_v16  ;;  %v496_v16 = vunpack.c.h.s8.bf16 %v360_v1  ;;  %2846 = vperm.xlu1 %4952, %v2688_v0   ;;  %v2702_v1 = vld [vmem:[%s5754_s17 + $0x128] sm:$0xff]  ;;  %v2707_v0 = vld [vmem:[%s5754_s17 + $0x150] sm:$0xff] }
 0x19f   : > { %2861 = vperm.xlu0 %4951, %v2691_v23   ;;  %v2709_v23 = vld [vmem:[%s5754_s17 + $0x160] sm:$0xff] }
 0x1a2   : > { %2856 = vperm.xlu1 %4952, %v2690_v18   ;;  %v669_v18 = vunpack.c.h.s8.bf16 %v445_v2 }
 0x1a3   : > { %2871 = vperm.xlu0 %4951, %v2693_v27   ;;  %v453_v27 = vld [vmem:[%s5292_s11 + $0x318] sm:$0xff] }
 0x1a4   : > { %1740 = vmatmul.mubr.bf16.gmra.mrb[52].mxu1 %v588_v24  ;;  %v368_v24 = vld [vmem:[%s5292_s11 + $0x70] sm:$0xff] }
 0x1a5   : > { %2157 = vmatmul.mubr.bf16.gmra.mrb[116].mxu0 %v718_v29  ;;  %1747 = vmatprep.mubr.bf16.mxu1 %v597_v31  ;;  %v628_v29 = vunpack.c.l.s8.bf16 %v428_v22  ;;  %v2692_v31 = vld [vmem:[%s5754_s17 + $0xd8] sm:$0xff] }
 0x1a6   : > { %2164 = vmatprep.mubr.bf16.mxu0 %v727_v33  ;;  %v504_v33 = vunpack.c.l.s8.bf16 %v368_v24  ;;  %2866 = vperm.xlu1 %4952, %v2692_v31   ;;  %v2711_v31 = vld [vmem:[%s5754_s17 + $0x170] sm:$0xff] }
 0x1aa   : > { %2876 = vperm.xlu1 %4952, %v2694_v28  }
 0x1ac   : > { %1748 = vmatmul.mubr.bf16.gmra.mrb[56].mxu1 %v596_v30  ;;  %v2695_v30 = vld [vmem:[%s5754_s17 + $0xf0] sm:$0xff] }
 0x1ad   : > { %2165 = vmatmul.mubr.bf16.gmra.mrb[120].mxu0 %v726_v43  ;;  %1755 = vmatprep.mubr.bf16.mxu1 %v605_v32  ;;  %v2696_v43 = vld [vmem:[%s5754_s17 + $0xf8] sm:$0xff]  ;;  %v512_v32 = vunpack.c.h.s8.bf16 %v368_v24  ;;  %v2710_v24 = vld [vmem:[%s5754_s17 + $0x168] sm:$0xff] }
 0x1ae   : > { %2172 = vmatprep.mubr.bf16.mxu0 %v735_v44  ;;  %2881 = vperm.xlu0 %4951, %v2695_v30   ;;  %v645_v44 = vunpack.c.l.s8.bf16 %v437_v39  ;;  %v677_v39 = vunpack.c.l.s8.bf16 %v453_v27  ;;  %v2713_v30 = vld [vmem:[%s5754_s17 + $0x180] sm:$0xff] }
 0x1af   : > { %2886 = vperm.xlu1 %4952, %v2696_v43   ;;  %v452_v43 = vld [vmem:[%s5292_s11 + $0x310] sm:$0xff] }
 0x1b2   : > { %2891 = vperm.xlu0 %4951, %v2697_v47   ;;  %v2716_v47 = vld [vmem:[%s5754_s17 + $0x198] sm:$0xff] }
 0x1b3   : > { %2896 = vperm.xlu1 %4952, %v2698_v48  }
 0x1b4   : > { %1756 = vmatmul.mubr.bf16.gmra.mrb[60].mxu1 %v604_v36  ;;  %v2699_v36 = vld [vmem:[%s5754_s17 + $0x110] sm:$0xff] }
 0x1b5   : > { %2173 = vmatmul.mubr.bf16.gmra.mrb[124].mxu0 %v734_v55  ;;  %1763 = vmatprep.mubr.bf16.mxu1 %v613_v56  ;;  %v5017_v55 = vld [vmem:[%s6221_s3] sm:$0xff]   ;;  %v2700_v56 = vld [vmem:[%s5754_s17 + $0x118] sm:$0xff] }
 0x1b6   : > { %2213 = vmatprep.mubr.bf16.mxu0 %v489_v59  ;;  %2901 = vperm.xlu0 %4951, %v2699_v36   ;;  %v520_v59 = vunpack.c.l.s8.bf16 %v376_v51  ;;  %v2717_v36 = vld [vmem:[%s5754_s17 + $0x1a0] sm:$0xff] }
 0x1b7   : > { %4452 = vmatprep.subr.bf16.mxu1 %v5017_v55  ;;  %2906 = vperm.xlu1 %4952, %v2700_v56   ;;  %v401_v56 = vld [vmem:[%s5292_s11 + $0x178] sm:$0xff] }
 0x1b8   : > { %4453 = vmatpush3.bf16.msra.mxu1 %v5017_v55  ;;  %v461_v55 = vld [vmem:[%s5292_s11 + $0x358] sm:$0xff]  ;;  %v569_v2 = vunpack.c.l.s8.bf16 %v401_v56 }
 0x1ba   : > { %2911 = vperm.xlu0 %4951, %v2701_v62  }
 0x1bb   : > { %2916 = vperm.xlu1 %4952, %v2702_v1   ;;  %v693_v1 = vunpack.c.l.s8.bf16 %v461_v55 }
 0x1bc   : > { %1764 = vmatmul.mubr.bf16.gmra.mrb[64].mxu1 %v612_v3  ;;  %v385_v3 = vld [vmem:[%s5292_s11 + $0xf8] sm:$0xff] }
 0x1bd   : > { %2214 = vmatmul.mubr.bf16.vlgmr.msra.gmra.mrb[0].mxu0 %v488_v6  ;;  %1771 = vmatprep.mubr.bf16.mxu1 %v621_v7  ;;  %v652_v6 = vunpack.c.h.s8.bf16 %v436_v50  ;;  %v2704_v7 = vld [vmem:[%s5754_s17 + $0x138] sm:$0xff]  ;;  %v537_v11 = vunpack.c.l.s8.bf16 %v385_v3  ;;  %v545_v22 = vunpack.c.h.s8.bf16 %v385_v3  ;;  %v685_v50 = vunpack.c.h.s8.bf16 %v453_v27  ;;  %v2721_v3 = vld [vmem:[%s5754_s17 + $0x1c0] sm:$0xff] }
 0x1be   : > { %2221 = vmatprep.mubr.bf16.mxu0 %v497_v8  ;;  %2921 = vperm.xlu0 %4951, %v2703_v4   ;;  %v528_v8 = vunpack.c.h.s8.bf16 %v376_v51  ;;  %v2722_v4 = vld [vmem:[%s5754_s17 + $0x1c8] sm:$0xff]  ;;  %v2728_v27 = vld [vmem:[%s5754_s17 + $0x1f8] sm:$0xff] }
 0x1bf   : > { %2926 = vperm.xlu1 %4952, %v2704_v7   ;;  %v400_v7 = vld [vmem:[%s5292_s11 + $0x170] sm:$0xff] }
 0x1c2   : > { %2931 = vperm.xlu0 %4951, %v2705_v12   ;;  %v2724_v12 = vld [vmem:[%s5754_s17 + $0x1d8] sm:$0xff] }
 0x1c3   : > { %2936 = vperm.xlu1 %4952, %v2706_v13   ;;  %v568_v13 = vunpack.c.l.s8.bf16 %v400_v7 }
 0x1c4   : > { %1772 = vmatmul.mubr.bf16.gmra.mrb[68].mxu1 %v620_v17  ;;  %v384_v17 = vld [vmem:[%s5292_s11 + $0xf0] sm:$0xff] }
 0x1c5   : > { %2222 = vmatmul.mubr.bf16.gmra.mrb[4].mxu0 %v496_v16  ;;  %1779 = vmatprep.mubr.bf16.mxu1 %v629_v19  ;;  %v660_v16 = vunpack.c.l.s8.bf16 %v444_v14  ;;  %v2708_v19 = vld [vmem:[%s5754_s17 + $0x158] sm:$0xff]  ;;  %v544_v28 = vunpack.c.h.s8.bf16 %v384_v17 }
 0x1c6   : > { %2229 = vmatprep.mubr.bf16.mxu0 %v505_v21  ;;  %2941 = vperm.xlu0 %4951, %v2707_v0   ;;  %v536_v21 = vunpack.c.l.s8.bf16 %v384_v17  ;;  %v577_v17 = vunpack.c.h.s8.bf16 %v401_v56  ;;  %v2725_v0 = vld [vmem:[%s5754_s17 + $0x1e0] sm:$0xff] }
 0x1c7   : > { %2946 = vperm.xlu1 %4952, %v2708_v19   ;;  %v2726_v19 = vld [vmem:[%s5754_s17 + $0x1e8] sm:$0xff] }
 0x1ca   : > { %2951 = vperm.xlu0 %4951, %v2709_v23   ;;  %v5021_v23 = vld [vmem:[%s6221_s3 + $0x20] sm:$0xff]  }
 0x1cb   : > { %2956 = vperm.xlu1 %4952, %v2710_v24  }
 0x1cc   : > { %1780 = vmatmul.mubr.bf16.gmra.mrb[72].mxu1 %v628_v29  ;;  %v393_v29 = vld [vmem:[%s5292_s11 + $0x138] sm:$0xff] }
 0x1cd   : > { %2230 = vmatmul.mubr.bf16.gmra.mrb[8].mxu0 %v504_v33  ;;  %1787 = vmatprep.mubr.bf16.mxu1 %v637_v35  ;;  %v668_v33 = vunpack.c.h.s8.bf16 %v444_v14  ;;  %v5018_v35 = vld [vmem:[%s6221_s3 + $0x8] sm:$0xff]   ;;  %v553_v40 = vunpack.c.l.s8.bf16 %v393_v29  ;;  %v561_v51 = vunpack.c.h.s8.bf16 %v393_v29  ;;  %v701_v14 = vunpack.c.h.s8.bf16 %v461_v55 }
 0x1ce   : > { %2237 = vmatprep.mubr.bf16.mxu0 %v513_v37  ;;  %2961 = vperm.xlu0 %4951, %v2711_v31   ;;  %v2712_v37 = vld [vmem:[%s5754_s17 + $0x178] sm:$0xff]  ;;  %v576_v29 = vunpack.c.h.s8.bf16 %v400_v7 }
 0x1cf   : > { %4454 = vmatprep.subr.bf16.mxu1 %v5018_v35  ;;  %2966 = vperm.xlu1 %4952, %v2712_v37   ;;  %v468_v37 = vld [vmem:[%s5292_s11 + $0x390] sm:$0xff]  ;;  %v433_v7 = vld [vmem:[%s5292_s11 + $0x278] sm:$0xff] }
 0x1d0   : > { %4455 = vmatpush3.bf16.msra.mxu1 %v5018_v35  ;;  %v5022_v35 = vld [vmem:[%s6221_s3 + $0x28] sm:$0xff]  }
 0x1d2   : > { %2971 = vperm.xlu0 %4951, %v2713_v30  }
 0x1d4   : > { %1788 = vmatmul.mubr.bf16.gmra.mrb[76].mxu1 %v636_v41  ;;  %v2714_v41 = vld [vmem:[%s5754_s17 + $0x188] sm:$0xff] }
 0x1d5   : > { %2238 = vmatmul.mubr.bf16.gmra.mrb[12].mxu0 %v512_v32  ;;  %1795 = vmatprep.mubr.bf16.mxu1 %v645_v44  ;;  %v392_v32 = vld [vmem:[%s5292_s11 + $0x130] sm:$0xff] }
 0x1d6   : > { %2245 = vmatprep.mubr.bf16.mxu0 %v521_v46  ;;  %2976 = vperm.xlu1 %4952, %v2714_v41   ;;  %v2715_v44 = vld [vmem:[%s5754_s17 + $0x190] sm:$0xff]  ;;  %v676_v46 = vunpack.c.l.s8.bf16 %v452_v43  ;;  %v552_v48 = vunpack.c.l.s8.bf16 %v392_v32  ;;  %v560_v62 = vunpack.c.h.s8.bf16 %v392_v32  ;;  %v5024_v32 = vld [vmem:[%s6221_s3 + $0x38] sm:$0xff]  }
 0x1d7   : > { %2981 = vperm.xlu0 %4951, %v2715_v44   ;;  %v477_v44 = vld [vmem:[%s5292_s11 + $0x3d8] sm:$0xff] }
 0x1da   : > { %2986 = vperm.xlu1 %4952, %v2716_v47   ;;  %v716_v47 = vunpack.c.h.s8.bf16 %v468_v37 }
 0x1db   : > { %2991 = vperm.xlu0 %4951, %v2717_v36   ;;  %v476_v36 = vld [vmem:[%s5292_s11 + $0x3d0] sm:$0xff] }
 0x1dc   : > { %1796 = vmatmul.mubr.bf16.gmra.mrb[80].mxu1 %v644_v54  ;;  %v2718_v54 = vld [vmem:[%s5754_s17 + $0x1a8] sm:$0xff]  ;;  %v724_v55 = vunpack.c.l.s8.bf16 %v476_v36 }
 0x1dd   : > { %2246 = vmatmul.mubr.bf16.gmra.mrb[16].mxu0 %v520_v59  ;;  %1803 = vmatprep.mubr.bf16.mxu1 %v653_v60  ;;  %v2719_v59 = vld [vmem:[%s5754_s17 + $0x1b0] sm:$0xff]  ;;  %v684_v60 = vunpack.c.h.s8.bf16 %v452_v43 }
 0x1de   : > { %2253 = vmatprep.mubr.bf16.mxu0 %v529_v61  ;;  %2996 = vperm.xlu1 %4952, %v2718_v54   ;;  %v2720_v61 = vld [vmem:[%s5754_s17 + $0x1b8] sm:$0xff]  ;;  %v416_v54 = vld [vmem:[%s5292_s11 + $0x1f0] sm:$0xff] }
 0x1df   : > { %3001 = vperm.xlu0 %4951, %v2719_v59   ;;  %v600_v56 = vunpack.c.l.s8.bf16 %v416_v54  ;;  %v733_v59 = vunpack.c.h.s8.bf16 %v477_v44 }
 0x1e2   : > { %3006 = vperm.xlu1 %4952, %v2720_v61   ;;  %v425_v61 = vld [vmem:[%s5292_s11 + $0x238] sm:$0xff] }
 0x1e3   : > { %3011 = vperm.xlu0 %4951, %v2721_v3   ;;  %v424_v3 = vld [vmem:[%s5292_s11 + $0x230] sm:$0xff] }
 0x1e4   : > { %1804 = vmatmul.mubr.bf16.gmra.mrb[84].mxu1 %v652_v6  ;;  %v460_v6 = vld [vmem:[%s5292_s11 + $0x350] sm:$0xff] }
 0x1e5   : > { %2254 = vmatmul.mubr.bf16.gmra.mrb[20].mxu0 %v528_v8  ;;  %1811 = vmatprep.mubr.bf16.mxu1 %v661_v9  ;;  %v2723_v8 = vld [vmem:[%s5754_s17 + $0x1d0] sm:$0xff]  ;;  %v700_v24 = vunpack.c.h.s8.bf16 %v460_v6 }
 0x1e6   : > { %2261 = vmatprep.mubr.bf16.mxu0 %v537_v11  ;;  %3016 = vperm.xlu1 %4952, %v2722_v4   ;;  %v5019_v9 = vld [vmem:[%s6221_s3 + $0x10] sm:$0xff]   ;;  %v692_v11 = vunpack.c.l.s8.bf16 %v460_v6  ;;  %v616_v4 = vunpack.c.l.s8.bf16 %v424_v3  ;;  %v625_v6 = vunpack.c.h.s8.bf16 %v425_v61 }
 0x1e7   : > { %3021 = vperm.xlu0 %4951, %v2723_v8   ;;  %4456 = vmatprep.subr.bf16.mxu1 %v5019_v9  ;;  %v624_v8 = vunpack.c.h.s8.bf16 %v424_v3 }
 0x1e8   : > { %4457 = vmatpush3.bf16.msra.mxu1 %v5019_v9  ;;  %v633_v9 = vunpack.c.l.s8.bf16 %v433_v7 }
 0x1ea   : > { %3026 = vperm.xlu1 %4952, %v2724_v12  }
 0x1eb   : > { %3031 = vperm.xlu0 %4951, %v2725_v0  }
 0x1ec   : > { %1812 = vmatmul.mubr.bf16.gmra.mrb[88].mxu1 %v660_v16  ;;  %v5020_v16 = vld [vmem:[%s6221_s3 + $0x18] sm:$0xff]  }
 0x1ed   : > { %2262 = vmatmul.mubr.bf16.gmra.mrb[24].mxu0 %v536_v21  ;;  %1819 = vmatprep.mubr.bf16.mxu1 %v669_v18  ;;  %v469_v21 = vld [vmem:[%s5292_s11 + $0x398] sm:$0xff] }
 0x1ee   : > { %2269 = vmatprep.mubr.bf16.mxu0 %v545_v22  ;;  %4458 = vmatprep.subr.bf16.mxu1 %v5020_v16  ;;  %v409_v18 = vld [vmem:[%s5292_s11 + $0x1b8] sm:$0xff]  ;;  %v2727_v22 = vld [vmem:[%s5754_s17 + $0x1f0] sm:$0xff]  ;;  %v709_v31 = vunpack.c.l.s8.bf16 %v469_v21  ;;  %v717_v41 = vunpack.c.h.s8.bf16 %v469_v21  ;;  %s5143_s17 = smov [#allocation6]  }
 0x1ef   : > { %3036 = vperm.xlu1 %4952, %v2726_v19   ;;  %4459 = vmatpush3.bf16.msra.mxu1 %v5020_v16  ;;  %v593_v43 = vunpack.c.h.s8.bf16 %v409_v18  ;;  %s5059_s24 = sshll.u32 %s5143_s17, 4  ;;  %s5060_s24 = int_to_ptr.vmem [resolvable:$false] %s5059_s24 }
 0x1f0   : > { %3041 = vperm.xlu0 %4951, %v2727_v22   ;;  %4460 = vmatprep.subr.bf16.mxu1 %v5021_v23  ;;  %v440_v22 = vld [vmem:[%s5292_s11 + $0x2b0] sm:$0xff]  ;;  %s5061_s30 = scalar_lea.vmem %s5060_s24, 8192  ;;  %p5062_p13 = scmp.lt.s32.totalorder %s6167_s27, %s5060_s24 }
 0x1f1   : > { %p5063_p2 = scmp.lt.s32.totalorder %s5061_s30, %s5055_s16 }
 0x1f3   : > { %3046 = vperm.xlu1 %4952, %v2728_v27   ;;  %4461 = vmatpush3.bf16.msra.mxu1 %v5021_v23  ;;  %p5064_p5 = por %p5063_p2, %p5062_p13 }
 0x1f4   : > { %1820 = vmatmul.mubr.bf16.gmra.mrb[92].mxu1 %v668_v33  ;;  %v585_v33 = vunpack.c.l.s8.bf16 %v409_v18  ;;  %4462 = vmatprep.subr.bf16.mxu1 %v5022_v35 }
 0x1f5   : > { %2270 = vmatmul.mubr.bf16.gmra.mrb[28].mxu0 %v544_v28  ;;  %1827 = vmatprep.mubr.bf16.mxu1 %v677_v39  ;;  %v408_v28 = vld [vmem:[%s5292_s11 + $0x1b0] sm:$0xff]  ;;  %p5065_p4 = pnand %p5064_p5, %p5058_p6 }
 0x1f6   : > { %2277 = vmatprep.mubr.bf16.mxu0 %v553_v40  ;;  %v5023_v39 = vld [vmem:[%s6221_s3 + $0x30] sm:$0xff]   ;;  %v708_v40 = vunpack.c.l.s8.bf16 %v468_v37  ;;  %v584_v30 = vunpack.c.l.s8.bf16 %v408_v28  ;;  %v449_v37 = vld [vmem:[%s5292_s11 + $0x2f8] sm:$0xff] }
 0x1f7   : > { %4463 = vmatpush3.bf16.msra.mxu1 %v5022_v35 }
 0x1f8   : > { %4464 = vmatprep.subr.bf16.mxu1 %v5023_v39 }
 0x1fb   : > { %4465 = vmatpush3.bf16.msra.mxu1 %v5023_v39 }
 0x1fc   : > { %1828 = vmatmul.mubr.bf16.gmra.mrb[96].mxu1 %v676_v46  ;;  %4466 = vmatprep.subr.bf16.mxu1 %v5024_v32  ;;  %v417_v46 = vld [vmem:[%s5292_s11 + $0x1f8] sm:$0xff] }
 0x1fd   : > { %2278 = vmatmul.mubr.bf16.gmra.mrb[32].mxu0 %v552_v48  ;;  %1835 = vmatprep.mubr.bf16.mxu1 %v685_v50  ;;  %v592_v48 = vunpack.c.h.s8.bf16 %v408_v28  ;;  %v725_v50 = vunpack.c.l.s8.bf16 %v477_v44 }
 0x1fe   : > { %2285 = vmatprep.mubr.bf16.mxu0 %v561_v51  ;;  %v601_v51 = vunpack.c.l.s8.bf16 %v417_v46 }
 0x1ff   : > { %4467 = vmatpush3.bf16.msra.mxu1 %v5024_v32 }
 0x204   : > { %1836 = vmatmul.mubr.bf16.gmra.mrb[100].mxu1 %v684_v60  ;;  %v609_v60 = vunpack.c.h.s8.bf16 %v417_v46 }
 0x205   : > { %2286 = vmatmul.mubr.bf16.gmra.mrb[36].mxu0 %v560_v62  ;;  %1843 = vmatprep.mubr.bf16.mxu1 %v693_v1  ;;  %v732_v62 = vunpack.c.h.s8.bf16 %v476_v36  ;;  %v608_v1 = vunpack.c.h.s8.bf16 %v416_v54  ;;  %v457_v36 = vld [vmem:[%s5292_s11 + $0x338] sm:$0xff] }
 0x206   : > { %2293 = vmatprep.mubr.bf16.mxu0 %v569_v2  ;;  %v617_v2 = vunpack.c.l.s8.bf16 %v425_v61  ;;  %v456_v61 = vld [vmem:[%s5292_s11 + $0x330] sm:$0xff] }
 0x207   : > { %v680_v3 = vunpack.c.l.s8.bf16 %v456_v61 }
 0x20c   : > { %1844 = vmatmul.mubr.bf16.gmra.mrb[104].mxu1 %v692_v11  ;;  %v432_v11 = vld [vmem:[%s5292_s11 + $0x270] sm:$0xff] }
 0x20d   : > { %2294 = vmatmul.mubr.bf16.gmra.mrb[40].mxu0 %v568_v13  ;;  %1851 = vmatprep.mubr.bf16.mxu1 %v701_v14  ;;  %v632_v12 = vunpack.c.l.s8.bf16 %v432_v11  ;;  %v641_v13 = vunpack.c.h.s8.bf16 %v433_v7  ;;  %v640_v19 = vunpack.c.h.s8.bf16 %v432_v11 }
 0x20e   : > { %2301 = vmatprep.mubr.bf16.mxu0 %v577_v17  ;;  %v441_v17 = vld [vmem:[%s5292_s11 + $0x2b8] sm:$0xff] }
 0x20f   : > { %v649_v18 = vunpack.c.l.s8.bf16 %v441_v17 }
 0x214   : > { %1852 = vmatmul.mubr.bf16.gmra.mrb[108].mxu1 %v700_v24 }
 0x215   : > { %2302 = vmatmul.mubr.bf16.gmra.mrb[44].mxu0 %v576_v29  ;;  %1859 = vmatprep.mubr.bf16.mxu1 %v709_v31  ;;  %v648_v29 = vunpack.c.l.s8.bf16 %v440_v22 }
 0x216   : > { %2309 = vmatprep.mubr.bf16.mxu0 %v585_v33  ;;  %v657_v33 = vunpack.c.h.s8.bf16 %v441_v17 }
 0x21c   : > { %1860 = vmatmul.mubr.bf16.gmra.mrb[112].mxu1 %v708_v40  ;;  %v656_v40 = vunpack.c.h.s8.bf16 %v440_v22 }
 0x21d   : > { %2310 = vmatmul.mubr.bf16.gmra.mrb[48].mxu0 %v584_v30  ;;  %1867 = vmatprep.mubr.bf16.mxu1 %v717_v41  ;;  %v665_v41 = vunpack.c.l.s8.bf16 %v449_v37 }
 0x21e   : > { %2317 = vmatprep.mubr.bf16.mxu0 %v593_v43  ;;  %v448_v43 = vld [vmem:[%s5292_s11 + $0x2f0] sm:$0xff] }
 0x224   : > { %1868 = vmatmul.mubr.bf16.gmra.mrb[116].mxu1 %v716_v47  ;;  %v664_v47 = vunpack.c.l.s8.bf16 %v448_v43 }
 0x225   : > { %2318 = vmatmul.mubr.bf16.gmra.mrb[52].mxu0 %v592_v48  ;;  %1875 = vmatprep.mubr.bf16.mxu1 %v725_v50  ;;  %v673_v50 = vunpack.c.h.s8.bf16 %v449_v37 }
 0x226   : > { %2325 = vmatprep.mubr.bf16.mxu0 %v601_v51 }
 0x22c   : > { %1876 = vmatmul.mubr.bf16.gmra.mrb[120].mxu1 %v724_v55 }
 0x22d   : > { %2326 = vmatmul.mubr.bf16.gmra.mrb[56].mxu0 %v600_v56  ;;  %1883 = vmatprep.mubr.bf16.mxu1 %v733_v59  ;;  %v672_v56 = vunpack.c.h.s8.bf16 %v448_v43 }
 0x22e   : > { %2333 = vmatprep.mubr.bf16.mxu0 %v609_v60  ;;  %v681_v60 = vunpack.c.l.s8.bf16 %v457_v36 }
 0x234   : > { %1884 = vmatmul.mubr.bf16.gmra.mrb[124].mxu1 %v732_v62 }
 0x235   : > { %2334 = vmatmul.mubr.bf16.gmra.mrb[60].mxu0 %v608_v1 }
 0x236   : > { %2341 = vmatprep.mubr.bf16.mxu0 %v617_v2 }
 0x23d   : > { %2342 = vmatmul.mubr.bf16.gmra.mrb[64].mxu0 %v616_v4 }
 0x23e   : > { %2349 = vmatprep.mubr.bf16.mxu0 %v625_v6  ;;  %v689_v6 = vunpack.c.h.s8.bf16 %v457_v36 }
 0x245   : > { %2350 = vmatmul.mubr.bf16.gmra.mrb[68].mxu0 %v624_v8  ;;  %v465_v8 = vld [vmem:[%s5292_s11 + $0x378] sm:$0xff] }
 0x246   : > { %2357 = vmatprep.mubr.bf16.mxu0 %v633_v9  ;;  %v697_v17 = vunpack.c.l.s8.bf16 %v465_v8 }
 0x24d   : > { %2358 = vmatmul.mubr.bf16.gmra.mrb[72].mxu0 %v632_v12  ;;  %v688_v12 = vunpack.c.h.s8.bf16 %v456_v61  ;;  %v2742_v61 = vpop.permute.xlu1 %2741 }
 0x24e   : > { %2365 = vmatprep.mubr.bf16.mxu0 %v641_v13 }
 0x24f   : > { %v5886_v14 = vpop.f32.mrb[32].mxu1 }
 0x250   : > { %v1703_v0 = vpop.f32.mrb[33].mxu1 }
 0x251   : > { %v5889_v16 = vpop.f32.mrb[34].mxu1  ;;  %v464_v0 = vld [vmem:[%s5292_s11 + $0x370] sm:$0xff] }
 0x252   : > { %v1706_v21 = vpop.f32.mrb[35].mxu1  ;;  %v696_v22 = vunpack.c.l.s8.bf16 %v464_v0 }
 0x255   : > { %2366 = vmatmul.mubr.bf16.gmra.mrb[76].mxu0 %v640_v19 }
 0x256   : > { %2373 = vmatprep.mubr.bf16.mxu0 %v649_v18 }
 0x257   : > { %v5892_v23 = vpop.f32.mrb[36].mxu1 }
 0x258   : > { %v1711_v24 = vpop.f32.mrb[37].mxu1 }
 0x259   : > { %v5894_v27 = vpop.f32.mrb[38].mxu1  ;;  %v2732_v24 = vpop.permute.xlu0 %2731 }
 0x25a   : > { %v1714_v31 = vpop.f32.mrb[39].mxu1 }
 0x25b   : > { %v705_v31 = vunpack.c.h.s8.bf16 %v465_v8 }
 0x25d   : > { %2374 = vmatmul.mubr.bf16.gmra.mrb[80].mxu0 %v648_v29  ;;  %v2737_v37 = vpop.permute.xlu0 %2736 }
 0x25e   : > { %2381 = vmatprep.mubr.bf16.mxu0 %v657_v33 }
 0x25f   : > { %v5896_v35 = vpop.f32.mrb[40].mxu1 }
 0x260   : > { %v1719_v28 = vpop.f32.mrb[41].mxu1 }
 0x261   : > { %v5899_v39 = vpop.f32.mrb[42].mxu1  ;;  %v473_v28 = vld [vmem:[%s5292_s11 + $0x3b8] sm:$0xff] }
 0x262   : > { %v1722_v30 = vpop.f32.mrb[43].mxu1  ;;  %v713_v36 = vunpack.c.l.s8.bf16 %v473_v28 }
 0x265   : > { %2382 = vmatmul.mubr.bf16.gmra.mrb[84].mxu0 %v656_v40 }
 0x266   : > { %2389 = vmatprep.mubr.bf16.mxu0 %v665_v41 }
 0x267   : > { %v5902_v32 = vpop.f32.mrb[44].mxu1 }
 0x268   : > { %v1727_v44 = vpop.f32.mrb[45].mxu1 }
 0x269   : > { %v5904_v46 = vpop.f32.mrb[46].mxu1 }
 0x26a   : > { %v1730_v48 = vpop.f32.mrb[47].mxu1 }
 0x26d   : > { %2390 = vmatmul.mubr.bf16.gmra.mrb[88].mxu0 %v664_v47  ;;  %v704_v47 = vunpack.c.h.s8.bf16 %v464_v0  ;;  %v721_v0 = vunpack.c.h.s8.bf16 %v473_v28 }
 0x26e   : > { %2397 = vmatprep.mubr.bf16.mxu0 %v673_v50 }
 0x26f   : > { %v5906_v51 = vpop.f32.mrb[48].mxu1 }
 0x270   : > { %v1735_v54 = vpop.f32.mrb[49].mxu1 }
 0x271   : > { %v5909_v55 = vpop.f32.mrb[50].mxu1 }
 0x272   : > { %v1738_v59 = vpop.f32.mrb[51].mxu1 }
 0x275   : > { %2398 = vmatmul.mubr.bf16.gmra.mrb[92].mxu0 %v672_v56 }
 0x276   : > { %2405 = vmatprep.mubr.bf16.mxu0 %v681_v60 }
 0x277   : > { %v5912_v62 = vpop.f32.mrb[52].mxu1 }
 0x278   : > { %v1743_v1 = vpop.f32.mrb[53].mxu1 }
 0x279   : > { %v5914_v2 = vpop.f32.mrb[54].mxu1  ;;  %v472_v1 = vld [vmem:[%s5292_s11 + $0x3b0] sm:$0xff] }
 0x27a   : > { %v1746_v4 = vpop.f32.mrb[55].mxu1 }
 0x27d   : > { %2406 = vmatmul.mubr.bf16.gmra.mrb[96].mxu0 %v680_v3 }
 0x27e   : > { %2413 = vmatprep.mubr.bf16.mxu0 %v689_v6 }
 0x27f   : > { %v5916_v7 = vpop.f32.mrb[56].mxu1 }
 0x280   : > { %v1751_v9 = vpop.f32.mrb[57].mxu1 }
 0x281   : > { %v5919_v11 = vpop.f32.mrb[58].mxu1 }
 0x282   : > { %v1754_v13 = vpop.f32.mrb[59].mxu1 }
 0x285   : > { %2414 = vmatmul.mubr.bf16.gmra.mrb[100].mxu0 %v688_v12 }
 0x286   : > { %2421 = vmatprep.mubr.bf16.mxu0 %v697_v17 }
 0x287   : > { %v5922_v19 = vpop.f32.mrb[60].mxu1 }
 0x288   : > { %v1759_v21 = vpop.f32.mrb[61].mxu1 }
 0x289   : > { %v5924_v18 = vpop.f32.mrb[62].mxu1 }
 0x28a   : > { %v1762_v29 = vpop.f32.mrb[63].mxu1 }
 0x28d   : > { %2422 = vmatmul.mubr.bf16.gmra.mrb[104].mxu0 %v696_v22 }
 0x28e   : > { %2429 = vmatprep.mubr.bf16.mxu0 %v705_v31 }
 0x28f   : > { %v5926_v33 = vpop.f32.mrb[64].mxu1 }
 0x290   : > { %v2215_v40 = vpop.f32.mrb[0].mxu0  ;;  %v1767_v30 = vpop.f32.mrb[65].mxu1 }
 0x291   : > { %v4564_v41 = vadd.f32 %v2215_v40, %v5702_v45  ;;  %v2217_v43 = vpop.f32.mrb[1].mxu0  ;;  %v5930_v44 = vpop.f32.mrb[66].mxu1 }
 0x292   : > { %v2218_v48 = vpop.f32.mrb[2].mxu0  ;;  %v1770_v50 = vpop.f32.mrb[67].mxu1 }
 0x293   : > { %v4565_v54 = vadd.f32 %v2218_v48, %v5704_v49  ;;  %v2220_v56 = vpop.f32.mrb[3].mxu0  ;;  %v3049_v59 = vmul.f32 %v4564_v41, %v2732_v24  ;;  %v712_v49 = vunpack.c.l.s8.bf16 %v472_v1  ;;  %v2747_v24 = vpop.permute.xlu1 %2746 }
 0x295   : > { %v3050_v60 = vmul.f32 %v4565_v54, %v2737_v37  ;;  %2430 = vmatmul.mubr.bf16.gmra.mrb[108].mxu0 %v704_v47 }
 0x296   : > { %2437 = vmatprep.mubr.bf16.mxu0 %v713_v36 }
 0x297   : > { %v3113_v3 = vpack.c.bf16 %v3050_v60, %v3049_v59  ;;  %v5934_v4 = vpop.f32.mrb[68].mxu1  ;;  %v2752_v59 = vpop.permute.xlu0 %2751 }
 0x298   : > { %v2223_v45 = vpop.f32.mrb[4].mxu0  ;;  %v1775_v6 = vpop.f32.mrb[69].mxu1 }
 0x299   : > { %v4566_v8 = vadd.f32 %v2223_v45, %v5708_v53  ;;  %v2225_v9 = vpop.f32.mrb[5].mxu0  ;;  %4468 = vmatprep.mubr.bf16.mxu1 %v3113_v3  ;;  %v5937_v12 = vpop.f32.mrb[70].mxu1  ;;  %v481_v53 = vld [vmem:[%s5292_s11 + $0x3f8] sm:$0xff]  ;;  %v480_v45 = vld [vmem:[%s5292_s11 + $0x3f0] sm:$0xff] }
 0x29a   : > { %v2226_v13 = vpop.f32.mrb[6].mxu0  ;;  %v1778_v17 = vpop.f32.mrb[71].mxu1  ;;  %v729_v36 = vunpack.c.l.s8.bf16 %v481_v53 }
 0x29b   : > { %v4567_v21 = vadd.f32 %v2226_v13, %v5710_v58  ;;  %v2228_v22 = vpop.f32.mrb[7].mxu0  ;;  %v3051_v29 = vmul.f32 %v4566_v8, %v2742_v61  ;;  %v720_v58 = vunpack.c.h.s8.bf16 %v472_v1  ;;  %v2757_v60 = vpop.permute.xlu1 %2756 }
 0x29d   : > { %v3052_v31 = vmul.f32 %v4567_v21, %v2747_v24  ;;  %2438 = vmatmul.mubr.bf16.gmra.mrb[112].mxu0 %v712_v49  ;;  %v737_v21 = vunpack.c.h.s8.bf16 %v481_v53  ;;  %v736_v53 = vunpack.c.h.s8.bf16 %v480_v45 }
 0x29e   : > { %2445 = vmatprep.mubr.bf16.mxu0 %v721_v0 }
 0x29f   : > { %v3114_v37 = vpack.c.bf16 %v3052_v31, %v3051_v29  ;;  %v5940_v40 = vpop.f32.mrb[72].mxu1  ;;  %v2762_v29 = vpop.permute.xlu0 %2761 }
 0x2a0   : > { %v2231_v30 = vpop.f32.mrb[8].mxu0  ;;  %v1783_v41 = vpop.f32.mrb[73].mxu1 }
 0x2a1   : > { %v4568_v43 = vadd.f32 %v2231_v30, %v5714_v63  ;;  %v2233_v47 = vpop.f32.mrb[9].mxu0  ;;  %4469 = vmatmul.mubr.bf16.vlgmr.msra.gmra.mrb[128].mxu1 %v3114_v37  ;;  %v5944_v28 = vpop.f32.mrb[74].mxu1 }
 0x2a2   : > { %v2234_v48 = vpop.f32.mrb[10].mxu0  ;;  %v1786_v50 = vpop.f32.mrb[75].mxu1 }
 0x2a3   : > { %v4569_v54 = vadd.f32 %v2234_v48, %v5716_v5  ;;  %v2236_v56 = vpop.f32.mrb[11].mxu0  ;;  %v3053_v61 = vmul.f32 %v4568_v43, %v2752_v59  ;;  %v728_v5 = vunpack.c.l.s8.bf16 %v480_v45  ;;  %v2767_v31 = vpop.permute.xlu1 %2766 }
 0x2a4   : > { %v2772_v59 = vpop.permute.xlu0 %2771 }
 0x2a5   : > { %v3054_v3 = vmul.f32 %v4569_v54, %v2757_v60  ;;  %2446 = vmatmul.mubr.bf16.gmra.mrb[116].mxu0 %v720_v58 }
 0x2a6   : > { %2453 = vmatprep.mubr.bf16.mxu0 %v729_v36 }
 0x2a7   : > { %v5948_v63 = vpop.f32.mrb[76].mxu1  ;;  %v3115_v6 = vpack.c.bf16 %v3054_v3, %v3053_v61  ;;  %v2777_v60 = vpop.permute.xlu1 %2776 }
 0x2a8   : > { %v2239_v8 = vpop.f32.mrb[12].mxu0  ;;  %v1791_v9 = vpop.f32.mrb[77].mxu1 }
 0x2a9   : > { %v4570_v1 = vadd.f32 %v2239_v8, %v5720_v10  ;;  %v2241_v49 = vpop.f32.mrb[13].mxu0  ;;  %4472 = vmatprep.mubr.bf16.mxu1 %v3115_v6  ;;  %v5951_v13 = vpop.f32.mrb[78].mxu1 }
 0x2aa   : > { %v2242_v17 = vpop.f32.mrb[14].mxu0  ;;  %v1794_v0 = vpop.f32.mrb[79].mxu1 }
 0x2ab   : > { %v4571_v22 = vadd.f32 %v2242_v17, %v5722_v15  ;;  %v2244_v24 = vpop.f32.mrb[15].mxu0  ;;  %v3055_v37 = vmul.f32 %v4570_v1, %v2762_v29 }
 0x2ad   : > { %v3056_v30 = vmul.f32 %v4571_v22, %v2767_v31  ;;  %2454 = vmatmul.mubr.bf16.gmra.mrb[120].mxu0 %v728_v5  ;;  %v2787_v22 = vpop.permute.xlu1 %2786 }
 0x2ae   : > { %2461 = vmatprep.mubr.bf16.mxu0 %v737_v21  ;;  %v2782_v21 = vpop.permute.xlu0 %2781 }
 0x2af   : > { %v5954_v41 = vpop.f32.mrb[80].mxu1  ;;  %v3116_v10 = vpack.c.bf16 %v3056_v30, %v3055_v37 }
 0x2b0   : > { %v2247_v43 = vpop.f32.mrb[16].mxu0  ;;  %v1799_v47 = vpop.f32.mrb[81].mxu1 }
 0x2b1   : > { %v4572_v58 = vadd.f32 %v2247_v43, %v5726_v20  ;;  %v2249_v48 = vpop.f32.mrb[17].mxu0  ;;  %4473 = vmatmul.mubr.bf16.gmra.mrb[132].mxu1 %v3116_v10  ;;  %v5957_v50 = vpop.f32.mrb[82].mxu1 }
 0x2b2   : > { %v2250_v15 = vpop.f32.mrb[18].mxu0  ;;  %v1802_v36 = vpop.f32.mrb[83].mxu1 }
 0x2b3   : > { %v4573_v54 = vadd.f32 %v2250_v15, %v5728_v25  ;;  %v2252_v56 = vpop.f32.mrb[19].mxu0  ;;  %v3057_v61 = vmul.f32 %v4572_v58, %v2772_v59  ;;  %v2792_v15 = vpop.permute.xlu0 %2791 }
 0x2b4   : > { %v2797_v36 = vpop.permute.xlu1 %2796 }
 0x2b5   : > { %v3058_v3 = vmul.f32 %v4573_v54, %v2777_v60  ;;  %2462 = vmatmul.mubr.bf16.gmra.mrb[124].mxu0 %v736_v53 }
 0x2b7   : > { %v5960_v6 = vpop.f32.mrb[84].mxu1  ;;  %v3117_v8 = vpack.c.bf16 %v3058_v3, %v3057_v61 }
 0x2b8   : > { %v2255_v9 = vpop.f32.mrb[20].mxu0  ;;  %v1807_v20 = vpop.f32.mrb[85].mxu1 }
 0x2b9   : > { %v4574_v1 = vadd.f32 %v2255_v9, %v5732_v26  ;;  %v2257_v49 = vpop.f32.mrb[21].mxu0  ;;  %4476 = vmatprep.mubr.bf16.mxu1 %v3117_v8  ;;  %v5963_v45 = vpop.f32.mrb[86].mxu1 }
 0x2ba   : > { %v2258_v5 = vpop.f32.mrb[22].mxu0  ;;  %v1810_v17 = vpop.f32.mrb[87].mxu1 }
 0x2bb   : > { %v4575_v25 = vadd.f32 %v2258_v5, %v5734_v38  ;;  %v2260_v0 = vpop.f32.mrb[23].mxu0  ;;  %v3059_v24 = vmul.f32 %v4574_v1, %v2782_v21  ;;  %v2802_v5 = vpop.permute.xlu0 %2801 }
 0x2bc   : > { %v2807_v17 = vpop.permute.xlu1 %2806 }
 0x2bd   : > { %v3060_v29 = vmul.f32 %v4575_v25, %v2787_v22 }
 0x2bf   : > { %v5966_v31 = vpop.f32.mrb[88].mxu1  ;;  %v3118_v37 = vpack.c.bf16 %v3060_v29, %v3059_v24 }
 0x2c0   : > { %v2263_v30 = vpop.f32.mrb[24].mxu0  ;;  %v1815_v10 = vpop.f32.mrb[89].mxu1 }
 0x2c1   : > { %v4576_v26 = vadd.f32 %v2263_v30, %v5738_v42  ;;  %v2265_v43 = vpop.f32.mrb[25].mxu0  ;;  %4477 = vmatmul.mubr.bf16.gmra.mrb[136].mxu1 %v3118_v37  ;;  %v5969_v47 = vpop.f32.mrb[90].mxu1 }
 0x2c2   : > { %v2266_v58 = vpop.f32.mrb[26].mxu0  ;;  %v1818_v48 = vpop.f32.mrb[91].mxu1 }
 0x2c3   : > { %v4577_v38 = vadd.f32 %v2266_v58, %v5740_v34  ;;  %v2268_v53 = vpop.f32.mrb[27].mxu0  ;;  %v3061_v54 = vmul.f32 %v4576_v26, %v2792_v15  ;;  %v2812_v58 = vpop.permute.xlu0 %2811 }
 0x2c4   : > { %v2817_v48 = vpop.permute.xlu1 %2816 }
 0x2c5   : > { %v3062_v56 = vmul.f32 %v4577_v38, %v2797_v36 }
 0x2c7   : > { %v5972_v59 = vpop.f32.mrb[92].mxu1  ;;  %v3119_v60 = vpack.c.bf16 %v3062_v56, %v3061_v54 }
 0x2c8   : > { %v2271_v61 = vpop.f32.mrb[28].mxu0  ;;  %v1823_v3 = vpop.f32.mrb[93].mxu1 }
 0x2c9   : > { %v4578_v42 = vadd.f32 %v2271_v61, %v5744_v52  ;;  %v2273_v8 = vpop.f32.mrb[29].mxu0  ;;  %4480 = vmatprep.mubr.bf16.mxu1 %v3119_v60  ;;  %v5975_v9 = vpop.f32.mrb[94].mxu1 }
 0x2ca   : > { %v2274_v20 = vpop.f32.mrb[30].mxu0  ;;  %v1826_v1 = vpop.f32.mrb[95].mxu1 }
 0x2cb   : > { %v4579_v34 = vadd.f32 %v2274_v20, %v5746_v57  ;;  %v2276_v49 = vpop.f32.mrb[31].mxu0  ;;  %v3063_v25 = vmul.f32 %v4578_v42, %v2802_v5  ;;  %v2822_v20 = vpop.permute.xlu0 %2821 }
 0x2cc   : > { %v2827_v1 = vpop.permute.xlu1 %2826 }
 0x2cd   : > { %v3064_v0 = vmul.f32 %v4579_v34, %v2807_v17 }
 0x2cf   : > { %v5978_v21 = vpop.f32.mrb[96].mxu1  ;;  %v3120_v22 = vpack.c.bf16 %v3064_v0, %v3063_v25 }
 0x2d0   : > { %v2279_v24 = vpop.f32.mrb[32].mxu0  ;;  %v1831_v29 = vpop.f32.mrb[97].mxu1 }
 0x2d1   : > { %v4580_v52 = vadd.f32 %v2279_v24, %v5886_v14  ;;  %v2281_v37 = vpop.f32.mrb[33].mxu0  ;;  %4481 = vmatmul.mubr.bf16.gmra.mrb[140].mxu1 %v3120_v22  ;;  %v5981_v30 = vpop.f32.mrb[98].mxu1 }
 0x2d2   : > { %v2282_v10 = vpop.f32.mrb[34].mxu0  ;;  %v1834_v26 = vpop.f32.mrb[99].mxu1 }
 0x2d3   : > { %v4581_v57 = vadd.f32 %v2282_v10, %v5889_v16  ;;  %v2284_v43 = vpop.f32.mrb[35].mxu0  ;;  %v3065_v38 = vmul.f32 %v4580_v52, %v2812_v58  ;;  %v2832_v10 = vpop.permute.xlu0 %2831 }
 0x2d4   : > { %v2837_v26 = vpop.permute.xlu1 %2836 }
 0x2d5   : > { %v3066_v53 = vmul.f32 %v4581_v57, %v2817_v48 }
 0x2d7   : > { %v5984_v15 = vpop.f32.mrb[100].mxu1  ;;  %v3121_v36 = vpack.c.bf16 %v3066_v53, %v3065_v38 }
 0x2d8   : > { %v2287_v54 = vpop.f32.mrb[36].mxu0  ;;  %v1839_v56 = vpop.f32.mrb[101].mxu1 }
 0x2d9   : > { %v4582_v14 = vadd.f32 %v2287_v54, %v5892_v23  ;;  %v2289_v60 = vpop.f32.mrb[37].mxu0  ;;  %4484 = vmatprep.mubr.bf16.mxu1 %v3121_v36  ;;  %v5987_v61 = vpop.f32.mrb[102].mxu1 }
 0x2da   : > { %v2290_v3 = vpop.f32.mrb[38].mxu0  ;;  %v1842_v42 = vpop.f32.mrb[103].mxu1 }
 0x2db   : > { %v4583_v16 = vadd.f32 %v2290_v3, %v5894_v27  ;;  %v2292_v8 = vpop.f32.mrb[39].mxu0  ;;  %v3067_v34 = vmul.f32 %v4582_v14, %v2822_v20  ;;  %v2842_v3 = vpop.permute.xlu0 %2841 }
 0x2dc   : > { %v2847_v42 = vpop.permute.xlu1 %2846 }
 0x2dd   : > { %v3068_v49 = vmul.f32 %v4583_v16, %v2827_v1 }
 0x2df   : > { %v5990_v5 = vpop.f32.mrb[104].mxu1  ;;  %v3122_v17 = vpack.c.bf16 %v3068_v49, %v3067_v34 }
 0x2e0   : > { %v2295_v25 = vpop.f32.mrb[40].mxu0  ;;  %v1847_v0 = vpop.f32.mrb[105].mxu1 }
 0x2e1   : > { %v4584_v23 = vadd.f32 %v2295_v25, %v5896_v35  ;;  %v2297_v22 = vpop.f32.mrb[41].mxu0  ;;  %4485 = vmatmul.mubr.bf16.gmra.mrb[144].mxu1 %v3122_v17  ;;  %v5993_v24 = vpop.f32.mrb[106].mxu1 }
 0x2e2   : > { %v2298_v29 = vpop.f32.mrb[42].mxu0  ;;  %v1850_v52 = vpop.f32.mrb[107].mxu1 }
 0x2e3   : > { %v4585_v27 = vadd.f32 %v2298_v29, %v5899_v39  ;;  %v2300_v37 = vpop.f32.mrb[43].mxu0  ;;  %v3069_v57 = vmul.f32 %v4584_v23, %v2832_v10  ;;  %v2852_v29 = vpop.permute.xlu0 %2851 }
 0x2e4   : > { %v2857_v52 = vpop.permute.xlu1 %2856 }
 0x2e5   : > { %v3070_v43 = vmul.f32 %v4585_v27, %v2837_v26 }
 0x2e7   : > { %v5996_v58 = vpop.f32.mrb[108].mxu1  ;;  %v3123_v48 = vpack.c.bf16 %v3070_v43, %v3069_v57 }
 0x2e8   : > { %v2303_v38 = vpop.f32.mrb[44].mxu0  ;;  %v1855_v53 = vpop.f32.mrb[109].mxu1 }
 0x2e9   : > { %v4586_v35 = vadd.f32 %v2303_v38, %v5902_v32  ;;  %v2305_v36 = vpop.f32.mrb[45].mxu0  ;;  %4488 = vmatprep.mubr.bf16.mxu1 %v3123_v48  ;;  %v5999_v54 = vpop.f32.mrb[110].mxu1 }
 0x2ea   : > { %v2306_v56 = vpop.f32.mrb[46].mxu0  ;;  %v1858_v14 = vpop.f32.mrb[111].mxu1 }
 0x2eb   : > { %v4587_v39 = vadd.f32 %v2306_v56, %v5904_v46  ;;  %v2308_v60 = vpop.f32.mrb[47].mxu0  ;;  %v3071_v16 = vmul.f32 %v4586_v35, %v2842_v3  ;;  %v2862_v56 = vpop.permute.xlu0 %2861 }
 0x2ec   : > { %v2867_v14 = vpop.permute.xlu1 %2866 }
 0x2ed   : > { %v3072_v8 = vmul.f32 %v4587_v39, %v2847_v42 }
 0x2ef   : > { %v6002_v20 = vpop.f32.mrb[112].mxu1  ;;  %v3124_v1 = vpack.c.bf16 %v3072_v8, %v3071_v16 }
 0x2f0   : > { %v2311_v34 = vpop.f32.mrb[48].mxu0  ;;  %v1863_v49 = vpop.f32.mrb[113].mxu1 }
 0x2f1   : > { %v4588_v32 = vadd.f32 %v2311_v34, %v5906_v51  ;;  %v2313_v17 = vpop.f32.mrb[49].mxu0  ;;  %4489 = vmatmul.mubr.bf16.gmra.mrb[148].mxu1 %v3124_v1  ;;  %v6005_v25 = vpop.f32.mrb[114].mxu1 }
 0x2f2   : > { %v2314_v0 = vpop.f32.mrb[50].mxu0  ;;  %v1866_v23 = vpop.f32.mrb[115].mxu1 }
 0x2f3   : > { %v4589_v46 = vadd.f32 %v2314_v0, %v5909_v55  ;;  %v2316_v22 = vpop.f32.mrb[51].mxu0  ;;  %v3073_v27 = vmul.f32 %v4588_v32, %v2852_v29  ;;  %v2872_v0 = vpop.permute.xlu0 %2871 }
 0x2f4   : > { %v2877_v23 = vpop.permute.xlu1 %2876 }
 0x2f5   : > { %v3074_v37 = vmul.f32 %v4589_v46, %v2857_v52 }
 0x2f7   : > { %v6008_v10 = vpop.f32.mrb[116].mxu1  ;;  %v3125_v26 = vpack.c.bf16 %v3074_v37, %v3073_v27 }
 0x2f8   : > { %v2319_v57 = vpop.f32.mrb[52].mxu0  ;;  %v1871_v43 = vpop.f32.mrb[117].mxu1 }
 0x2f9   : > { %v4590_v51 = vadd.f32 %v2319_v57, %v5912_v62  ;;  %v2321_v48 = vpop.f32.mrb[53].mxu0  ;;  %4492 = vmatprep.mubr.bf16.mxu1 %v3125_v26  ;;  %v6011_v38 = vpop.f32.mrb[118].mxu1 }
 0x2fa   : > { %v2322_v53 = vpop.f32.mrb[54].mxu0  ;;  %v1874_v35 = vpop.f32.mrb[119].mxu1 }
 0x2fb   : > { %v4591_v55 = vadd.f32 %v2322_v53, %v5914_v2  ;;  %v2324_v36 = vpop.f32.mrb[55].mxu0  ;;  %v3075_v39 = vmul.f32 %v4590_v51, %v2862_v56  ;;  %v2882_v53 = vpop.permute.xlu0 %2881 }
 0x2fc   : > { %v2887_v35 = vpop.permute.xlu1 %2886 }
 0x2fd   : > { %v3076_v60 = vmul.f32 %v4591_v55, %v2867_v14 }
 0x2ff   : > { %v6014_v3 = vpop.f32.mrb[120].mxu1  ;;  %v3126_v42 = vpack.c.bf16 %v3076_v60, %v3075_v39 }
 0x300   : > { %v2327_v16 = vpop.f32.mrb[56].mxu0  ;;  %v1879_v8 = vpop.f32.mrb[121].mxu1 }
 0x301   : > { %v4592_v62 = vadd.f32 %v2327_v16, %v5916_v7  ;;  %v2329_v1 = vpop.f32.mrb[57].mxu0  ;;  %4493 = vmatmul.mubr.bf16.gmra.mrb[152].mxu1 %v3126_v42  ;;  %v6017_v34 = vpop.f32.mrb[122].mxu1 }
 0x302   : > { %v2330_v49 = vpop.f32.mrb[58].mxu0  ;;  %v1882_v32 = vpop.f32.mrb[123].mxu1 }
 0x303   : > { %v4593_v2 = vadd.f32 %v2330_v49, %v5919_v11  ;;  %v2332_v17 = vpop.f32.mrb[59].mxu0  ;;  %v3077_v46 = vmul.f32 %v4592_v62, %v2872_v0  ;;  %v2892_v8 = vpop.permute.xlu0 %2891 }
 0x304   : > { %v2897_v62 = vpop.permute.xlu1 %2896 }
 0x305   : > { %v3078_v22 = vmul.f32 %v4593_v2, %v2877_v23 }
 0x307   : > { %v6020_v29 = vpop.f32.mrb[124].mxu1  ;;  %v3127_v52 = vpack.c.bf16 %v3078_v22, %v3077_v46  ;;  %v2902_v46 = vpop.permute.xlu0 %2901 }
 0x308   : > { %v2335_v27 = vpop.f32.mrb[60].mxu0  ;;  %v1887_v37 = vpop.f32.mrb[125].mxu1 }
 0x309   : > { %v4594_v7 = vadd.f32 %v2335_v27, %v5922_v19  ;;  %v2337_v26 = vpop.f32.mrb[61].mxu0  ;;  %4496 = vmatprep.mubr.bf16.mxu1 %v3127_v52  ;;  %v6023_v57 = vpop.f32.mrb[126].mxu1 }
 0x30a   : > { %v2338_v43 = vpop.f32.mrb[62].mxu0  ;;  %v1890_v51 = vpop.f32.mrb[127].mxu1 }
 0x30b   : > { %v4595_v11 = vadd.f32 %v2338_v43, %v5924_v18  ;;  %v2340_v48 = vpop.f32.mrb[63].mxu0  ;;  %v3079_v55 = vmul.f32 %v4594_v7, %v2882_v53  ;;  %v2907_v22 = vpop.permute.xlu1 %2906 }
 0x30d   : > { %v3080_v36 = vmul.f32 %v4595_v11, %v2887_v35  ;;  %v2912_v11 = vpop.permute.xlu0 %2911 }
 0x30f   : > { %v3128_v56 = vpack.c.bf16 %v3080_v36, %v3079_v55  ;;  %v2917_v48 = vpop.permute.xlu1 %2916 }
 0x310   : > { %v2343_v14 = vpop.f32.mrb[64].mxu0 }
 0x311   : > { %v4596_v39 = vadd.f32 %v2343_v14, %v5926_v33  ;;  %v2345_v60 = vpop.f32.mrb[65].mxu0  ;;  %4497 = vmatmul.mubr.bf16.gmra.mrb[156].mxu1 %v3128_v56 }
 0x312   : > { %v2346_v19 = vpop.f32.mrb[66].mxu0  ;;  %v2922_v60 = vpop.permute.xlu0 %2921 }
 0x313   : > { %v4597_v42 = vadd.f32 %v2346_v19, %v5930_v44  ;;  %v2348_v16 = vpop.f32.mrb[67].mxu0  ;;  %v3081_v1 = vmul.f32 %v4596_v39, %v2892_v8  ;;  %v2927_v19 = vpop.permute.xlu1 %2926 }
 0x315   : > { %v3082_v49 = vmul.f32 %v4597_v42, %v2897_v62 }
 0x317   : > { %v3129_v18 = vpack.c.bf16 %v3082_v49, %v3081_v1 }
 0x318   : > { %v2351_v32 = vpop.f32.mrb[68].mxu0 }
 0x319   : > { %v4598_v2 = vadd.f32 %v2351_v32, %v5934_v4  ;;  %v2353_v17 = vpop.f32.mrb[69].mxu0  ;;  %4500 = vmatprep.mubr.bf16.mxu1 %v3129_v18  ;;  %v2932_v32 = vpop.permute.xlu0 %2931 }
 0x31a   : > { %v2354_v0 = vpop.f32.mrb[70].mxu0 }
 0x31b   : > { %v4599_v23 = vadd.f32 %v2354_v0, %v5937_v12  ;;  %v2356_v33 = vpop.f32.mrb[71].mxu0  ;;  %v3083_v52 = vmul.f32 %v4598_v2, %v2902_v46  ;;  %v2937_v2 = vpop.permute.xlu1 %2936 }
 0x31d   : > { %v3084_v27 = vmul.f32 %v4599_v23, %v2907_v22 }
 0x31f   : > { %v3130_v44 = vpack.c.bf16 %v3084_v27, %v3083_v52  ;;  %v2942_v27 = vpop.permute.xlu0 %2941 }
 0x320   : > { %v2359_v37 = vpop.f32.mrb[72].mxu0 }
 0x321   : > { %v4600_v7 = vadd.f32 %v2359_v37, %v5940_v40  ;;  %v2361_v26 = vpop.f32.mrb[73].mxu0  ;;  %4501 = vmatmul.mubr.bf16.gmra.mrb[160].mxu1 %v3130_v44  ;;  %v2947_v44 = vpop.permute.xlu1 %2946 }
 0x322   : > { %v2362_v43 = vpop.f32.mrb[74].mxu0 }
 0x323   : > { %v4601_v51 = vadd.f32 %v2362_v43, %v5944_v28  ;;  %v2364_v4 = vpop.f32.mrb[75].mxu0  ;;  %v3085_v53 = vmul.f32 %v4600_v7, %v2912_v11 }
 0x325   : > { %v3086_v35 = vmul.f32 %v4601_v51, %v2917_v48  ;;  %v2952_v48 = vpop.permute.xlu0 %2951 }
 0x327   : > { %v3131_v12 = vpack.c.bf16 %v3086_v35, %v3085_v53  ;;  %v2957_v53 = vpop.permute.xlu1 %2956 }
 0x328   : > { %v2367_v55 = vpop.f32.mrb[76].mxu0 }
 0x329   : > { %v4602_v36 = vadd.f32 %v2367_v55, %v5948_v63  ;;  %v2369_v56 = vpop.f32.mrb[77].mxu0  ;;  %4504 = vmatprep.mubr.bf16.mxu1 %v3131_v12 }
 0x32a   : > { %v2370_v14 = vpop.f32.mrb[78].mxu0 }
 0x32b   : > { %v4603_v39 = vadd.f32 %v2370_v14, %v5951_v13  ;;  %v2372_v40 = vpop.f32.mrb[79].mxu0  ;;  %v3087_v42 = vmul.f32 %v4602_v36, %v2922_v60  ;;  %v2967_v60 = vpop.permute.xlu1 %2966 }
 0x32c   : > { %v2962_v40 = vpop.permute.xlu0 %2961 }
 0x32d   : > { %v3088_v16 = vmul.f32 %v4603_v39, %v2927_v19 }
 0x32f   : > { %v3132_v28 = vpack.c.bf16 %v3088_v16, %v3087_v42 }
 0x330   : > { %v2375_v8 = vpop.f32.mrb[80].mxu0 }
 0x331   : > { %v4604_v62 = vadd.f32 %v2375_v8, %v5954_v41  ;;  %v2377_v1 = vpop.f32.mrb[81].mxu0  ;;  %4505 = vmatmul.mubr.bf16.gmra.mrb[164].mxu1 %v3132_v28 }
 0x332   : > { %v2378_v49 = vpop.f32.mrb[82].mxu0 }
 0x333   : > { %v4605_v18 = vadd.f32 %v2378_v49, %v5957_v50  ;;  %v2380_v63 = vpop.f32.mrb[83].mxu0  ;;  %v3089_v17 = vmul.f32 %v4604_v62, %v2932_v32  ;;  %v2972_v49 = vpop.permute.xlu0 %2971 }
 0x335   : > { %v3090_v0 = vmul.f32 %v4605_v18, %v2937_v2  ;;  %v2977_v18 = vpop.permute.xlu1 %2976 }
 0x337   : > { %v3133_v13 = vpack.c.bf16 %v3090_v0, %v3089_v17 }
 0x338   : > { %v2383_v23 = vpop.f32.mrb[84].mxu0 }
 0x339   : > { %v4606_v33 = vadd.f32 %v2383_v23, %v5960_v6  ;;  %v2385_v46 = vpop.f32.mrb[85].mxu0  ;;  %4508 = vmatprep.mubr.bf16.mxu1 %v3133_v13 }
 0x33a   : > { %v2386_v22 = vpop.f32.mrb[86].mxu0  ;;  %v2987_v46 = vpop.permute.xlu1 %2986 }
 0x33b   : > { %v4607_v52 = vadd.f32 %v2386_v22, %v5963_v45  ;;  %v2388_v41 = vpop.f32.mrb[87].mxu0  ;;  %v3091_v37 = vmul.f32 %v4606_v33, %v2942_v27  ;;  %v2982_v33 = vpop.permute.xlu0 %2981 }
 0x33d   : > { %v3092_v7 = vmul.f32 %v4607_v52, %v2947_v44 }
 0x33f   : > { %v3134_v50 = vpack.c.bf16 %v3092_v7, %v3091_v37 }
 0x340   : > { %v2391_v26 = vpop.f32.mrb[88].mxu0 }
 0x341   : > { %v4608_v43 = vadd.f32 %v2391_v26, %v5966_v31  ;;  %v2393_v51 = vpop.f32.mrb[89].mxu0  ;;  %4509 = vmatmul.mubr.bf16.gmra.mrb[168].mxu1 %v3134_v50  ;;  %v2992_v50 = vpop.permute.xlu0 %2991 }
 0x342   : > { %v2394_v4 = vpop.f32.mrb[90].mxu0  ;;  %v2997_v26 = vpop.permute.xlu1 %2996 }
 0x343   : > { %v4609_v11 = vadd.f32 %v2394_v4, %v5969_v47  ;;  %v2396_v6 = vpop.f32.mrb[91].mxu0  ;;  %v3093_v35 = vmul.f32 %v4608_v43, %v2952_v48 }
 0x345   : > { %v3094_v12 = vmul.f32 %v4609_v11, %v2957_v53 }
 0x347   : > { %v3135_v45 = vpack.c.bf16 %v3094_v12, %v3093_v35  ;;  %v3002_v35 = vpop.permute.xlu0 %3001  ;;  %v3007_v12 = vpop.permute.xlu1 %3006 }
 0x348   : > { %v2399_v55 = vpop.f32.mrb[92].mxu0 }
 0x349   : > { %v4610_v36 = vadd.f32 %v2399_v55, %v5972_v59  ;;  %v2401_v56 = vpop.f32.mrb[93].mxu0  ;;  %4512 = vmatprep.mubr.bf16.mxu1 %v3135_v45 }
 0x34a   : > { %v2402_v14 = vpop.f32.mrb[94].mxu0 }
 0x34b   : > { %v4611_v39 = vadd.f32 %v2402_v14, %v5975_v9  ;;  %v2404_v31 = vpop.f32.mrb[95].mxu0  ;;  %v3095_v19 = vmul.f32 %v4610_v36, %v2962_v40 }
 0x34c   : > { %v3012_v31 = vpop.permute.xlu0 %3011 }
 0x34d   : > { %v3096_v42 = vmul.f32 %v4611_v39, %v2967_v60  ;;  %v3017_v60 = vpop.permute.xlu1 %3016 }
 0x34f   : > { %v3136_v47 = vpack.c.bf16 %v3096_v42, %v3095_v19 }
 0x350   : > { %v2407_v16 = vpop.f32.mrb[96].mxu0 }
 0x351   : > { %v4612_v28 = vadd.f32 %v2407_v16, %v5978_v21  ;;  %v2409_v8 = vpop.f32.mrb[97].mxu0  ;;  %4513 = vmatmul.mubr.bf16.gmra.mrb[172].mxu1 %v3136_v47 }
 0x352   : > { %v2410_v62 = vpop.f32.mrb[98].mxu0 }
 0x353   : > { %v4613_v1 = vadd.f32 %v2410_v62, %v5981_v30  ;;  %v2412_v59 = vpop.f32.mrb[99].mxu0  ;;  %v3097_v63 = vmul.f32 %v4612_v28, %v2972_v49 }
 0x355   : > { %v3098_v32 = vmul.f32 %v4613_v1, %v2977_v18 }
 0x357   : > { %v3137_v9 = vpack.c.bf16 %v3098_v32, %v3097_v63 }
 0x358   : > { %v2415_v2 = vpop.f32.mrb[100].mxu0 }
 0x359   : > { %v4614_v17 = vadd.f32 %v2415_v2, %v5984_v15  ;;  %v2417_v0 = vpop.f32.mrb[101].mxu0  ;;  %4516 = vmatprep.mubr.bf16.mxu1 %v3137_v9 }
 0x35a   : > { %v2418_v13 = vpop.f32.mrb[102].mxu0 }
 0x35b   : > { %v4615_v23 = vadd.f32 %v2418_v13, %v5987_v61  ;;  %v2420_v21 = vpop.f32.mrb[103].mxu0  ;;  %v3099_v22 = vmul.f32 %v4614_v17, %v2982_v33  ;;  %v3022_v33 = vpop.permute.xlu0 %3021 }
 0x35d   : > { %v3100_v52 = vmul.f32 %v4615_v23, %v2987_v46  ;;  %v3027_v46 = vpop.permute.xlu1 %3026 }
 0x35f   : > { %v3138_v30 = vpack.c.bf16 %v3100_v52, %v3099_v22 }
 0x360   : > { %v2423_v41 = vpop.f32.mrb[104].mxu0 }
 0x361   : > { %v4616_v27 = vadd.f32 %v2423_v41, %v5990_v5  ;;  %v2425_v44 = vpop.f32.mrb[105].mxu0  ;;  %4517 = vmatmul.mubr.bf16.gmra.mrb[176].mxu1 %v3138_v30 }
 0x362   : > { %v2426_v37 = vpop.f32.mrb[106].mxu0 }
 0x363   : > { %v4617_v7 = vadd.f32 %v2426_v37, %v5993_v24  ;;  %v2428_v15 = vpop.f32.mrb[107].mxu0  ;;  %v3101_v43 = vmul.f32 %v4616_v27, %v2992_v50  ;;  %v3037_v50 = vpop.permute.xlu1 %3036 }
 0x365   : > { %v3102_v51 = vmul.f32 %v4617_v7, %v2997_v26 }
 0x367   : > { %v3139_v61 = vpack.c.bf16 %v3102_v51, %v3101_v43 }
 0x368   : > { %v2431_v4 = vpop.f32.mrb[108].mxu0 }
 0x369   : > { %v4618_v11 = vadd.f32 %v2431_v4, %v5996_v58  ;;  %v2433_v6 = vpop.f32.mrb[109].mxu0  ;;  %4520 = vmatprep.mubr.bf16.mxu1 %v3139_v61  ;;  %v6054_v58 = vld [vmem:[%s6222_s4] ss:$0 sm:$0xff] }
 0x36a   : > { %v2434_v48 = vpop.f32.mrb[110].mxu0 }
 0x36b   : > { %v4619_v53 = vadd.f32 %v2434_v48, %v5999_v54  ;;  %v2436_v5 = vpop.f32.mrb[111].mxu0  ;;  %v3103_v45 = vmul.f32 %v4618_v11, %v3002_v35 }
 0x36d   : > { %v3104_v55 = vmul.f32 %v4619_v53, %v3007_v12 }
 0x36f   : > { %v3140_v24 = vpack.c.bf16 %v3104_v55, %v3103_v45 }
 0x370   : > { %v2439_v36 = vpop.f32.mrb[112].mxu0 }
 0x371   : > { %v4620_v56 = vadd.f32 %v2439_v36, %v6002_v20  ;;  %v2441_v14 = vpop.f32.mrb[113].mxu0  ;;  %4521 = vmatmul.mubr.bf16.gmra.mrb[180].mxu1 %v3140_v24 }
 0x372   : > { %v2442_v39 = vpop.f32.mrb[114].mxu0 }
 0x373   : > { %v4621_v54 = vadd.f32 %v2442_v39, %v6005_v25  ;;  %v2444_v40 = vpop.f32.mrb[115].mxu0  ;;  %v3105_v42 = vmul.f32 %v4620_v56, %v3012_v31 }
 0x374   : > { %v4470_v19 = vpop.f32.mrb[128].mxu1  ;;  %v3047_v40 = vpop.permute.xlu1 %3046 }
 0x375   : > { %v3106_v47 = vmul.f32 %v4621_v54, %v3017_v60  ;;  %v3259_v16 = vadd.f32 %v4470_v19, %v6054_v58  ;;  %v3250_v20 = vpop.f32.mrb[129].mxu1 }
 0x376   : > { %v3251_v28 = vadd.f32 %v6054_v58, %v3250_v20  ;;  %v4471_v8 = vpop.f32.mrb[130].mxu1 }
 0x377   : > { %v3262_v62 = vadd.f32 %v4471_v8, %v6054_v58  ;;  %v3253_v1 = vpop.f32.mrb[131].mxu1  ;;  %v3141_v59 = vpack.c.bf16 %v3106_v47, %v3105_v42  ;;  %v3507_v25 = vmax.f32 %v3259_v16, 0.0 }
 0x378   : > { %v3254_v49 = vadd.f32 %v6054_v58, %v3253_v1  ;;  %v2447_v18 = vpop.f32.mrb[116].mxu0  ;;  %v3505_v2 = vmax.f32 %v3251_v28, 0.0 }
 0x379   : > { %v3508_v63 = vmax.f32 %v3262_v62, 0.0  ;;  %v4622_v32 = vadd.f32 %v2447_v18, %v6008_v10  ;;  %v2449_v9 = vpop.f32.mrb[117].mxu0  ;;  %4524 = vmatprep.mubr.bf16.mxu1 %v3141_v59 }
 0x37a   : > { %v3506_v17 = vmax.f32 %v3254_v49, 0.0  ;;  %v2450_v0 = vpop.f32.mrb[118].mxu0 }
 0x37b   : > { %v4229_v13 = vpack.c.bf16 %v3508_v63, %v3507_v25  ;;  %v4623_v23 = vadd.f32 %v2450_v0, %v6011_v38  ;;  %v2452_v21 = vpop.f32.mrb[119].mxu0  ;;  %v3107_v52 = vmul.f32 %v4622_v32, %v3022_v33  ;;  %v3032_v38 = vpop.permute.xlu0 %3031 }
 0x37c   : > { %v4224_v22 = vpack.c.bf16 %v3506_v17, %v3505_v2 }
 0x37d   : > { %4381 = vst [vmem:[%s6064_s15 + $0x8] sm:$0xff] %v4229_v13   ;;  %v3108_v30 = vmul.f32 %v4623_v23, %v3027_v46 }
 0x37e   : > { %4225 = vst [vmem:[%s6064_s15] sm:$0xff] %v4224_v22  }
 0x37f   : > { %v3142_v10 = vpack.c.bf16 %v3108_v30, %v3107_v52  ;;  %v3042_v54 = vpop.permute.xlu0 %3041 }
 0x380   : > { %v2455_v41 = vpop.f32.mrb[120].mxu0 }
 0x381   : > { %v4624_v27 = vadd.f32 %v2455_v41, %v6014_v3  ;;  %v2457_v44 = vpop.f32.mrb[121].mxu0  ;;  %4525 = vmatmul.mubr.bf16.gmra.mrb[184].mxu1 %v3142_v10 }
 0x382   : > { %v2458_v37 = vpop.f32.mrb[122].mxu0 }
 0x383   : > { %v4625_v7 = vadd.f32 %v2458_v37, %v6017_v34  ;;  %v2460_v15 = vpop.f32.mrb[123].mxu0  ;;  %v3109_v43 = vmul.f32 %v4624_v27, %v3032_v38 }
 0x384   : > { %v4474_v26 = vpop.f32.mrb[132].mxu1 }
 0x385   : > { %v3110_v51 = vmul.f32 %v4625_v7, %v3037_v50  ;;  %v3275_v61 = vadd.f32 %v4474_v26, %v6054_v58  ;;  %v3266_v4 = vpop.f32.mrb[133].mxu1 }
 0x386   : > { %v3267_v11 = vadd.f32 %v6054_v58, %v3266_v4  ;;  %v4475_v6 = vpop.f32.mrb[134].mxu1 }
 0x387   : > { %v3278_v48 = vadd.f32 %v4475_v6, %v6054_v58  ;;  %v3269_v3 = vpop.f32.mrb[135].mxu1  ;;  %v3143_v53 = vpack.c.bf16 %v3110_v51, %v3109_v43  ;;  %v3511_v34 = vmax.f32 %v3275_v61, 0.0 }
 0x388   : > { %v3270_v5 = vadd.f32 %v6054_v58, %v3269_v3  ;;  %v2463_v35 = vpop.f32.mrb[124].mxu0  ;;  %v3509_v24 = vmax.f32 %v3267_v11, 0.0 }
 0x389   : > { %v3512_v12 = vmax.f32 %v3278_v48, 0.0  ;;  %v4626_v45 = vadd.f32 %v2463_v35, %v6020_v29  ;;  %v2465_v55 = vpop.f32.mrb[125].mxu0  ;;  %4528 = vmatprep.mubr.bf16.mxu1 %v3143_v53 }
 0x38a   : > { %v3510_v36 = vmax.f32 %v3270_v5, 0.0  ;;  %v2466_v56 = vpop.f32.mrb[126].mxu0 }
 0x38b   : > { %v4239_v14 = vpack.c.bf16 %v3512_v12, %v3511_v34  ;;  %v4627_v39 = vadd.f32 %v2466_v56, %v6023_v57  ;;  %v2468_v31 = vpop.f32.mrb[127].mxu0  ;;  %v3111_v19 = vmul.f32 %v4626_v45, %v3042_v54 }
 0x38c   : > { %v4234_v60 = vpack.c.bf16 %v3510_v36, %v3509_v24 }
 0x38d   : > { %4383 = vst [vmem:[%s6064_s15 + $0x18] sm:$0xff] %v4239_v14   ;;  %v3112_v42 = vmul.f32 %v4627_v39, %v3047_v40 }
 0x38e   : > { %4382 = vst [vmem:[%s6064_s15 + $0x10] sm:$0xff] %v4234_v60  }
 0x38f   : > { %v3144_v47 = vpack.c.bf16 %v3112_v42, %v3111_v19 }
 0x391   : > { %4529 = vmatmul.mubr.bf16.gmra.mrb[188].mxu1 %v3144_v47 }
 0x394   : > { %v4478_v29 = vpop.f32.mrb[136].mxu1 }
 0x395   : > { %v3291_v16 = vadd.f32 %v4478_v29, %v6054_v58  ;;  %v3282_v20 = vpop.f32.mrb[137].mxu1 }
 0x396   : > { %v3283_v28 = vadd.f32 %v6054_v58, %v3282_v20  ;;  %v4479_v8 = vpop.f32.mrb[138].mxu1 }
 0x397   : > { %v3294_v57 = vadd.f32 %v4479_v8, %v6054_v58  ;;  %v3285_v62 = vpop.f32.mrb[139].mxu1  ;;  %v3515_v59 = vmax.f32 %v3291_v16, 0.0 }
 0x398   : > { %v3286_v1 = vadd.f32 %v6054_v58, %v3285_v62  ;;  %v3513_v18 = vmax.f32 %v3283_v28, 0.0 }
 0x399   : > { %v3516_v49 = vmax.f32 %v3294_v57, 0.0 }
 0x39a   : > { %v3514_v25 = vmax.f32 %v3286_v1, 0.0 }
 0x39b   : > { %v4249_v63 = vpack.c.bf16 %v3516_v49, %v3515_v59 }
 0x39c   : > { %v4244_v32 = vpack.c.bf16 %v3514_v25, %v3513_v18 }
 0x39d   : > { %4385 = vst [vmem:[%s6064_s15 + $0x28] sm:$0xff] %v4249_v63  }
 0x39e   : > { %4384 = vst [vmem:[%s6064_s15 + $0x20] sm:$0xff] %v4244_v32  }
 0x3a4   : > { %v4482_v9 = vpop.f32.mrb[140].mxu1 }
 0x3a5   : > { %v3307_v2 = vadd.f32 %v4482_v9, %v6054_v58  ;;  %v3298_v17 = vpop.f32.mrb[141].mxu1 }
 0x3a6   : > { %v3299_v0 = vadd.f32 %v6054_v58, %v3298_v17  ;;  %v4483_v13 = vpop.f32.mrb[142].mxu1 }
 0x3a7   : > { %v3310_v23 = vadd.f32 %v4483_v13, %v6054_v58  ;;  %v3301_v21 = vpop.f32.mrb[143].mxu1  ;;  %v3519_v46 = vmax.f32 %v3307_v2, 0.0 }
 0x3a8   : > { %v3302_v33 = vadd.f32 %v6054_v58, %v3301_v21  ;;  %v3517_v52 = vmax.f32 %v3299_v0, 0.0 }
 0x3a9   : > { %v3520_v22 = vmax.f32 %v3310_v23, 0.0 }
 0x3aa   : > { %v3518_v30 = vmax.f32 %v3302_v33, 0.0 }
 0x3ab   : > { %v4259_v10 = vpack.c.bf16 %v3520_v22, %v3519_v46 }
 0x3ac   : > { %v4254_v41 = vpack.c.bf16 %v3518_v30, %v3517_v52 }
 0x3ad   : > { %4387 = vst [vmem:[%s6064_s15 + $0x38] sm:$0xff] %v4259_v10  }
 0x3ae   : > { %4386 = vst [vmem:[%s6064_s15 + $0x30] sm:$0xff] %v4254_v41  }
 0x3b4   : > { %v4486_v27 = vpop.f32.mrb[144].mxu1 }
 0x3b5   : > { %v3323_v44 = vadd.f32 %v4486_v27, %v6054_v58  ;;  %v3314_v37 = vpop.f32.mrb[145].mxu1 }
 0x3b6   : > { %v3315_v38 = vadd.f32 %v6054_v58, %v3314_v37  ;;  %v4487_v7 = vpop.f32.mrb[146].mxu1 }
 0x3b7   : > { %v3326_v15 = vadd.f32 %v4487_v7, %v6054_v58  ;;  %v3317_v50 = vpop.f32.mrb[147].mxu1  ;;  %v3523_v43 = vmax.f32 %v3323_v44, 0.0 }
 0x3b8   : > { %v3318_v26 = vadd.f32 %v6054_v58, %v3317_v50  ;;  %v3521_v61 = vmax.f32 %v3315_v38, 0.0 }
 0x3b9   : > { %v3524_v51 = vmax.f32 %v3326_v15, 0.0 }
 0x3ba   : > { %v3522_v4 = vmax.f32 %v3318_v26, 0.0 }
 0x3bb   : > { %v4269_v11 = vpack.c.bf16 %v3524_v51, %v3523_v43 }
 0x3bc   : > { %v4264_v6 = vpack.c.bf16 %v3522_v4, %v3521_v61 }
 0x3bd   : > { %4389 = vst [vmem:[%s6064_s15 + $0x48] sm:$0xff] %v4269_v11  }
 0x3be   : > { %4388 = vst [vmem:[%s6064_s15 + $0x40] sm:$0xff] %v4264_v6  }
 0x3c4   : > { %v4490_v48 = vpop.f32.mrb[148].mxu1 }
 0x3c5   : > { %v3339_v3 = vadd.f32 %v4490_v48, %v6054_v58  ;;  %v3330_v53 = vpop.f32.mrb[149].mxu1 }
 0x3c6   : > { %v3331_v5 = vadd.f32 %v6054_v58, %v3330_v53  ;;  %v4491_v35 = vpop.f32.mrb[150].mxu1 }
 0x3c7   : > { %v3342_v34 = vadd.f32 %v4491_v35, %v6054_v58  ;;  %v3333_v12 = vpop.f32.mrb[151].mxu1  ;;  %v3527_v55 = vmax.f32 %v3339_v3, 0.0 }
 0x3c8   : > { %v3334_v45 = vadd.f32 %v6054_v58, %v3333_v12  ;;  %v3525_v36 = vmax.f32 %v3331_v5, 0.0 }
 0x3c9   : > { %v3528_v24 = vmax.f32 %v3342_v34, 0.0 }
 0x3ca   : > { %v3526_v56 = vmax.f32 %v3334_v45, 0.0 }
 0x3cb   : > { %v4279_v14 = vpack.c.bf16 %v3528_v24, %v3527_v55 }
 0x3cc   : > { %v4274_v39 = vpack.c.bf16 %v3526_v56, %v3525_v36 }
 0x3cd   : > { %4391 = vst [vmem:[%s6064_s15 + $0x58] sm:$0xff] %v4279_v14  }
 0x3ce   : > { %4390 = vst [vmem:[%s6064_s15 + $0x50] sm:$0xff] %v4274_v39  }
 0x3d4   : > { %v4494_v31 = vpop.f32.mrb[152].mxu1 }
 0x3d5   : > { %v3355_v54 = vadd.f32 %v4494_v31, %v6054_v58  ;;  %v3346_v40 = vpop.f32.mrb[153].mxu1 }
 0x3d6   : > { %v3347_v60 = vadd.f32 %v6054_v58, %v3346_v40  ;;  %v4495_v19 = vpop.f32.mrb[154].mxu1 }
 0x3d7   : > { %v3358_v42 = vadd.f32 %v4495_v19, %v6054_v58  ;;  %v3349_v47 = vpop.f32.mrb[155].mxu1  ;;  %v3531_v16 = vmax.f32 %v3355_v54, 0.0 }
 0x3d8   : > { %v3350_v29 = vadd.f32 %v6054_v58, %v3349_v47  ;;  %v3529_v28 = vmax.f32 %v3347_v60, 0.0 }
 0x3d9   : > { %v3532_v20 = vmax.f32 %v3358_v42, 0.0 }
 0x3da   : > { %v3530_v8 = vmax.f32 %v3350_v29, 0.0 }
 0x3db   : > { %v4289_v57 = vpack.c.bf16 %v3532_v20, %v3531_v16 }
 0x3dc   : > { %v4284_v62 = vpack.c.bf16 %v3530_v8, %v3529_v28 }
 0x3dd   : > { %4393 = vst [vmem:[%s6064_s15 + $0x68] sm:$0xff] %v4289_v57  }
 0x3de   : > { %4392 = vst [vmem:[%s6064_s15 + $0x60] sm:$0xff] %v4284_v62  }
 0x3e4   : > { %v4498_v1 = vpop.f32.mrb[156].mxu1 }
 0x3e5   : > { %v3371_v59 = vadd.f32 %v4498_v1, %v6054_v58  ;;  %v3362_v49 = vpop.f32.mrb[157].mxu1 }
 0x3e6   : > { %v3363_v18 = vadd.f32 %v6054_v58, %v3362_v49  ;;  %v4499_v25 = vpop.f32.mrb[158].mxu1 }
 0x3e7   : > { %v3374_v63 = vadd.f32 %v4499_v25, %v6054_v58  ;;  %v3365_v32 = vpop.f32.mrb[159].mxu1  ;;  %v3535_v2 = vmax.f32 %v3371_v59, 0.0 }
 0x3e8   : > { %v3366_v9 = vadd.f32 %v6054_v58, %v3365_v32  ;;  %v3533_v0 = vmax.f32 %v3363_v18, 0.0 }
 0x3e9   : > { %v3536_v17 = vmax.f32 %v3374_v63, 0.0 }
 0x3ea   : > { %v3534_v13 = vmax.f32 %v3366_v9, 0.0 }
 0x3eb   : > { %v4299_v23 = vpack.c.bf16 %v3536_v17, %v3535_v2 }
 0x3ec   : > { %v4294_v21 = vpack.c.bf16 %v3534_v13, %v3533_v0 }
 0x3ed   : > { %4395 = vst [vmem:[%s6064_s15 + $0x78] sm:$0xff] %v4299_v23  }
 0x3ee   : > { %4394 = vst [vmem:[%s6064_s15 + $0x70] sm:$0xff] %v4294_v21  }
 0x3f4   : > { %v4502_v33 = vpop.f32.mrb[160].mxu1 }
 0x3f5   : > { %v3387_v46 = vadd.f32 %v4502_v33, %v6054_v58  ;;  %v3378_v22 = vpop.f32.mrb[161].mxu1 }
 0x3f6   : > { %v3379_v52 = vadd.f32 %v6054_v58, %v3378_v22  ;;  %v4503_v30 = vpop.f32.mrb[162].mxu1 }
 0x3f7   : > { %v3390_v10 = vadd.f32 %v4503_v30, %v6054_v58  ;;  %v3381_v41 = vpop.f32.mrb[163].mxu1  ;;  %v3539_v44 = vmax.f32 %v3387_v46, 0.0 }
 0x3f8   : > { %v3382_v27 = vadd.f32 %v6054_v58, %v3381_v41  ;;  %v3537_v38 = vmax.f32 %v3379_v52, 0.0 }
 0x3f9   : > { %v3540_v37 = vmax.f32 %v3390_v10, 0.0 }
 0x3fa   : > { %v3538_v7 = vmax.f32 %v3382_v27, 0.0 }
 0x3fb   : > { %v4309_v15 = vpack.c.bf16 %v3540_v37, %v3539_v44 }
 0x3fc   : > { %v4304_v50 = vpack.c.bf16 %v3538_v7, %v3537_v38 }
 0x3fd   : > { %4397 = vst [vmem:[%s6064_s15 + $0x88] sm:$0xff] %v4309_v15  }
 0x3fe   : > { %4396 = vst [vmem:[%s6064_s15 + $0x80] sm:$0xff] %v4304_v50  }
 0x404   : > { %v4506_v26 = vpop.f32.mrb[164].mxu1 }
 0x405   : > { %v3403_v43 = vadd.f32 %v4506_v26, %v6054_v58  ;;  %v3394_v51 = vpop.f32.mrb[165].mxu1 }
 0x406   : > { %v3395_v61 = vadd.f32 %v6054_v58, %v3394_v51  ;;  %v4507_v4 = vpop.f32.mrb[166].mxu1 }
 0x407   : > { %v3406_v11 = vadd.f32 %v4507_v4, %v6054_v58  ;;  %v3397_v6 = vpop.f32.mrb[167].mxu1  ;;  %v3543_v3 = vmax.f32 %v3403_v43, 0.0 }
 0x408   : > { %v3398_v48 = vadd.f32 %v6054_v58, %v3397_v6  ;;  %v3541_v5 = vmax.f32 %v3395_v61, 0.0 }
 0x409   : > { %v3544_v53 = vmax.f32 %v3406_v11, 0.0 }
 0x40a   : > { %v3542_v35 = vmax.f32 %v3398_v48, 0.0 }
 0x40b   : > { %v4319_v34 = vpack.c.bf16 %v3544_v53, %v3543_v3 }
 0x40c   : > { %v4314_v12 = vpack.c.bf16 %v3542_v35, %v3541_v5 }
 0x40d   : > { %4399 = vst [vmem:[%s6064_s15 + $0x98] sm:$0xff] %v4319_v34  }
 0x40e   : > { %4398 = vst [vmem:[%s6064_s15 + $0x90] sm:$0xff] %v4314_v12  }
 0x414   : > { %v4510_v45 = vpop.f32.mrb[168].mxu1 }
 0x415   : > { %v3419_v55 = vadd.f32 %v4510_v45, %v6054_v58  ;;  %v3410_v24 = vpop.f32.mrb[169].mxu1 }
 0x416   : > { %v3411_v36 = vadd.f32 %v6054_v58, %v3410_v24  ;;  %v4511_v56 = vpop.f32.mrb[170].mxu1 }
 0x417   : > { %v3422_v14 = vadd.f32 %v4511_v56, %v6054_v58  ;;  %v3413_v39 = vpop.f32.mrb[171].mxu1  ;;  %v3547_v54 = vmax.f32 %v3419_v55, 0.0 }
 0x418   : > { %v3414_v31 = vadd.f32 %v6054_v58, %v3413_v39  ;;  %v3545_v60 = vmax.f32 %v3411_v36, 0.0 }
 0x419   : > { %v3548_v40 = vmax.f32 %v3422_v14, 0.0 }
 0x41a   : > { %v3546_v19 = vmax.f32 %v3414_v31, 0.0 }
 0x41b   : > { %v4329_v42 = vpack.c.bf16 %v3548_v40, %v3547_v54 }
 0x41c   : > { %v4324_v47 = vpack.c.bf16 %v3546_v19, %v3545_v60 }
 0x41d   : > { %4401 = vst [vmem:[%s6064_s15 + $0xa8] sm:$0xff] %v4329_v42  }
 0x41e   : > { %4400 = vst [vmem:[%s6064_s15 + $0xa0] sm:$0xff] %v4324_v47  }
 0x424   : > { %v4514_v29 = vpop.f32.mrb[172].mxu1 }
 0x425   : > { %v3435_v16 = vadd.f32 %v4514_v29, %v6054_v58  ;;  %v3426_v20 = vpop.f32.mrb[173].mxu1 }
 0x426   : > { %v3427_v28 = vadd.f32 %v6054_v58, %v3426_v20  ;;  %v4515_v8 = vpop.f32.mrb[174].mxu1 }
 0x427   : > { %v3438_v57 = vadd.f32 %v4515_v8, %v6054_v58  ;;  %v3429_v62 = vpop.f32.mrb[175].mxu1  ;;  %v3551_v59 = vmax.f32 %v3435_v16, 0.0 }
 0x428   : > { %v3430_v1 = vadd.f32 %v6054_v58, %v3429_v62  ;;  %v3549_v18 = vmax.f32 %v3427_v28, 0.0 }
 0x429   : > { %v3552_v49 = vmax.f32 %v3438_v57, 0.0 }
 0x42a   : > { %v3550_v25 = vmax.f32 %v3430_v1, 0.0 }
 0x42b   : > { %v4339_v63 = vpack.c.bf16 %v3552_v49, %v3551_v59 }
 0x42c   : > { %v4334_v32 = vpack.c.bf16 %v3550_v25, %v3549_v18 }
 0x42d   : > { %4403 = vst [vmem:[%s6064_s15 + $0xb8] sm:$0xff] %v4339_v63  }
 0x42e   : > { %4402 = vst [vmem:[%s6064_s15 + $0xb0] sm:$0xff] %v4334_v32  }
 0x434   : > { %v4518_v9 = vpop.f32.mrb[176].mxu1 }
 0x435   : > { %v3451_v2 = vadd.f32 %v4518_v9, %v6054_v58  ;;  %v3442_v17 = vpop.f32.mrb[177].mxu1 }
 0x436   : > { %v3443_v0 = vadd.f32 %v6054_v58, %v3442_v17  ;;  %v4519_v13 = vpop.f32.mrb[178].mxu1 }
 0x437   : > { %v3454_v23 = vadd.f32 %v4519_v13, %v6054_v58  ;;  %v3445_v21 = vpop.f32.mrb[179].mxu1  ;;  %v3555_v46 = vmax.f32 %v3451_v2, 0.0 }
 0x438   : > { %v3446_v33 = vadd.f32 %v6054_v58, %v3445_v21  ;;  %v3553_v52 = vmax.f32 %v3443_v0, 0.0 }
 0x439   : > { %v3556_v22 = vmax.f32 %v3454_v23, 0.0 }
 0x43a   : > { %v3554_v30 = vmax.f32 %v3446_v33, 0.0 }
 0x43b   : > { %v4349_v10 = vpack.c.bf16 %v3556_v22, %v3555_v46 }
 0x43c   : > { %v4344_v41 = vpack.c.bf16 %v3554_v30, %v3553_v52 }
 0x43d   : > { %4405 = vst [vmem:[%s6064_s15 + $0xc8] sm:$0xff] %v4349_v10  }
 0x43e   : > { %4404 = vst [vmem:[%s6064_s15 + $0xc0] sm:$0xff] %v4344_v41  }
 0x444   : > { %v4522_v27 = vpop.f32.mrb[180].mxu1 }
 0x445   : > { %v3467_v44 = vadd.f32 %v4522_v27, %v6054_v58  ;;  %v3458_v37 = vpop.f32.mrb[181].mxu1 }
 0x446   : > { %v3459_v38 = vadd.f32 %v6054_v58, %v3458_v37  ;;  %v4523_v7 = vpop.f32.mrb[182].mxu1 }
 0x447   : > { %v3470_v15 = vadd.f32 %v4523_v7, %v6054_v58  ;;  %v3461_v50 = vpop.f32.mrb[183].mxu1  ;;  %v3559_v43 = vmax.f32 %v3467_v44, 0.0 }
 0x448   : > { %v3462_v26 = vadd.f32 %v6054_v58, %v3461_v50  ;;  %v3557_v61 = vmax.f32 %v3459_v38, 0.0 }
 0x449   : > { %v3560_v51 = vmax.f32 %v3470_v15, 0.0 }
 0x44a   : > { %v3558_v4 = vmax.f32 %v3462_v26, 0.0 }
 0x44b   : > { %v4359_v11 = vpack.c.bf16 %v3560_v51, %v3559_v43 }
 0x44c   : > { %v4354_v6 = vpack.c.bf16 %v3558_v4, %v3557_v61 }
 0x44d   : > { %4407 = vst [vmem:[%s6064_s15 + $0xd8] sm:$0xff] %v4359_v11  }
 0x44e   : > { %4406 = vst [vmem:[%s6064_s15 + $0xd0] sm:$0xff] %v4354_v6  }
 0x454   : > { %v4526_v48 = vpop.f32.mrb[184].mxu1 }
 0x455   : > { %v3483_v3 = vadd.f32 %v4526_v48, %v6054_v58  ;;  %v3474_v53 = vpop.f32.mrb[185].mxu1 }
 0x456   : > { %v3475_v5 = vadd.f32 %v6054_v58, %v3474_v53  ;;  %v4527_v35 = vpop.f32.mrb[186].mxu1 }
 0x457   : > { %v3486_v34 = vadd.f32 %v4527_v35, %v6054_v58  ;;  %v3477_v12 = vpop.f32.mrb[187].mxu1  ;;  %v3563_v55 = vmax.f32 %v3483_v3, 0.0 }
 0x458   : > { %v3478_v45 = vadd.f32 %v6054_v58, %v3477_v12  ;;  %v3561_v36 = vmax.f32 %v3475_v5, 0.0 }
 0x459   : > { %v3564_v24 = vmax.f32 %v3486_v34, 0.0 }
 0x45a   : > { %v3562_v56 = vmax.f32 %v3478_v45, 0.0 }
 0x45b   : > { %v4369_v14 = vpack.c.bf16 %v3564_v24, %v3563_v55 }
 0x45c   : > { %v4364_v39 = vpack.c.bf16 %v3562_v56, %v3561_v36 }
 0x45d   : > { %4409 = vst [vmem:[%s6064_s15 + $0xe8] sm:$0xff] %v4369_v14  }
 0x45e   : > { %4408 = vst [vmem:[%s6064_s15 + $0xe0] sm:$0xff] %v4364_v39  }
 0x464   : > { %v4530_v31 = vpop.f32.mrb[188].mxu1 }
 0x465   : > { %v3499_v54 = vadd.f32 %v4530_v31, %v6054_v58  ;;  %v3490_v40 = vpop.f32.mrb[189].mxu1 }
 0x466   : > { %v3491_v60 = vadd.f32 %v6054_v58, %v3490_v40  ;;  %v4531_v19 = vpop.f32.mrb[190].mxu1 }
 0x467   : > { %v3502_v42 = vadd.f32 %v4531_v19, %v6054_v58  ;;  %v3493_v47 = vpop.f32.mrb[191].mxu1  ;;  %v3567_v16 = vmax.f32 %v3499_v54, 0.0 }
 0x468   : > { %v3494_v29 = vadd.f32 %v6054_v58, %v3493_v47  ;;  %v3565_v28 = vmax.f32 %v3491_v60, 0.0 }
 0x469   : > { %v3568_v20 = vmax.f32 %v3502_v42, 0.0 }
 0x46a   : > { %v3566_v8 = vmax.f32 %v3494_v29, 0.0 }
 0x46b   : > { %v4379_v57 = vpack.c.bf16 %v3568_v20, %v3567_v16 }
 0x46c   : > { %v4374_v62 = vpack.c.bf16 %v3566_v8, %v3565_v28 }
 0x46d   : > { %4411 = vst [vmem:[%s6064_s15 + $0xf8] sm:$0xff] %v4379_v57  }
 0x46e   : > { %4410 = vst [vmem:[%s6064_s15 + $0xf0] sm:$0xff] %v4374_v62  }
 0x46f   : > { %5068 = shalt.err (!%p5065_p4)
}
 0x470   : > { %s5069_s9 = scalar_lea.hbm %s6165_s14, 4096  ;;  %s5073_s13 = scalar_lea.hbm %s6223_s5, 8192 }
 0x471   : > { %p5070_p7 = scmp.ne.s32.totalorder %s6165_s14, %s5069_s9  ;;  %p5074_p1 = scmp.lt.u32.totalorder %s6165_s14, %s6223_s5 }
 0x472   : > { %p5075_p3 = scmp.lt.u32.totalorder %s5073_s13, %s5069_s9  ;;  %p5077_p9 = scmp.lt.u32.totalorder %s5069_s9, %s6165_s14 }
 0x473   : > { %p5071_p10 = pnand %p5070_p7, %p6231_p11 }
 0x474   : > { %p5076_p8 = por %p5075_p3, %p5074_p1 }
 0x475   : > { %p5072_p12 = pneg %p5071_p10 }
 0x476   : > { %p5078_p0 = por %p5077_p9, %p5076_p8 }
 0x478   : > { %p5079_p6 = pnand %p5078_p0, %p5072_p12 }
 0x47a   : > { %5082 = shalt.err (!%p5079_p6)
}
 0x47b   : > { %s5144_s28 = smov 64   ;;  %s5145_s10 = smov 4  }
 0x47c   : > { %4886 = dma.vmem_to_hbm [thread:$0]  (%p6231_p11), %s6167_s27, 4096, %s6165_s14, %s3890_s21, %s5144_s28, %s5144_s28, %s5145_s10  }
 0x47d PF: > { %s3918_s16 = sand.u32 1, %s5117_s18   ;;  %p6232_p13 = scmp.ne.s32.totalorder %s6228_s8, 0 }
 0x47e   : > { %p6233_p2 = scmp.ge.s32.totalorder %s5137_s23, 2  ;;  %s3919_s17 = scalar_lea.sflag [#allocation5], %s3918_s16 }
 0x480   : > { %p4893_p5 = pnand %p6233_p2, %p6232_p13 }
 0x482   : > { %5112 = dma.done.wait (!%p4893_p5), %s3919_s17, 4096  }
 0x483   : > { %5114 = vsyncadd (!%p4893_p5), %s3919_s17, 4294963200  ;;  %s21_s23 = sadd.s32 1, %s5137_s23   ;;  %s6234_s18 = smov %s5121_s19 }
 0x484   : > { %p18_p4 = scmp.ge.s32.totalorder %s21_s23, 4   ;;  %s6235_s19 = smov %s5125_s20 }
 0x485   : > { %s6236_s20 = smov %s5232_s7  ;;  %s6237_s21 = smov %s5133_s22 }
 0x486   : > { %s6238_s22 = smov %s6240_s26  ;;  %20 = sbr.rel (!%p18_p4) target bundleno = 6 (0x6), region = 96 }
 0x48d   :  { %3924 = vsyncpa [#allocation4], 1 }
 0x48e   :  { %3926 = vsyncpa [#allocation4 + $0x1], 1 }
 0x48f   :  { %3927 = vsyncpa [#allocation5], 1 }
 0x490   :  { %3929 = vsyncpa [#allocation5 + $0x1], 1 }

</bundles_post_ra>
